<compile_context>
chip_gen: v5e
topology: v5e:2x2
jax: 0.10.0
libtpu: 0.0.40
codegen_flags: <defaults>
</compile_context>

<pallas_src>
import numpy as np
import jax
import jax.numpy as jnp
from jax.experimental import pallas as pl
from jax.experimental.pallas import tpu as pltpu

# ---- hyperparameters (small, consistent with the module) -------------------
HID_RNN = 32        # hidR
HID_CNN = 16        # hidC == m (conv kernel spans the full feature width)
HID_SKIP = 8        # hidS
CNN_KERNEL = 4      # Ck
SKIP = 4
SEQ_LEN = 16        # P
SEQ_LEN_PRED = 6
INPUT_SIZE = 8
BATCH = 2

T_CONV = SEQ_LEN - CNN_KERNEL + 1            # conv output length along time
PT = (SEQ_LEN - CNN_KERNEL) // SKIP          # int((P - Ck) / skip)
OFF = T_CONV - PT * SKIP                     # first time index of the skip slab

# ---- packed-weight layout ----------------------------------------------------
GSTRIDE = 128                                # gate stride (r|z|n at 0/128/256)
WW_LANES = 3 * GSTRIDE                       # 384

_WW_WI1 = 0                                  # (HID_CNN, 384)
_WW_WH1 = _WW_WI1 + HID_CNN                  # (HID_RNN, 384)
_WW_WIS = _WW_WH1 + HID_RNN                  # (HID_CNN, 384)
_WW_WHS = _WW_WIS + HID_CNN                  # (HID_SKIP, 384)
_WW_BIAS = _WW_WHS + HID_SKIP                # 8-row bias block
_WW_BI1 = _WW_BIAS + 0                       # bi1 (+bh_r,+bh_z folded), padded
_WW_BH1N = _WW_BIAS + 1                      # bh1_n at lanes 256:256+HID_RNN
_WW_BIS = _WW_BIAS + 2                       # bis (+bh_r,+bh_z folded), padded
_WW_BHSN = _WW_BIAS + 3                      # bhs_n at lanes 256:256+HID_SKIP
WW_ROWS = _WW_BIAS + 8                       # 80

_CONV_RSTRIDE = ((INPUT_SIZE + 7) // 8) * 8  # 8
_WN_CONV = 0                                 # k-th block: rows k*8 : k*8+INPUT
_WN_BCONV = _WN_CONV + CNN_KERNEL * _CONV_RSTRIDE      # 32
_WN_W12H = _WN_BCONV + 8                               # 40  (HID_RNN rows)
_WN_W12S = _WN_W12H + HID_RNN                          # 72  (SKIP*HID_SKIP rows)
_WN_B12 = _WN_W12S + SKIP * HID_SKIP                   # 104
WN_ROWS = _WN_B12 + 8                                  # 112
WN_LANES = max(HID_CNN, SEQ_LEN_PRED)                  # 16

_VMEM = pl.BlockSpec(memory_space=pltpu.MemorySpace.VMEM)


# ---- the single fused kernel ------------------------------------------------
def _lstnet_kernel(x_ref, ww_ref, wn_ref, o_ref):
    f32 = jnp.float32
    BP = x_ref.shape[0] // SEQ_LEN            # padded batch (multiple of 8)
    HR, HS, HC = HID_RNN, HID_SKIP, HID_CNN

    x = x_ref[...]                            # (SEQ_LEN*BP, INPUT), rows (t, b)

    # ---- conv (proj pre-folded host-side) as Ck accumulated matmuls + ReLU --
    c = jnp.broadcast_to(wn_ref[_WN_BCONV:_WN_BCONV + 1, :HC],
                         (T_CONV * BP, HC))
    for k in range(CNN_KERNEL):               # static unroll, Ck = 4
        xk = x[k * BP:(k + T_CONV) * BP, :]   # aligned sublane slice (offset k*8)
        wk = wn_ref[k * _CONV_RSTRIDE:k * _CONV_RSTRIDE + INPUT_SIZE, :HC]
        c = c + jnp.dot(xk, wk, preferred_element_type=f32)
    c = jnp.maximum(c, 0.0)                   # (T_CONV*BP, hidC), rows (t, b)
    # dropout == identity (eval mode)

    # ---- GRU1: input projection hoisted; gates at lane offsets 0/128/256 ----
    wi1 = ww_ref[_WW_WI1:_WW_WI1 + HC, :]                     # (hidC, 384)
    wh1 = ww_ref[_WW_WH1:_WW_WH1 + HR, :]                     # (hidR, 384)
    bi1 = ww_ref[_WW_BI1:_WW_BI1 + 1, :]                      # (1, 384)
    bh1n = jnp.broadcast_to(
        ww_ref[_WW_BH1N:_WW_BH1N + 1, 2 * GSTRIDE:2 * GSTRIDE + HR], (BP, HR))
    xw1 = jnp.dot(c, wi1, preferred_element_type=f32) + bi1   # (T_CONV*BP, 384)

    h = jnp.zeros((BP, HR), f32)
    for t in range(T_CONV):                   # static unroll, T = 13
        gx = xw1[t * BP:(t + 1) * BP, :]      # aligned sublane slice
        gh = jnp.dot(h, wh1, preferred_element_type=f32)      # (BP, 384)
        r = jax.nn.sigmoid(gx[:, :HR] + gh[:, :HR])
        z = jax.nn.sigmoid(gx[:, GSTRIDE:GSTRIDE + HR]
                           + gh[:, GSTRIDE:GSTRIDE + HR])
        n = jnp.tanh(gx[:, 2 * GSTRIDE:2 * GSTRIDE + HR]
                     + r * (gh[:, 2 * GSTRIDE:2 * GSTRIDE + HR] + bh1n))
        h = (1.0 - z) * n + z * h             # (BP, hidR)

    # ---- GRUskip: hidden rows ordered (skip_idx, batch) so each step's ------
    # ---- input slab is a contiguous aligned slice of xws (no transposes) ----
    wis = ww_ref[_WW_WIS:_WW_WIS + HC, :]
    whs = ww_ref[_WW_WHS:_WW_WHS + HS, :]
    bis = ww_ref[_WW_BIS:_WW_BIS + 1, :]
    bhsn = jnp.broadcast_to(
        ww_ref[_WW_BHSN:_WW_BHSN + 1, 2 * GSTRIDE:2 * GSTRIDE + HS],
        (SKIP * BP, HS))
    xws = jnp.dot(c, wis, preferred_element_type=f32) + bis   # (T_CONV*BP, 384)

    hs = jnp.zeros((SKIP * BP, HS), f32)      # row = skip_idx*BP + batch
    for p in range(PT):                       # static unroll, PT = 3
        r0 = (OFF + p * SKIP) * BP            # multiple of 8
        gx = xws[r0:r0 + SKIP * BP, :]        # (SKIP*BP, 384), already in order
        gh = jnp.dot(hs, whs, preferred_element_type=f32)
        r = jax.nn.sigmoid(gx[:, :HS] + gh[:, :HS])
        z = jax.nn.sigmoid(gx[:, GSTRIDE:GSTRIDE + HS]
                           + gh[:, GSTRIDE:GSTRIDE + HS])
        n = jnp.tanh(gx[:, 2 * GSTRIDE:2 * GSTRIDE + HS]
                     + r * (gh[:, 2 * GSTRIDE:2 * GSTRIDE + HS] + bhsn))
        hs = (1.0 - z) * n + z * hs           # (SKIP*BP, hidS)

    # ---- head: fused linear1@linear2, split by row blocks (no lane concats) -
    w12h = wn_ref[_WN_W12H:_WN_W12H + HR, :SEQ_LEN_PRED]       # (hidR, pred)
    b12 = wn_ref[_WN_B12:_WN_B12 + 1, :SEQ_LEN_PRED]           # (1, pred)
    y = jnp.dot(h, w12h, preferred_element_type=f32) + b12     # (BP, pred)
    for s in range(SKIP):                     # static unroll, skip = 4
        w12s = wn_ref[_WN_W12S + s * HS:_WN_W12S + (s + 1) * HS, :SEQ_LEN_PRED]
        y = y + jnp.dot(hs[s * BP:(s + 1) * BP, :], w12s,
                        preferred_element_type=f32)
    o_ref[...] = jax.nn.sigmoid(y)            # (BP, pred)


# ---- parameter init (deterministic, PyTorch-style uniform) ------------------
def init_params(key):
    ks = jax.random.split(key, 16)

    def u(k, shape, fan_in):
        b = 1.0 / np.sqrt(fan_in)
        return jax.random.uniform(k, shape, jnp.float32, -b, b)

    p = {}
    p['w_proj'] = u(ks[0], (INPUT_SIZE, HID_CNN), INPUT_SIZE)
    p['b_proj'] = u(ks[1], (1, HID_CNN), INPUT_SIZE)
    fan_c = CNN_KERNEL * HID_CNN
    p['w_conv'] = u(ks[2], (CNN_KERNEL, HID_CNN, HID_CNN), fan_c)
    p['b_conv'] = u(ks[3], (1, HID_CNN), fan_c)
    p['gru1_wi'] = u(ks[4], (3, HID_CNN, HID_RNN), HID_RNN)
    p['gru1_wh'] = u(ks[5], (3, HID_RNN, HID_RNN), HID_RNN)
    p['gru1_bi'] = u(ks[6], (3, 1, HID_RNN), HID_RNN)
    p['gru1_bh'] = u(ks[7], (3, 1, HID_RNN), HID_RNN)
    p['grus_wi'] = u(ks[8], (3, HID_CNN, HID_SKIP), HID_SKIP)
    p['grus_wh'] = u(ks[9], (3, HID_SKIP, HID_SKIP), HID_SKIP)
    p['grus_bi'] = u(ks[10], (3, 1, HID_SKIP), HID_SKIP)
    p['grus_bh'] = u(ks[11], (3, 1, HID_SKIP), HID_SKIP)
    fan1 = HID_RNN + SKIP * HID_SKIP
    p['w_lin1'] = u(ks[12], (fan1, SEQ_LEN_PRED), fan1)
    p['b_lin1'] = u(ks[13], (1, SEQ_LEN_PRED), fan1)
    p['w_lin2'] = u(ks[14], (SEQ_LEN_PRED, SEQ_LEN_PRED), SEQ_LEN_PRED)
    p['b_lin2'] = u(ks[15], (1, SEQ_LEN_PRED), SEQ_LEN_PRED)
    return p


# ---- one-time host-side weight folding & packing ----------------------------
def fuse_params(p):
    """Fold proj->conv, linear1@linear2, bh_r/bh_z->bi; pack into 2 buffers."""
    pn = {k: np.asarray(v, dtype=np.float64) for k, v in p.items()}

    # proj folded into conv (exact: no nonlinearity between them)
    wfold = np.einsum('im,kmo->kio', pn['w_proj'], pn['w_conv'])   # (Ck, I, C)
    bfold = pn['b_conv'] + pn['b_proj'] @ pn['w_conv'].sum(axis=0)  # (1, C)

    # head: linear2(linear1(.)) folded (exact: no nonlinearity/dropout between)
    w12 = pn['w_lin1'] @ pn['w_lin2']                               # (64, pred)
    b12 = pn['b_lin1'] @ pn['w_lin2'] + pn['b_lin2']                # (1, pred)

    def gate_pad(w3, H):                       # (3, in, H) -> (in, 384)
        out = np.zeros((w3.shape[1], WW_LANES), np.float64)
        for g in range(3):
            out[:, g * GSTRIDE:g * GSTRIDE + H] = w3[g]
        return out

    def bias_pad(bi3, bh3, H):                 # fold bh_r, bh_z; keep bh_n out
        out = np.zeros((1, WW_LANES), np.float64)
        out[:, 0:H] = bi3[0] + bh3[0]
        out[:, GSTRIDE:GSTRIDE + H] = bi3[1] + bh3[1]
        out[:, 2 * GSTRIDE:2 * GSTRIDE + H] = bi3[2]
        return out

    ww = np.zeros((WW_ROWS, WW_LANES), np.float64)
    ww[_WW_WI1:_WW_WI1 + HID_CNN, :] = gate_pad(pn['gru1_wi'], HID_RNN)
    ww[_WW_WH1:_WW_WH1 + HID_RNN, :] = gate_pad(pn['gru1_wh'], HID_RNN)
    ww[_WW_WIS:_WW_WIS + HID_CNN, :] = gate_pad(pn['grus_wi'], HID_SKIP)
    ww[_WW_WHS:_WW_WHS + HID_SKIP, :] = gate_pad(pn['grus_wh'], HID_SKIP)
    ww[_WW_BI1, :] = bias_pad(pn['gru1_bi'], pn['gru1_bh'], HID_RNN)[0]
    ww[_WW_BH1N, 2 * GSTRIDE:2 * GSTRIDE + HID_RNN] = pn['gru1_bh'][2, 0]
    ww[_WW_BIS, :] = bias_pad(pn['grus_bi'], pn['grus_bh'], HID_SKIP)[0]
    ww[_WW_BHSN, 2 * GSTRIDE:2 * GSTRIDE + HID_SKIP] = pn['grus_bh'][2, 0]

    wn = np.zeros((WN_ROWS, WN_LANES), np.float64)
    for k in range(CNN_KERNEL):
        wn[_WN_CONV + k * _CONV_RSTRIDE:
           _WN_CONV + k * _CONV_RSTRIDE + INPUT_SIZE, :HID_CNN] = wfold[k]
    wn[_WN_BCONV, :HID_CNN] = bfold[0]
    wn[_WN_W12H:_WN_W12H + HID_RNN + SKIP * HID_SKIP, :SEQ_LEN_PRED] = w12
    wn[_WN_B12, :SEQ_LEN_PRED] = b12[0]

    return dict(ww=jnp.asarray(ww, jnp.float32), wn=jnp.asarray(wn, jnp.float32))


# ---- forward: single grid-less pallas_call -----------------------------------
@jax.jit
def lstnet_forward(ww, wn, x):
    B = x.shape[0]
    bp = max(8, ((B + 7) // 8) * 8)            # pad batch to full sublanes
    xt = jnp.transpose(x, (1, 0, 2))           # (P, B, I) — time-major
    xt = jnp.pad(xt, ((0, 0), (0, bp - B), (0, 0)))
    x2 = xt.reshape(SEQ_LEN * bp, INPUT_SIZE)  # rows in (t, b) order

    out = pl.pallas_call(
        _lstnet_kernel,
        out_shape=jax.ShapeDtypeStruct((bp, SEQ_LEN_PRED), jnp.float32),
        in_specs=[_VMEM, _VMEM, _VMEM],
        out_specs=_VMEM,
    )(x2, ww, wn)
    return out[:B, :, None]                    # (B, seq_len_pred, 1)


# ---- pure-JAX reference (unfused math, f32 HIGHEST precision) ----------------
_HI = jax.lax.Precision.HIGHEST


def _gru_ref(x_seq, wi, wh, bi, bh, H):
    h = jnp.zeros((x_seq.shape[1], H), jnp.float32)
    for t in range(x_seq.shape[0]):
        x_t = x_seq[t]
        r = jax.nn.sigmoid(jnp.dot(x_t, wi[0], precision=_HI) + bi[0]
                           + jnp.dot(h, wh[0], precision=_HI) + bh[0])
        z = jax.nn.sigmoid(jnp.dot(x_t, wi[1], precision=_HI) + bi[1]
                           + jnp.dot(h, wh[1], precision=_HI) + bh[1])
        n = jnp.tanh(jnp.dot(x_t, wi[2], precision=_HI) + bi[2]
                     + r * (jnp.dot(h, wh[2], precision=_HI) + bh[2]))
        h = (1.0 - z) * n + z * h
    return h


@jax.jit
def lstnet_ref(p, x):
    B = x.shape[0]
    xp = jnp.dot(x, p['w_proj'], precision=_HI) + p['b_proj']
    c = jnp.zeros((B, T_CONV, HID_CNN), jnp.float32)
    for k in range(CNN_KERNEL):
        c = c + jnp.einsum('btm,mo->bto', xp[:, k:k + T_CONV, :],
                           p['w_conv'][k], precision=_HI)
    c = jnp.maximum(c + p['b_conv'], 0.0)
    r = _gru_ref(jnp.transpose(c, (1, 0, 2)),
                 p['gru1_wi'], p['gru1_wh'], p['gru1_bi'], p['gru1_bh'], HID_RNN)
    L = PT * SKIP
    s = c[:, T_CONV - L:, :].reshape(B, PT, SKIP, HID_CNN)
    s = jnp.transpose(s, (1, 0, 2, 3)).reshape(PT, B * SKIP, HID_CNN)
    hs = _gru_ref(s, p['grus_wi'], p['grus_wh'], p['grus_bi'], p['grus_bh'],
                  HID_SKIP).reshape(B, SKIP * HID_SKIP)
    feat = jnp.concatenate([r, hs], axis=1)
    y = jnp.dot(jnp.dot(feat, p['w_lin1'], precision=_HI) + p['b_lin1'],
                p['w_lin2'], precision=_HI) + p['b_lin2']
    return jax.nn.sigmoid(y)[..., None]


if __name__ == "__main__":
    key = jax.random.PRNGKey(0)
    k_param, k_x = jax.random.split(key)
    params = init_params(k_param)
    fused = fuse_params(params)
    x = jax.random.normal(k_x, (BATCH, SEQ_LEN, INPUT_SIZE), jnp.float32)

    out = jax.block_until_ready(lstnet_forward(fused['ww'], fused['wn'], x))
    ref = jax.block_until_ready(lstnet_ref(params, x))

    assert out.shape == (BATCH, SEQ_LEN_PRED, 1)
    # Kernel runs default (single-pass bf16) MXU precision; reference is f32
    # HIGHEST — tolerance relaxed accordingly (outputs are sigmoids in (0,1)).
    np.testing.assert_allclose(np.asarray(out), np.asarray(ref),
                               rtol=1e-2, atol=1e-2)
    print("KERNEL_OK")
</pallas_src>

<mosaic_0001>
module attributes {stable_mosaic.version = 11 : i64} {
  func.func @_lstnet_kernel(%arg0: memref<128x8xf32, #tpu.memory_space<vmem>>, %arg1: memref<80x384xf32, #tpu.memory_space<vmem>>, %arg2: memref<112x16xf32, #tpu.memory_space<vmem>>, %arg3: memref<8x6xf32, #tpu.memory_space<vmem>>) attributes {dimension_semantics = [], scalar_prefetch = 0 : i64, scratch_operands = 0 : i64, tpu.core_type = #tpu.core_type<tc>} {
    %c0 = arith.constant 0 : index
    %c0_0 = arith.constant 0 : index
    %0 = vector.load %arg0[%c0, %c0_0] : memref<128x8xf32, #tpu.memory_space<vmem>>, vector<128x8xf32>
    %c32 = arith.constant 32 : index
    %c0_1 = arith.constant 0 : index
    %1 = vector.load %arg2[%c32, %c0_1] : memref<112x16xf32, #tpu.memory_space<vmem>>, vector<1x16xf32>
    %2 = vector.shape_cast %1 : vector<1x16xf32> to vector<1x16xf32>
    %3 = vector.broadcast %2 : vector<1x16xf32> to vector<104x16xf32>
    %4 = vector.extract_strided_slice %0 {offsets = [0, 0], sizes = [104, 8], strides = [1, 1]} : vector<128x8xf32> to vector<104x8xf32>
    %c0_2 = arith.constant 0 : index
    %c0_3 = arith.constant 0 : index
    %5 = vector.load %arg2[%c0_2, %c0_3] : memref<112x16xf32, #tpu.memory_space<vmem>>, vector<8x16xf32>
    %cst = arith.constant dense<0.000000e+00> : vector<104x16xf32>
    %6 = tpu.matmul %4, %5, %cst {dimension_numbers = #tpu.dot_dimension_numbers<[1], [0], [0], [1], [0, 0, 1, 1], [], []>} : vector<104x8xf32>, vector<8x16xf32>, vector<104x16xf32> -> vector<104x16xf32>
    %7 = arith.addf %3, %6 : vector<104x16xf32>
    %8 = vector.extract_strided_slice %0 {offsets = [8, 0], sizes = [104, 8], strides = [1, 1]} : vector<128x8xf32> to vector<104x8xf32>
    %c8 = arith.constant 8 : index
    %c0_4 = arith.constant 0 : index
    %9 = vector.load %arg2[%c8, %c0_4] : memref<112x16xf32, #tpu.memory_space<vmem>>, vector<8x16xf32>
    %cst_5 = arith.constant dense<0.000000e+00> : vector<104x16xf32>
    %10 = tpu.matmul %8, %9, %cst_5 {dimension_numbers = #tpu.dot_dimension_numbers<[1], [0], [0], [1], [0, 0, 1, 1], [], []>} : vector<104x8xf32>, vector<8x16xf32>, vector<104x16xf32> -> vector<104x16xf32>
    %11 = arith.addf %7, %10 : vector<104x16xf32>
    %12 = vector.extract_strided_slice %0 {offsets = [16, 0], sizes = [104, 8], strides = [1, 1]} : vector<128x8xf32> to vector<104x8xf32>
    %c16 = arith.constant 16 : index
    %c0_6 = arith.constant 0 : index
    %13 = vector.load %arg2[%c16, %c0_6] : memref<112x16xf32, #tpu.memory_space<vmem>>, vector<8x16xf32>
    %cst_7 = arith.constant dense<0.000000e+00> : vector<104x16xf32>
    %14 = tpu.matmul %12, %13, %cst_7 {dimension_numbers = #tpu.dot_dimension_numbers<[1], [0], [0], [1], [0, 0, 1, 1], [], []>} : vector<104x8xf32>, vector<8x16xf32>, vector<104x16xf32> -> vector<104x16xf32>
    %15 = arith.addf %11, %14 : vector<104x16xf32>
    %16 = vector.extract_strided_slice %0 {offsets = [24, 0], sizes = [104, 8], strides = [1, 1]} : vector<128x8xf32> to vector<104x8xf32>
    %c24 = arith.constant 24 : index
    %c0_8 = arith.constant 0 : index
    %17 = vector.load %arg2[%c24, %c0_8] : memref<112x16xf32, #tpu.memory_space<vmem>>, vector<8x16xf32>
    %cst_9 = arith.constant dense<0.000000e+00> : vector<104x16xf32>
    %18 = tpu.matmul %16, %17, %cst_9 {dimension_numbers = #tpu.dot_dimension_numbers<[1], [0], [0], [1], [0, 0, 1, 1], [], []>} : vector<104x8xf32>, vector<8x16xf32>, vector<104x16xf32> -> vector<104x16xf32>
    %19 = arith.addf %15, %18 : vector<104x16xf32>
    %cst_10 = arith.constant 0.000000e+00 : f32
    %20 = vector.broadcast %cst_10 : f32 to vector<104x16xf32>
    %21 = arith.maximumf %19, %20 : vector<104x16xf32>
    %c0_11 = arith.constant 0 : index
    %c0_12 = arith.constant 0 : index
    %22 = vector.load %arg1[%c0_11, %c0_12] : memref<80x384xf32, #tpu.memory_space<vmem>>, vector<16x384xf32>
    %c16_13 = arith.constant 16 : index
    %c0_14 = arith.constant 0 : index
    %23 = vector.load %arg1[%c16_13, %c0_14] : memref<80x384xf32, #tpu.memory_space<vmem>>, vector<32x384xf32>
    %c72 = arith.constant 72 : index
    %c0_15 = arith.constant 0 : index
    %24 = vector.load %arg1[%c72, %c0_15] : memref<80x384xf32, #tpu.memory_space<vmem>>, vector<1x384xf32>
    %c73 = arith.constant 73 : index
    %c256 = arith.constant 256 : index
    %25 = vector.load %arg1[%c73, %c256] : memref<80x384xf32, #tpu.memory_space<vmem>>, vector<1x32xf32>
    %26 = vector.shape_cast %25 : vector<1x32xf32> to vector<1x32xf32>
    %27 = vector.broadcast %26 : vector<1x32xf32> to vector<8x32xf32>
    %cst_16 = arith.constant dense<0.000000e+00> : vector<104x384xf32>
    %28 = tpu.matmul %21, %22, %cst_16 {dimension_numbers = #tpu.dot_dimension_numbers<[1], [0], [0], [1], [0, 0, 1, 1], [], []>} : vector<104x16xf32>, vector<16x384xf32>, vector<104x384xf32> -> vector<104x384xf32>
    %29 = vector.broadcast %24 : vector<1x384xf32> to vector<104x384xf32>
    %30 = arith.addf %28, %29 : vector<104x384xf32>
    %cst_17 = arith.constant 0.000000e+00 : f32
    %31 = vector.broadcast %cst_17 : f32 to vector<8x32xf32>
    %32 = vector.extract_strided_slice %30 {offsets = [0, 0], sizes = [8, 384], strides = [1, 1]} : vector<104x384xf32> to vector<8x384xf32>
    %cst_18 = arith.constant dense<0.000000e+00> : vector<8x384xf32>
    %33 = tpu.matmul %31, %23, %cst_18 {dimension_numbers = #tpu.dot_dimension_numbers<[1], [0], [0], [1], [0, 0, 1, 1], [], []>} : vector<8x32xf32>, vector<32x384xf32>, vector<8x384xf32> -> vector<8x384xf32>
    %34 = vector.extract_strided_slice %32 {offsets = [0, 0], sizes = [8, 32], strides = [1, 1]} : vector<8x384xf32> to vector<8x32xf32>
    %35 = vector.extract_strided_slice %33 {offsets = [0, 0], sizes = [8, 32], strides = [1, 1]} : vector<8x384xf32> to vector<8x32xf32>
    %36 = arith.addf %34, %35 : vector<8x32xf32>
    %37 = arith.negf %36 : vector<8x32xf32>
    %38 = math.exp %37 : vector<8x32xf32>
    %cst_19 = arith.constant 1.000000e+00 : f32
    %39 = vector.broadcast %cst_19 : f32 to vector<8x32xf32>
    %40 = arith.addf %39, %38 : vector<8x32xf32>
    %41 = arith.divf %39, %40 : vector<8x32xf32>
    %42 = vector.extract_strided_slice %32 {offsets = [0, 128], sizes = [8, 32], strides = [1, 1]} : vector<8x384xf32> to vector<8x32xf32>
    %43 = vector.extract_strided_slice %33 {offsets = [0, 128], sizes = [8, 32], strides = [1, 1]} : vector<8x384xf32> to vector<8x32xf32>
    %44 = arith.addf %42, %43 : vector<8x32xf32>
    %45 = arith.negf %44 : vector<8x32xf32>
    %46 = math.exp %45 : vector<8x32xf32>
    %cst_20 = arith.constant 1.000000e+00 : f32
    %47 = vector.broadcast %cst_20 : f32 to vector<8x32xf32>
    %48 = arith.addf %47, %46 : vector<8x32xf32>
    %49 = arith.divf %47, %48 : vector<8x32xf32>
    %50 = vector.extract_strided_slice %32 {offsets = [0, 256], sizes = [8, 32], strides = [1, 1]} : vector<8x384xf32> to vector<8x32xf32>
    %51 = vector.extract_strided_slice %33 {offsets = [0, 256], sizes = [8, 32], strides = [1, 1]} : vector<8x384xf32> to vector<8x32xf32>
    %52 = arith.addf %51, %27 : vector<8x32xf32>
    %53 = arith.mulf %41, %52 : vector<8x32xf32>
    %54 = arith.addf %50, %53 : vector<8x32xf32>
    %55 = math.tanh %54 : vector<8x32xf32>
    %cst_21 = arith.constant 1.000000e+00 : f32
    %56 = vector.broadcast %cst_21 : f32 to vector<8x32xf32>
    %57 = arith.subf %56, %49 : vector<8x32xf32>
    %58 = arith.mulf %57, %55 : vector<8x32xf32>
    %59 = arith.mulf %49, %31 : vector<8x32xf32>
    %60 = arith.addf %58, %59 : vector<8x32xf32>
    %61 = vector.extract_strided_slice %30 {offsets = [8, 0], sizes = [8, 384], strides = [1, 1]} : vector<104x384xf32> to vector<8x384xf32>
    %cst_22 = arith.constant dense<0.000000e+00> : vector<8x384xf32>
    %62 = tpu.matmul %60, %23, %cst_22 {dimension_numbers = #tpu.dot_dimension_numbers<[1], [0], [0], [1], [0, 0, 1, 1], [], []>} : vector<8x32xf32>, vector<32x384xf32>, vector<8x384xf32> -> vector<8x384xf32>
    %63 = vector.extract_strided_slice %61 {offsets = [0, 0], sizes = [8, 32], strides = [1, 1]} : vector<8x384xf32> to vector<8x32xf32>
    %64 = vector.extract_strided_slice %62 {offsets = [0, 0], sizes = [8, 32], strides = [1, 1]} : vector<8x384xf32> to vector<8x32xf32>
    %65 = arith.addf %63, %64 : vector<8x32xf32>
    %66 = arith.negf %65 : vector<8x32xf32>
    %67 = math.exp %66 : vector<8x32xf32>
    %cst_23 = arith.constant 1.000000e+00 : f32
    %68 = vector.broadcast %cst_23 : f32 to vector<8x32xf32>
    %69 = arith.addf %68, %67 : vector<8x32xf32>
    %70 = arith.divf %68, %69 : vector<8x32xf32>
    %71 = vector.extract_strided_slice %61 {offsets = [0, 128], sizes = [8, 32], strides = [1, 1]} : vector<8x384xf32> to vector<8x32xf32>
    %72 = vector.extract_strided_slice %62 {offsets = [0, 128], sizes = [8, 32], strides = [1, 1]} : vector<8x384xf32> to vector<8x32xf32>
    %73 = arith.addf %71, %72 : vector<8x32xf32>
    %74 = arith.negf %73 : vector<8x32xf32>
    %75 = math.exp %74 : vector<8x32xf32>
    %cst_24 = arith.constant 1.000000e+00 : f32
    %76 = vector.broadcast %cst_24 : f32 to vector<8x32xf32>
    %77 = arith.addf %76, %75 : vector<8x32xf32>
    %78 = arith.divf %76, %77 : vector<8x32xf32>
    %79 = vector.extract_strided_slice %61 {offsets = [0, 256], sizes = [8, 32], strides = [1, 1]} : vector<8x384xf32> to vector<8x32xf32>
    %80 = vector.extract_strided_slice %62 {offsets = [0, 256], sizes = [8, 32], strides = [1, 1]} : vector<8x384xf32> to vector<8x32xf32>
    %81 = arith.addf %80, %27 : vector<8x32xf32>
    %82 = arith.mulf %70, %81 : vector<8x32xf32>
    %83 = arith.addf %79, %82 : vector<8x32xf32>
    %84 = math.tanh %83 : vector<8x32xf32>
    %cst_25 = arith.constant 1.000000e+00 : f32
    %85 = vector.broadcast %cst_25 : f32 to vector<8x32xf32>
    %86 = arith.subf %85, %78 : vector<8x32xf32>
    %87 = arith.mulf %86, %84 : vector<8x32xf32>
    %88 = arith.mulf %78, %60 : vector<8x32xf32>
    %89 = arith.addf %87, %88 : vector<8x32xf32>
    %90 = vector.extract_strided_slice %30 {offsets = [16, 0], sizes = [8, 384], strides = [1, 1]} : vector<104x384xf32> to vector<8x384xf32>
    %cst_26 = arith.constant dense<0.000000e+00> : vector<8x384xf32>
    %91 = tpu.matmul %89, %23, %cst_26 {dimension_numbers = #tpu.dot_dimension_numbers<[1], [0], [0], [1], [0, 0, 1, 1], [], []>} : vector<8x32xf32>, vector<32x384xf32>, vector<8x384xf32> -> vector<8x384xf32>
    %92 = vector.extract_strided_slice %90 {offsets = [0, 0], sizes = [8, 32], strides = [1, 1]} : vector<8x384xf32> to vector<8x32xf32>
    %93 = vector.extract_strided_slice %91 {offsets = [0, 0], sizes = [8, 32], strides = [1, 1]} : vector<8x384xf32> to vector<8x32xf32>
    %94 = arith.addf %92, %93 : vector<8x32xf32>
    %95 = arith.negf %94 : vector<8x32xf32>
    %96 = math.exp %95 : vector<8x32xf32>
    %cst_27 = arith.constant 1.000000e+00 : f32
    %97 = vector.broadcast %cst_27 : f32 to vector<8x32xf32>
    %98 = arith.addf %97, %96 : vector<8x32xf32>
    %99 = arith.divf %97, %98 : vector<8x32xf32>
    %100 = vector.extract_strided_slice %90 {offsets = [0, 128], sizes = [8, 32], strides = [1, 1]} : vector<8x384xf32> to vector<8x32xf32>
    %101 = vector.extract_strided_slice %91 {offsets = [0, 128], sizes = [8, 32], strides = [1, 1]} : vector<8x384xf32> to vector<8x32xf32>
    %102 = arith.addf %100, %101 : vector<8x32xf32>
    %103 = arith.negf %102 : vector<8x32xf32>
    %104 = math.exp %103 : vector<8x32xf32>
    %cst_28 = arith.constant 1.000000e+00 : f32
    %105 = vector.broadcast %cst_28 : f32 to vector<8x32xf32>
    %106 = arith.addf %105, %104 : vector<8x32xf32>
    %107 = arith.divf %105, %106 : vector<8x32xf32>
    %108 = vector.extract_strided_slice %90 {offsets = [0, 256], sizes = [8, 32], strides = [1, 1]} : vector<8x384xf32> to vector<8x32xf32>
    %109 = vector.extract_strided_slice %91 {offsets = [0, 256], sizes = [8, 32], strides = [1, 1]} : vector<8x384xf32> to vector<8x32xf32>
    %110 = arith.addf %109, %27 : vector<8x32xf32>
    %111 = arith.mulf %99, %110 : vector<8x32xf32>
    %112 = arith.addf %108, %111 : vector<8x32xf32>
    %113 = math.tanh %112 : vector<8x32xf32>
    %cst_29 = arith.constant 1.000000e+00 : f32
    %114 = vector.broadcast %cst_29 : f32 to vector<8x32xf32>
    %115 = arith.subf %114, %107 : vector<8x32xf32>
    %116 = arith.mulf %115, %113 : vector<8x32xf32>
    %117 = arith.mulf %107, %89 : vector<8x32xf32>
    %118 = arith.addf %116, %117 : vector<8x32xf32>
    %119 = vector.extract_strided_slice %30 {offsets = [24, 0], sizes = [8, 384], strides = [1, 1]} : vector<104x384xf32> to vector<8x384xf32>
    %cst_30 = arith.constant dense<0.000000e+00> : vector<8x384xf32>
    %120 = tpu.matmul %118, %23, %cst_30 {dimension_numbers = #tpu.dot_dimension_numbers<[1], [0], [0], [1], [0, 0, 1, 1], [], []>} : vector<8x32xf32>, vector<32x384xf32>, vector<8x384xf32> -> vector<8x384xf32>
    %121 = vector.extract_strided_slice %119 {offsets = [0, 0], sizes = [8, 32], strides = [1, 1]} : vector<8x384xf32> to vector<8x32xf32>
    %122 = vector.extract_strided_slice %120 {offsets = [0, 0], sizes = [8, 32], strides = [1, 1]} : vector<8x384xf32> to vector<8x32xf32>
    %123 = arith.addf %121, %122 : vector<8x32xf32>
    %124 = arith.negf %123 : vector<8x32xf32>
    %125 = math.exp %124 : vector<8x32xf32>
    %cst_31 = arith.constant 1.000000e+00 : f32
    %126 = vector.broadcast %cst_31 : f32 to vector<8x32xf32>
    %127 = arith.addf %126, %125 : vector<8x32xf32>
    %128 = arith.divf %126, %127 : vector<8x32xf32>
    %129 = vector.extract_strided_slice %119 {offsets = [0, 128], sizes = [8, 32], strides = [1, 1]} : vector<8x384xf32> to vector<8x32xf32>
    %130 = vector.extract_strided_slice %120 {offsets = [0, 128], sizes = [8, 32], strides = [1, 1]} : vector<8x384xf32> to vector<8x32xf32>
    %131 = arith.addf %129, %130 : vector<8x32xf32>
    %132 = arith.negf %131 : vector<8x32xf32>
    %133 = math.exp %132 : vector<8x32xf32>
    %cst_32 = arith.constant 1.000000e+00 : f32
    %134 = vector.broadcast %cst_32 : f32 to vector<8x32xf32>
    %135 = arith.addf %134, %133 : vector<8x32xf32>
    %136 = arith.divf %134, %135 : vector<8x32xf32>
    %137 = vector.extract_strided_slice %119 {offsets = [0, 256], sizes = [8, 32], strides = [1, 1]} : vector<8x384xf32> to vector<8x32xf32>
    %138 = vector.extract_strided_slice %120 {offsets = [0, 256], sizes = [8, 32], strides = [1, 1]} : vector<8x384xf32> to vector<8x32xf32>
    %139 = arith.addf %138, %27 : vector<8x32xf32>
    %140 = arith.mulf %128, %139 : vector<8x32xf32>
    %141 = arith.addf %137, %140 : vector<8x32xf32>
    %142 = math.tanh %141 : vector<8x32xf32>
    %cst_33 = arith.constant 1.000000e+00 : f32
    %143 = vector.broadcast %cst_33 : f32 to vector<8x32xf32>
    %144 = arith.subf %143, %136 : vector<8x32xf32>
    %145 = arith.mulf %144, %142 : vector<8x32xf32>
    %146 = arith.mulf %136, %118 : vector<8x32xf32>
    %147 = arith.addf %145, %146 : vector<8x32xf32>
    %148 = vector.extract_strided_slice %30 {offsets = [32, 0], sizes = [8, 384], strides = [1, 1]} : vector<104x384xf32> to vector<8x384xf32>
    %cst_34 = arith.constant dense<0.000000e+00> : vector<8x384xf32>
    %149 = tpu.matmul %147, %23, %cst_34 {dimension_numbers = #tpu.dot_dimension_numbers<[1], [0], [0], [1], [0, 0, 1, 1], [], []>} : vector<8x32xf32>, vector<32x384xf32>, vector<8x384xf32> -> vector<8x384xf32>
    %150 = vector.extract_strided_slice %148 {offsets = [0, 0], sizes = [8, 32], strides = [1, 1]} : vector<8x384xf32> to vector<8x32xf32>
    %151 = vector.extract_strided_slice %149 {offsets = [0, 0], sizes = [8, 32], strides = [1, 1]} : vector<8x384xf32> to vector<8x32xf32>
    %152 = arith.addf %150, %151 : vector<8x32xf32>
    %153 = arith.negf %152 : vector<8x32xf32>
    %154 = math.exp %153 : vector<8x32xf32>
    %cst_35 = arith.constant 1.000000e+00 : f32
    %155 = vector.broadcast %cst_35 : f32 to vector<8x32xf32>
    %156 = arith.addf %155, %154 : vector<8x32xf32>
    %157 = arith.divf %155, %156 : vector<8x32xf32>
    %158 = vector.extract_strided_slice %148 {offsets = [0, 128], sizes = [8, 32], strides = [1, 1]} : vector<8x384xf32> to vector<8x32xf32>
    %159 = vector.extract_strided_slice %149 {offsets = [0, 128], sizes = [8, 32], strides = [1, 1]} : vector<8x384xf32> to vector<8x32xf32>
    %160 = arith.addf %158, %159 : vector<8x32xf32>
    %161 = arith.negf %160 : vector<8x32xf32>
    %162 = math.exp %161 : vector<8x32xf32>
    %cst_36 = arith.constant 1.000000e+00 : f32
    %163 = vector.broadcast %cst_36 : f32 to vector<8x32xf32>
    %164 = arith.addf %163, %162 : vector<8x32xf32>
    %165 = arith.divf %163, %164 : vector<8x32xf32>
    %166 = vector.extract_strided_slice %148 {offsets = [0, 256], sizes = [8, 32], strides = [1, 1]} : vector<8x384xf32> to vector<8x32xf32>
    %167 = vector.extract_strided_slice %149 {offsets = [0, 256], sizes = [8, 32], strides = [1, 1]} : vector<8x384xf32> to vector<8x32xf32>
    %168 = arith.addf %167, %27 : vector<8x32xf32>
    %169 = arith.mulf %157, %168 : vector<8x32xf32>
    %170 = arith.addf %166, %169 : vector<8x32xf32>
    %171 = math.tanh %170 : vector<8x32xf32>
    %cst_37 = arith.constant 1.000000e+00 : f32
    %172 = vector.broadcast %cst_37 : f32 to vector<8x32xf32>
    %173 = arith.subf %172, %165 : vector<8x32xf32>
    %174 = arith.mulf %173, %171 : vector<8x32xf32>
    %175 = arith.mulf %165, %147 : vector<8x32xf32>
    %176 = arith.addf %174, %175 : vector<8x32xf32>
    %177 = vector.extract_strided_slice %30 {offsets = [40, 0], sizes = [8, 384], strides = [1, 1]} : vector<104x384xf32> to vector<8x384xf32>
    %cst_38 = arith.constant dense<0.000000e+00> : vector<8x384xf32>
    %178 = tpu.matmul %176, %23, %cst_38 {dimension_numbers = #tpu.dot_dimension_numbers<[1], [0], [0], [1], [0, 0, 1, 1], [], []>} : vector<8x32xf32>, vector<32x384xf32>, vector<8x384xf32> -> vector<8x384xf32>
    %179 = vector.extract_strided_slice %177 {offsets = [0, 0], sizes = [8, 32], strides = [1, 1]} : vector<8x384xf32> to vector<8x32xf32>
    %180 = vector.extract_strided_slice %178 {offsets = [0, 0], sizes = [8, 32], strides = [1, 1]} : vector<8x384xf32> to vector<8x32xf32>
    %181 = arith.addf %179, %180 : vector<8x32xf32>
    %182 = arith.negf %181 : vector<8x32xf32>
    %183 = math.exp %182 : vector<8x32xf32>
    %cst_39 = arith.constant 1.000000e+00 : f32
    %184 = vector.broadcast %cst_39 : f32 to vector<8x32xf32>
    %185 = arith.addf %184, %183 : vector<8x32xf32>
    %186 = arith.divf %184, %185 : vector<8x32xf32>
    %187 = vector.extract_strided_slice %177 {offsets = [0, 128], sizes = [8, 32], strides = [1, 1]} : vector<8x384xf32> to vector<8x32xf32>
    %188 = vector.extract_strided_slice %178 {offsets = [0, 128], sizes = [8, 32], strides = [1, 1]} : vector<8x384xf32> to vector<8x32xf32>
    %189 = arith.addf %187, %188 : vector<8x32xf32>
    %190 = arith.negf %189 : vector<8x32xf32>
    %191 = math.exp %190 : vector<8x32xf32>
    %cst_40 = arith.constant 1.000000e+00 : f32
    %192 = vector.broadcast %cst_40 : f32 to vector<8x32xf32>
    %193 = arith.addf %192, %191 : vector<8x32xf32>
    %194 = arith.divf %192, %193 : vector<8x32xf32>
    %195 = vector.extract_strided_slice %177 {offsets = [0, 256], sizes = [8, 32], strides = [1, 1]} : vector<8x384xf32> to vector<8x32xf32>
    %196 = vector.extract_strided_slice %178 {offsets = [0, 256], sizes = [8, 32], strides = [1, 1]} : vector<8x384xf32> to vector<8x32xf32>
    %197 = arith.addf %196, %27 : vector<8x32xf32>
    %198 = arith.mulf %186, %197 : vector<8x32xf32>
    %199 = arith.addf %195, %198 : vector<8x32xf32>
    %200 = math.tanh %199 : vector<8x32xf32>
    %cst_41 = arith.constant 1.000000e+00 : f32
    %201 = vector.broadcast %cst_41 : f32 to vector<8x32xf32>
    %202 = arith.subf %201, %194 : vector<8x32xf32>
    %203 = arith.mulf %202, %200 : vector<8x32xf32>
    %204 = arith.mulf %194, %176 : vector<8x32xf32>
    %205 = arith.addf %203, %204 : vector<8x32xf32>
    %206 = vector.extract_strided_slice %30 {offsets = [48, 0], sizes = [8, 384], strides = [1, 1]} : vector<104x384xf32> to vector<8x384xf32>
    %cst_42 = arith.constant dense<0.000000e+00> : vector<8x384xf32>
    %207 = tpu.matmul %205, %23, %cst_42 {dimension_numbers = #tpu.dot_dimension_numbers<[1], [0], [0], [1], [0, 0, 1, 1], [], []>} : vector<8x32xf32>, vector<32x384xf32>, vector<8x384xf32> -> vector<8x384xf32>
    %208 = vector.extract_strided_slice %206 {offsets = [0, 0], sizes = [8, 32], strides = [1, 1]} : vector<8x384xf32> to vector<8x32xf32>
    %209 = vector.extract_strided_slice %207 {offsets = [0, 0], sizes = [8, 32], strides = [1, 1]} : vector<8x384xf32> to vector<8x32xf32>
    %210 = arith.addf %208, %209 : vector<8x32xf32>
    %211 = arith.negf %210 : vector<8x32xf32>
    %212 = math.exp %211 : vector<8x32xf32>
    %cst_43 = arith.constant 1.000000e+00 : f32
    %213 = vector.broadcast %cst_43 : f32 to vector<8x32xf32>
    %214 = arith.addf %213, %212 : vector<8x32xf32>
    %215 = arith.divf %213, %214 : vector<8x32xf32>
    %216 = vector.extract_strided_slice %206 {offsets = [0, 128], sizes = [8, 32], strides = [1, 1]} : vector<8x384xf32> to vector<8x32xf32>
    %217 = vector.extract_strided_slice %207 {offsets = [0, 128], sizes = [8, 32], strides = [1, 1]} : vector<8x384xf32> to vector<8x32xf32>
    %218 = arith.addf %216, %217 : vector<8x32xf32>
    %219 = arith.negf %218 : vector<8x32xf32>
    %220 = math.exp %219 : vector<8x32xf32>
    %cst_44 = arith.constant 1.000000e+00 : f32
    %221 = vector.broadcast %cst_44 : f32 to vector<8x32xf32>
    %222 = arith.addf %221, %220 : vector<8x32xf32>
    %223 = arith.divf %221, %222 : vector<8x32xf32>
    %224 = vector.extract_strided_slice %206 {offsets = [0, 256], sizes = [8, 32], strides = [1, 1]} : vector<8x384xf32> to vector<8x32xf32>
    %225 = vector.extract_strided_slice %207 {offsets = [0, 256], sizes = [8, 32], strides = [1, 1]} : vector<8x384xf32> to vector<8x32xf32>
    %226 = arith.addf %225, %27 : vector<8x32xf32>
    %227 = arith.mulf %215, %226 : vector<8x32xf32>
    %228 = arith.addf %224, %227 : vector<8x32xf32>
    %229 = math.tanh %228 : vector<8x32xf32>
    %cst_45 = arith.constant 1.000000e+00 : f32
    %230 = vector.broadcast %cst_45 : f32 to vector<8x32xf32>
    %231 = arith.subf %230, %223 : vector<8x32xf32>
    %232 = arith.mulf %231, %229 : vector<8x32xf32>
    %233 = arith.mulf %223, %205 : vector<8x32xf32>
    %234 = arith.addf %232, %233 : vector<8x32xf32>
    %235 = vector.extract_strided_slice %30 {offsets = [56, 0], sizes = [8, 384], strides = [1, 1]} : vector<104x384xf32> to vector<8x384xf32>
    %cst_46 = arith.constant dense<0.000000e+00> : vector<8x384xf32>
    %236 = tpu.matmul %234, %23, %cst_46 {dimension_numbers = #tpu.dot_dimension_numbers<[1], [0], [0], [1], [0, 0, 1, 1], [], []>} : vector<8x32xf32>, vector<32x384xf32>, vector<8x384xf32> -> vector<8x384xf32>
    %237 = vector.extract_strided_slice %235 {offsets = [0, 0], sizes = [8, 32], strides = [1, 1]} : vector<8x384xf32> to vector<8x32xf32>
    %238 = vector.extract_strided_slice %236 {offsets = [0, 0], sizes = [8, 32], strides = [1, 1]} : vector<8x384xf32> to vector<8x32xf32>
    %239 = arith.addf %237, %238 : vector<8x32xf32>
    %240 = arith.negf %239 : vector<8x32xf32>
    %241 = math.exp %240 : vector<8x32xf32>
    %cst_47 = arith.constant 1.000000e+00 : f32
    %242 = vector.broadcast %cst_47 : f32 to vector<8x32xf32>
    %243 = arith.addf %242, %241 : vector<8x32xf32>
    %244 = arith.divf %242, %243 : vector<8x32xf32>
    %245 = vector.extract_strided_slice %235 {offsets = [0, 128], sizes = [8, 32], strides = [1, 1]} : vector<8x384xf32> to vector<8x32xf32>
    %246 = vector.extract_strided_slice %236 {offsets = [0, 128], sizes = [8, 32], strides = [1, 1]} : vector<8x384xf32> to vector<8x32xf32>
    %247 = arith.addf %245, %246 : vector<8x32xf32>
    %248 = arith.negf %247 : vector<8x32xf32>
    %249 = math.exp %248 : vector<8x32xf32>
    %cst_48 = arith.constant 1.000000e+00 : f32
    %250 = vector.broadcast %cst_48 : f32 to vector<8x32xf32>
    %251 = arith.addf %250, %249 : vector<8x32xf32>
    %252 = arith.divf %250, %251 : vector<8x32xf32>
    %253 = vector.extract_strided_slice %235 {offsets = [0, 256], sizes = [8, 32], strides = [1, 1]} : vector<8x384xf32> to vector<8x32xf32>
    %254 = vector.extract_strided_slice %236 {offsets = [0, 256], sizes = [8, 32], strides = [1, 1]} : vector<8x384xf32> to vector<8x32xf32>
    %255 = arith.addf %254, %27 : vector<8x32xf32>
    %256 = arith.mulf %244, %255 : vector<8x32xf32>
    %257 = arith.addf %253, %256 : vector<8x32xf32>
    %258 = math.tanh %257 : vector<8x32xf32>
    %cst_49 = arith.constant 1.000000e+00 : f32
    %259 = vector.broadcast %cst_49 : f32 to vector<8x32xf32>
    %260 = arith.subf %259, %252 : vector<8x32xf32>
    %261 = arith.mulf %260, %258 : vector<8x32xf32>
    %262 = arith.mulf %252, %234 : vector<8x32xf32>
    %263 = arith.addf %261, %262 : vector<8x32xf32>
    %264 = vector.extract_strided_slice %30 {offsets = [64, 0], sizes = [8, 384], strides = [1, 1]} : vector<104x384xf32> to vector<8x384xf32>
    %cst_50 = arith.constant dense<0.000000e+00> : vector<8x384xf32>
    %265 = tpu.matmul %263, %23, %cst_50 {dimension_numbers = #tpu.dot_dimension_numbers<[1], [0], [0], [1], [0, 0, 1, 1], [], []>} : vector<8x32xf32>, vector<32x384xf32>, vector<8x384xf32> -> vector<8x384xf32>
    %266 = vector.extract_strided_slice %264 {offsets = [0, 0], sizes = [8, 32], strides = [1, 1]} : vector<8x384xf32> to vector<8x32xf32>
    %267 = vector.extract_strided_slice %265 {offsets = [0, 0], sizes = [8, 32], strides = [1, 1]} : vector<8x384xf32> to vector<8x32xf32>
    %268 = arith.addf %266, %267 : vector<8x32xf32>
    %269 = arith.negf %268 : vector<8x32xf32>
    %270 = math.exp %269 : vector<8x32xf32>
    %cst_51 = arith.constant 1.000000e+00 : f32
    %271 = vector.broadcast %cst_51 : f32 to vector<8x32xf32>
    %272 = arith.addf %271, %270 : vector<8x32xf32>
    %273 = arith.divf %271, %272 : vector<8x32xf32>
    %274 = vector.extract_strided_slice %264 {offsets = [0, 128], sizes = [8, 32], strides = [1, 1]} : vector<8x384xf32> to vector<8x32xf32>
    %275 = vector.extract_strided_slice %265 {offsets = [0, 128], sizes = [8, 32], strides = [1, 1]} : vector<8x384xf32> to vector<8x32xf32>
    %276 = arith.addf %274, %275 : vector<8x32xf32>
    %277 = arith.negf %276 : vector<8x32xf32>
    %278 = math.exp %277 : vector<8x32xf32>
    %cst_52 = arith.constant 1.000000e+00 : f32
    %279 = vector.broadcast %cst_52 : f32 to vector<8x32xf32>
    %280 = arith.addf %279, %278 : vector<8x32xf32>
    %281 = arith.divf %279, %280 : vector<8x32xf32>
    %282 = vector.extract_strided_slice %264 {offsets = [0, 256], sizes = [8, 32], strides = [1, 1]} : vector<8x384xf32> to vector<8x32xf32>
    %283 = vector.extract_strided_slice %265 {offsets = [0, 256], sizes = [8, 32], strides = [1, 1]} : vector<8x384xf32> to vector<8x32xf32>
    %284 = arith.addf %283, %27 : vector<8x32xf32>
    %285 = arith.mulf %273, %284 : vector<8x32xf32>
    %286 = arith.addf %282, %285 : vector<8x32xf32>
    %287 = math.tanh %286 : vector<8x32xf32>
    %cst_53 = arith.constant 1.000000e+00 : f32
    %288 = vector.broadcast %cst_53 : f32 to vector<8x32xf32>
    %289 = arith.subf %288, %281 : vector<8x32xf32>
    %290 = arith.mulf %289, %287 : vector<8x32xf32>
    %291 = arith.mulf %281, %263 : vector<8x32xf32>
    %292 = arith.addf %290, %291 : vector<8x32xf32>
    %293 = vector.extract_strided_slice %30 {offsets = [72, 0], sizes = [8, 384], strides = [1, 1]} : vector<104x384xf32> to vector<8x384xf32>
    %cst_54 = arith.constant dense<0.000000e+00> : vector<8x384xf32>
    %294 = tpu.matmul %292, %23, %cst_54 {dimension_numbers = #tpu.dot_dimension_numbers<[1], [0], [0], [1], [0, 0, 1, 1], [], []>} : vector<8x32xf32>, vector<32x384xf32>, vector<8x384xf32> -> vector<8x384xf32>
    %295 = vector.extract_strided_slice %293 {offsets = [0, 0], sizes = [8, 32], strides = [1, 1]} : vector<8x384xf32> to vector<8x32xf32>
    %296 = vector.extract_strided_slice %294 {offsets = [0, 0], sizes = [8, 32], strides = [1, 1]} : vector<8x384xf32> to vector<8x32xf32>
    %297 = arith.addf %295, %296 : vector<8x32xf32>
    %298 = arith.negf %297 : vector<8x32xf32>
    %299 = math.exp %298 : vector<8x32xf32>
    %cst_55 = arith.constant 1.000000e+00 : f32
    %300 = vector.broadcast %cst_55 : f32 to vector<8x32xf32>
    %301 = arith.addf %300, %299 : vector<8x32xf32>
    %302 = arith.divf %300, %301 : vector<8x32xf32>
    %303 = vector.extract_strided_slice %293 {offsets = [0, 128], sizes = [8, 32], strides = [1, 1]} : vector<8x384xf32> to vector<8x32xf32>
    %304 = vector.extract_strided_slice %294 {offsets = [0, 128], sizes = [8, 32], strides = [1, 1]} : vector<8x384xf32> to vector<8x32xf32>
    %305 = arith.addf %303, %304 : vector<8x32xf32>
    %306 = arith.negf %305 : vector<8x32xf32>
    %307 = math.exp %306 : vector<8x32xf32>
    %cst_56 = arith.constant 1.000000e+00 : f32
    %308 = vector.broadcast %cst_56 : f32 to vector<8x32xf32>
    %309 = arith.addf %308, %307 : vector<8x32xf32>
    %310 = arith.divf %308, %309 : vector<8x32xf32>
    %311 = vector.extract_strided_slice %293 {offsets = [0, 256], sizes = [8, 32], strides = [1, 1]} : vector<8x384xf32> to vector<8x32xf32>
    %312 = vector.extract_strided_slice %294 {offsets = [0, 256], sizes = [8, 32], strides = [1, 1]} : vector<8x384xf32> to vector<8x32xf32>
    %313 = arith.addf %312, %27 : vector<8x32xf32>
    %314 = arith.mulf %302, %313 : vector<8x32xf32>
    %315 = arith.addf %311, %314 : vector<8x32xf32>
    %316 = math.tanh %315 : vector<8x32xf32>
    %cst_57 = arith.constant 1.000000e+00 : f32
    %317 = vector.broadcast %cst_57 : f32 to vector<8x32xf32>
    %318 = arith.subf %317, %310 : vector<8x32xf32>
    %319 = arith.mulf %318, %316 : vector<8x32xf32>
    %320 = arith.mulf %310, %292 : vector<8x32xf32>
    %321 = arith.addf %319, %320 : vector<8x32xf32>
    %322 = vector.extract_strided_slice %30 {offsets = [80, 0], sizes = [8, 384], strides = [1, 1]} : vector<104x384xf32> to vector<8x384xf32>
    %cst_58 = arith.constant dense<0.000000e+00> : vector<8x384xf32>
    %323 = tpu.matmul %321, %23, %cst_58 {dimension_numbers = #tpu.dot_dimension_numbers<[1], [0], [0], [1], [0, 0, 1, 1], [], []>} : vector<8x32xf32>, vector<32x384xf32>, vector<8x384xf32> -> vector<8x384xf32>
    %324 = vector.extract_strided_slice %322 {offsets = [0, 0], sizes = [8, 32], strides = [1, 1]} : vector<8x384xf32> to vector<8x32xf32>
    %325 = vector.extract_strided_slice %323 {offsets = [0, 0], sizes = [8, 32], strides = [1, 1]} : vector<8x384xf32> to vector<8x32xf32>
    %326 = arith.addf %324, %325 : vector<8x32xf32>
    %327 = arith.negf %326 : vector<8x32xf32>
    %328 = math.exp %327 : vector<8x32xf32>
    %cst_59 = arith.constant 1.000000e+00 : f32
    %329 = vector.broadcast %cst_59 : f32 to vector<8x32xf32>
    %330 = arith.addf %329, %328 : vector<8x32xf32>
    %331 = arith.divf %329, %330 : vector<8x32xf32>
    %332 = vector.extract_strided_slice %322 {offsets = [0, 128], sizes = [8, 32], strides = [1, 1]} : vector<8x384xf32> to vector<8x32xf32>
    %333 = vector.extract_strided_slice %323 {offsets = [0, 128], sizes = [8, 32], strides = [1, 1]} : vector<8x384xf32> to vector<8x32xf32>
    %334 = arith.addf %332, %333 : vector<8x32xf32>
    %335 = arith.negf %334 : vector<8x32xf32>
    %336 = math.exp %335 : vector<8x32xf32>
    %cst_60 = arith.constant 1.000000e+00 : f32
    %337 = vector.broadcast %cst_60 : f32 to vector<8x32xf32>
    %338 = arith.addf %337, %336 : vector<8x32xf32>
    %339 = arith.divf %337, %338 : vector<8x32xf32>
    %340 = vector.extract_strided_slice %322 {offsets = [0, 256], sizes = [8, 32], strides = [1, 1]} : vector<8x384xf32> to vector<8x32xf32>
    %341 = vector.extract_strided_slice %323 {offsets = [0, 256], sizes = [8, 32], strides = [1, 1]} : vector<8x384xf32> to vector<8x32xf32>
    %342 = arith.addf %341, %27 : vector<8x32xf32>
    %343 = arith.mulf %331, %342 : vector<8x32xf32>
    %344 = arith.addf %340, %343 : vector<8x32xf32>
    %345 = math.tanh %344 : vector<8x32xf32>
    %cst_61 = arith.constant 1.000000e+00 : f32
    %346 = vector.broadcast %cst_61 : f32 to vector<8x32xf32>
    %347 = arith.subf %346, %339 : vector<8x32xf32>
    %348 = arith.mulf %347, %345 : vector<8x32xf32>
    %349 = arith.mulf %339, %321 : vector<8x32xf32>
    %350 = arith.addf %348, %349 : vector<8x32xf32>
    %351 = vector.extract_strided_slice %30 {offsets = [88, 0], sizes = [8, 384], strides = [1, 1]} : vector<104x384xf32> to vector<8x384xf32>
    %cst_62 = arith.constant dense<0.000000e+00> : vector<8x384xf32>
    %352 = tpu.matmul %350, %23, %cst_62 {dimension_numbers = #tpu.dot_dimension_numbers<[1], [0], [0], [1], [0, 0, 1, 1], [], []>} : vector<8x32xf32>, vector<32x384xf32>, vector<8x384xf32> -> vector<8x384xf32>
    %353 = vector.extract_strided_slice %351 {offsets = [0, 0], sizes = [8, 32], strides = [1, 1]} : vector<8x384xf32> to vector<8x32xf32>
    %354 = vector.extract_strided_slice %352 {offsets = [0, 0], sizes = [8, 32], strides = [1, 1]} : vector<8x384xf32> to vector<8x32xf32>
    %355 = arith.addf %353, %354 : vector<8x32xf32>
    %356 = arith.negf %355 : vector<8x32xf32>
    %357 = math.exp %356 : vector<8x32xf32>
    %cst_63 = arith.constant 1.000000e+00 : f32
    %358 = vector.broadcast %cst_63 : f32 to vector<8x32xf32>
    %359 = arith.addf %358, %357 : vector<8x32xf32>
    %360 = arith.divf %358, %359 : vector<8x32xf32>
    %361 = vector.extract_strided_slice %351 {offsets = [0, 128], sizes = [8, 32], strides = [1, 1]} : vector<8x384xf32> to vector<8x32xf32>
    %362 = vector.extract_strided_slice %352 {offsets = [0, 128], sizes = [8, 32], strides = [1, 1]} : vector<8x384xf32> to vector<8x32xf32>
    %363 = arith.addf %361, %362 : vector<8x32xf32>
    %364 = arith.negf %363 : vector<8x32xf32>
    %365 = math.exp %364 : vector<8x32xf32>
    %cst_64 = arith.constant 1.000000e+00 : f32
    %366 = vector.broadcast %cst_64 : f32 to vector<8x32xf32>
    %367 = arith.addf %366, %365 : vector<8x32xf32>
    %368 = arith.divf %366, %367 : vector<8x32xf32>
    %369 = vector.extract_strided_slice %351 {offsets = [0, 256], sizes = [8, 32], strides = [1, 1]} : vector<8x384xf32> to vector<8x32xf32>
    %370 = vector.extract_strided_slice %352 {offsets = [0, 256], sizes = [8, 32], strides = [1, 1]} : vector<8x384xf32> to vector<8x32xf32>
    %371 = arith.addf %370, %27 : vector<8x32xf32>
    %372 = arith.mulf %360, %371 : vector<8x32xf32>
    %373 = arith.addf %369, %372 : vector<8x32xf32>
    %374 = math.tanh %373 : vector<8x32xf32>
    %cst_65 = arith.constant 1.000000e+00 : f32
    %375 = vector.broadcast %cst_65 : f32 to vector<8x32xf32>
    %376 = arith.subf %375, %368 : vector<8x32xf32>
    %377 = arith.mulf %376, %374 : vector<8x32xf32>
    %378 = arith.mulf %368, %350 : vector<8x32xf32>
    %379 = arith.addf %377, %378 : vector<8x32xf32>
    %380 = vector.extract_strided_slice %30 {offsets = [96, 0], sizes = [8, 384], strides = [1, 1]} : vector<104x384xf32> to vector<8x384xf32>
    %cst_66 = arith.constant dense<0.000000e+00> : vector<8x384xf32>
    %381 = tpu.matmul %379, %23, %cst_66 {dimension_numbers = #tpu.dot_dimension_numbers<[1], [0], [0], [1], [0, 0, 1, 1], [], []>} : vector<8x32xf32>, vector<32x384xf32>, vector<8x384xf32> -> vector<8x384xf32>
    %382 = vector.extract_strided_slice %380 {offsets = [0, 0], sizes = [8, 32], strides = [1, 1]} : vector<8x384xf32> to vector<8x32xf32>
    %383 = vector.extract_strided_slice %381 {offsets = [0, 0], sizes = [8, 32], strides = [1, 1]} : vector<8x384xf32> to vector<8x32xf32>
    %384 = arith.addf %382, %383 : vector<8x32xf32>
    %385 = arith.negf %384 : vector<8x32xf32>
    %386 = math.exp %385 : vector<8x32xf32>
    %cst_67 = arith.constant 1.000000e+00 : f32
    %387 = vector.broadcast %cst_67 : f32 to vector<8x32xf32>
    %388 = arith.addf %387, %386 : vector<8x32xf32>
    %389 = arith.divf %387, %388 : vector<8x32xf32>
    %390 = vector.extract_strided_slice %380 {offsets = [0, 128], sizes = [8, 32], strides = [1, 1]} : vector<8x384xf32> to vector<8x32xf32>
    %391 = vector.extract_strided_slice %381 {offsets = [0, 128], sizes = [8, 32], strides = [1, 1]} : vector<8x384xf32> to vector<8x32xf32>
    %392 = arith.addf %390, %391 : vector<8x32xf32>
    %393 = arith.negf %392 : vector<8x32xf32>
    %394 = math.exp %393 : vector<8x32xf32>
    %cst_68 = arith.constant 1.000000e+00 : f32
    %395 = vector.broadcast %cst_68 : f32 to vector<8x32xf32>
    %396 = arith.addf %395, %394 : vector<8x32xf32>
    %397 = arith.divf %395, %396 : vector<8x32xf32>
    %398 = vector.extract_strided_slice %380 {offsets = [0, 256], sizes = [8, 32], strides = [1, 1]} : vector<8x384xf32> to vector<8x32xf32>
    %399 = vector.extract_strided_slice %381 {offsets = [0, 256], sizes = [8, 32], strides = [1, 1]} : vector<8x384xf32> to vector<8x32xf32>
    %400 = arith.addf %399, %27 : vector<8x32xf32>
    %401 = arith.mulf %389, %400 : vector<8x32xf32>
    %402 = arith.addf %398, %401 : vector<8x32xf32>
    %403 = math.tanh %402 : vector<8x32xf32>
    %cst_69 = arith.constant 1.000000e+00 : f32
    %404 = vector.broadcast %cst_69 : f32 to vector<8x32xf32>
    %405 = arith.subf %404, %397 : vector<8x32xf32>
    %406 = arith.mulf %405, %403 : vector<8x32xf32>
    %407 = arith.mulf %397, %379 : vector<8x32xf32>
    %408 = arith.addf %406, %407 : vector<8x32xf32>
    %c48 = arith.constant 48 : index
    %c0_70 = arith.constant 0 : index
    %409 = vector.load %arg1[%c48, %c0_70] : memref<80x384xf32, #tpu.memory_space<vmem>>, vector<16x384xf32>
    %c64 = arith.constant 64 : index
    %c0_71 = arith.constant 0 : index
    %410 = vector.load %arg1[%c64, %c0_71] : memref<80x384xf32, #tpu.memory_space<vmem>>, vector<8x384xf32>
    %c74 = arith.constant 74 : index
    %c0_72 = arith.constant 0 : index
    %411 = vector.load %arg1[%c74, %c0_72] : memref<80x384xf32, #tpu.memory_space<vmem>>, vector<1x384xf32>
    %c75 = arith.constant 75 : index
    %c256_73 = arith.constant 256 : index
    %412 = vector.load %arg1[%c75, %c256_73] : memref<80x384xf32, #tpu.memory_space<vmem>>, vector<1x8xf32>
    %413 = vector.shape_cast %412 : vector<1x8xf32> to vector<1x8xf32>
    %414 = vector.broadcast %413 : vector<1x8xf32> to vector<32x8xf32>
    %cst_74 = arith.constant dense<0.000000e+00> : vector<104x384xf32>
    %415 = tpu.matmul %21, %409, %cst_74 {dimension_numbers = #tpu.dot_dimension_numbers<[1], [0], [0], [1], [0, 0, 1, 1], [], []>} : vector<104x16xf32>, vector<16x384xf32>, vector<104x384xf32> -> vector<104x384xf32>
    %416 = vector.broadcast %411 : vector<1x384xf32> to vector<104x384xf32>
    %417 = arith.addf %415, %416 : vector<104x384xf32>
    %cst_75 = arith.constant 0.000000e+00 : f32
    %418 = vector.broadcast %cst_75 : f32 to vector<32x8xf32>
    %419 = vector.extract_strided_slice %417 {offsets = [8, 0], sizes = [32, 384], strides = [1, 1]} : vector<104x384xf32> to vector<32x384xf32>
    %cst_76 = arith.constant dense<0.000000e+00> : vector<32x384xf32>
    %420 = tpu.matmul %418, %410, %cst_76 {dimension_numbers = #tpu.dot_dimension_numbers<[1], [0], [0], [1], [0, 0, 1, 1], [], []>} : vector<32x8xf32>, vector<8x384xf32>, vector<32x384xf32> -> vector<32x384xf32>
    %421 = vector.extract_strided_slice %419 {offsets = [0, 0], sizes = [32, 8], strides = [1, 1]} : vector<32x384xf32> to vector<32x8xf32>
    %422 = vector.extract_strided_slice %420 {offsets = [0, 0], sizes = [32, 8], strides = [1, 1]} : vector<32x384xf32> to vector<32x8xf32>
    %423 = arith.addf %421, %422 : vector<32x8xf32>
    %424 = arith.negf %423 : vector<32x8xf32>
    %425 = math.exp %424 : vector<32x8xf32>
    %cst_77 = arith.constant 1.000000e+00 : f32
    %426 = vector.broadcast %cst_77 : f32 to vector<32x8xf32>
    %427 = arith.addf %426, %425 : vector<32x8xf32>
    %428 = arith.divf %426, %427 : vector<32x8xf32>
    %429 = vector.extract_strided_slice %419 {offsets = [0, 128], sizes = [32, 8], strides = [1, 1]} : vector<32x384xf32> to vector<32x8xf32>
    %430 = vector.extract_strided_slice %420 {offsets = [0, 128], sizes = [32, 8], strides = [1, 1]} : vector<32x384xf32> to vector<32x8xf32>
    %431 = arith.addf %429, %430 : vector<32x8xf32>
    %432 = arith.negf %431 : vector<32x8xf32>
    %433 = math.exp %432 : vector<32x8xf32>
    %cst_78 = arith.constant 1.000000e+00 : f32
    %434 = vector.broadcast %cst_78 : f32 to vector<32x8xf32>
    %435 = arith.addf %434, %433 : vector<32x8xf32>
    %436 = arith.divf %434, %435 : vector<32x8xf32>
    %437 = vector.extract_strided_slice %419 {offsets = [0, 256], sizes = [32, 8], strides = [1, 1]} : vector<32x384xf32> to vector<32x8xf32>
    %438 = vector.extract_strided_slice %420 {offsets = [0, 256], sizes = [32, 8], strides = [1, 1]} : vector<32x384xf32> to vector<32x8xf32>
    %439 = arith.addf %438, %414 : vector<32x8xf32>
    %440 = arith.mulf %428, %439 : vector<32x8xf32>
    %441 = arith.addf %437, %440 : vector<32x8xf32>
    %442 = math.tanh %441 : vector<32x8xf32>
    %cst_79 = arith.constant 1.000000e+00 : f32
    %443 = vector.broadcast %cst_79 : f32 to vector<32x8xf32>
    %444 = arith.subf %443, %436 : vector<32x8xf32>
    %445 = arith.mulf %444, %442 : vector<32x8xf32>
    %446 = arith.mulf %436, %418 : vector<32x8xf32>
    %447 = arith.addf %445, %446 : vector<32x8xf32>
    %448 = vector.extract_strided_slice %417 {offsets = [40, 0], sizes = [32, 384], strides = [1, 1]} : vector<104x384xf32> to vector<32x384xf32>
    %cst_80 = arith.constant dense<0.000000e+00> : vector<32x384xf32>
    %449 = tpu.matmul %447, %410, %cst_80 {dimension_numbers = #tpu.dot_dimension_numbers<[1], [0], [0], [1], [0, 0, 1, 1], [], []>} : vector<32x8xf32>, vector<8x384xf32>, vector<32x384xf32> -> vector<32x384xf32>
    %450 = vector.extract_strided_slice %448 {offsets = [0, 0], sizes = [32, 8], strides = [1, 1]} : vector<32x384xf32> to vector<32x8xf32>
    %451 = vector.extract_strided_slice %449 {offsets = [0, 0], sizes = [32, 8], strides = [1, 1]} : vector<32x384xf32> to vector<32x8xf32>
    %452 = arith.addf %450, %451 : vector<32x8xf32>
    %453 = arith.negf %452 : vector<32x8xf32>
    %454 = math.exp %453 : vector<32x8xf32>
    %cst_81 = arith.constant 1.000000e+00 : f32
    %455 = vector.broadcast %cst_81 : f32 to vector<32x8xf32>
    %456 = arith.addf %455, %454 : vector<32x8xf32>
    %457 = arith.divf %455, %456 : vector<32x8xf32>
    %458 = vector.extract_strided_slice %448 {offsets = [0, 128], sizes = [32, 8], strides = [1, 1]} : vector<32x384xf32> to vector<32x8xf32>
    %459 = vector.extract_strided_slice %449 {offsets = [0, 128], sizes = [32, 8], strides = [1, 1]} : vector<32x384xf32> to vector<32x8xf32>
    %460 = arith.addf %458, %459 : vector<32x8xf32>
    %461 = arith.negf %460 : vector<32x8xf32>
    %462 = math.exp %461 : vector<32x8xf32>
    %cst_82 = arith.constant 1.000000e+00 : f32
    %463 = vector.broadcast %cst_82 : f32 to vector<32x8xf32>
    %464 = arith.addf %463, %462 : vector<32x8xf32>
    %465 = arith.divf %463, %464 : vector<32x8xf32>
    %466 = vector.extract_strided_slice %448 {offsets = [0, 256], sizes = [32, 8], strides = [1, 1]} : vector<32x384xf32> to vector<32x8xf32>
    %467 = vector.extract_strided_slice %449 {offsets = [0, 256], sizes = [32, 8], strides = [1, 1]} : vector<32x384xf32> to vector<32x8xf32>
    %468 = arith.addf %467, %414 : vector<32x8xf32>
    %469 = arith.mulf %457, %468 : vector<32x8xf32>
    %470 = arith.addf %466, %469 : vector<32x8xf32>
    %471 = math.tanh %470 : vector<32x8xf32>
    %cst_83 = arith.constant 1.000000e+00 : f32
    %472 = vector.broadcast %cst_83 : f32 to vector<32x8xf32>
    %473 = arith.subf %472, %465 : vector<32x8xf32>
    %474 = arith.mulf %473, %471 : vector<32x8xf32>
    %475 = arith.mulf %465, %447 : vector<32x8xf32>
    %476 = arith.addf %474, %475 : vector<32x8xf32>
    %477 = vector.extract_strided_slice %417 {offsets = [72, 0], sizes = [32, 384], strides = [1, 1]} : vector<104x384xf32> to vector<32x384xf32>
    %cst_84 = arith.constant dense<0.000000e+00> : vector<32x384xf32>
    %478 = tpu.matmul %476, %410, %cst_84 {dimension_numbers = #tpu.dot_dimension_numbers<[1], [0], [0], [1], [0, 0, 1, 1], [], []>} : vector<32x8xf32>, vector<8x384xf32>, vector<32x384xf32> -> vector<32x384xf32>
    %479 = vector.extract_strided_slice %477 {offsets = [0, 0], sizes = [32, 8], strides = [1, 1]} : vector<32x384xf32> to vector<32x8xf32>
    %480 = vector.extract_strided_slice %478 {offsets = [0, 0], sizes = [32, 8], strides = [1, 1]} : vector<32x384xf32> to vector<32x8xf32>
    %481 = arith.addf %479, %480 : vector<32x8xf32>
    %482 = arith.negf %481 : vector<32x8xf32>
    %483 = math.exp %482 : vector<32x8xf32>
    %cst_85 = arith.constant 1.000000e+00 : f32
    %484 = vector.broadcast %cst_85 : f32 to vector<32x8xf32>
    %485 = arith.addf %484, %483 : vector<32x8xf32>
    %486 = arith.divf %484, %485 : vector<32x8xf32>
    %487 = vector.extract_strided_slice %477 {offsets = [0, 128], sizes = [32, 8], strides = [1, 1]} : vector<32x384xf32> to vector<32x8xf32>
    %488 = vector.extract_strided_slice %478 {offsets = [0, 128], sizes = [32, 8], strides = [1, 1]} : vector<32x384xf32> to vector<32x8xf32>
    %489 = arith.addf %487, %488 : vector<32x8xf32>
    %490 = arith.negf %489 : vector<32x8xf32>
    %491 = math.exp %490 : vector<32x8xf32>
    %cst_86 = arith.constant 1.000000e+00 : f32
    %492 = vector.broadcast %cst_86 : f32 to vector<32x8xf32>
    %493 = arith.addf %492, %491 : vector<32x8xf32>
    %494 = arith.divf %492, %493 : vector<32x8xf32>
    %495 = vector.extract_strided_slice %477 {offsets = [0, 256], sizes = [32, 8], strides = [1, 1]} : vector<32x384xf32> to vector<32x8xf32>
    %496 = vector.extract_strided_slice %478 {offsets = [0, 256], sizes = [32, 8], strides = [1, 1]} : vector<32x384xf32> to vector<32x8xf32>
    %497 = arith.addf %496, %414 : vector<32x8xf32>
    %498 = arith.mulf %486, %497 : vector<32x8xf32>
    %499 = arith.addf %495, %498 : vector<32x8xf32>
    %500 = math.tanh %499 : vector<32x8xf32>
    %cst_87 = arith.constant 1.000000e+00 : f32
    %501 = vector.broadcast %cst_87 : f32 to vector<32x8xf32>
    %502 = arith.subf %501, %494 : vector<32x8xf32>
    %503 = arith.mulf %502, %500 : vector<32x8xf32>
    %504 = arith.mulf %494, %476 : vector<32x8xf32>
    %505 = arith.addf %503, %504 : vector<32x8xf32>
    %c40 = arith.constant 40 : index
    %c0_88 = arith.constant 0 : index
    %506 = vector.load %arg2[%c40, %c0_88] : memref<112x16xf32, #tpu.memory_space<vmem>>, vector<32x6xf32>
    %c104 = arith.constant 104 : index
    %c0_89 = arith.constant 0 : index
    %507 = vector.load %arg2[%c104, %c0_89] : memref<112x16xf32, #tpu.memory_space<vmem>>, vector<1x6xf32>
    %cst_90 = arith.constant dense<0.000000e+00> : vector<8x6xf32>
    %508 = tpu.matmul %408, %506, %cst_90 {dimension_numbers = #tpu.dot_dimension_numbers<[1], [0], [0], [1], [0, 0, 1, 1], [], []>} : vector<8x32xf32>, vector<32x6xf32>, vector<8x6xf32> -> vector<8x6xf32>
    %509 = vector.broadcast %507 : vector<1x6xf32> to vector<8x6xf32>
    %510 = arith.addf %508, %509 : vector<8x6xf32>
    %c72_91 = arith.constant 72 : index
    %c0_92 = arith.constant 0 : index
    %511 = vector.load %arg2[%c72_91, %c0_92] : memref<112x16xf32, #tpu.memory_space<vmem>>, vector<8x6xf32>
    %512 = vector.extract_strided_slice %505 {offsets = [0, 0], sizes = [8, 8], strides = [1, 1]} : vector<32x8xf32> to vector<8x8xf32>
    %cst_93 = arith.constant dense<0.000000e+00> : vector<8x6xf32>
    %513 = tpu.matmul %512, %511, %cst_93 {dimension_numbers = #tpu.dot_dimension_numbers<[1], [0], [0], [1], [0, 0, 1, 1], [], []>} : vector<8x8xf32>, vector<8x6xf32>, vector<8x6xf32> -> vector<8x6xf32>
    %514 = arith.addf %510, %513 : vector<8x6xf32>
    %c80 = arith.constant 80 : index
    %c0_94 = arith.constant 0 : index
    %515 = vector.load %arg2[%c80, %c0_94] : memref<112x16xf32, #tpu.memory_space<vmem>>, vector<8x6xf32>
    %516 = vector.extract_strided_slice %505 {offsets = [8, 0], sizes = [8, 8], strides = [1, 1]} : vector<32x8xf32> to vector<8x8xf32>
    %cst_95 = arith.constant dense<0.000000e+00> : vector<8x6xf32>
    %517 = tpu.matmul %516, %515, %cst_95 {dimension_numbers = #tpu.dot_dimension_numbers<[1], [0], [0], [1], [0, 0, 1, 1], [], []>} : vector<8x8xf32>, vector<8x6xf32>, vector<8x6xf32> -> vector<8x6xf32>
    %518 = arith.addf %514, %517 : vector<8x6xf32>
    %c88 = arith.constant 88 : index
    %c0_96 = arith.constant 0 : index
    %519 = vector.load %arg2[%c88, %c0_96] : memref<112x16xf32, #tpu.memory_space<vmem>>, vector<8x6xf32>
    %520 = vector.extract_strided_slice %505 {offsets = [16, 0], sizes = [8, 8], strides = [1, 1]} : vector<32x8xf32> to vector<8x8xf32>
    %cst_97 = arith.constant dense<0.000000e+00> : vector<8x6xf32>
    %521 = tpu.matmul %520, %519, %cst_97 {dimension_numbers = #tpu.dot_dimension_numbers<[1], [0], [0], [1], [0, 0, 1, 1], [], []>} : vector<8x8xf32>, vector<8x6xf32>, vector<8x6xf32> -> vector<8x6xf32>
    %522 = arith.addf %518, %521 : vector<8x6xf32>
    %c96 = arith.constant 96 : index
    %c0_98 = arith.constant 0 : index
    %523 = vector.load %arg2[%c96, %c0_98] : memref<112x16xf32, #tpu.memory_space<vmem>>, vector<8x6xf32>
    %524 = vector.extract_strided_slice %505 {offsets = [24, 0], sizes = [8, 8], strides = [1, 1]} : vector<32x8xf32> to vector<8x8xf32>
    %cst_99 = arith.constant dense<0.000000e+00> : vector<8x6xf32>
    %525 = tpu.matmul %524, %523, %cst_99 {dimension_numbers = #tpu.dot_dimension_numbers<[1], [0], [0], [1], [0, 0, 1, 1], [], []>} : vector<8x8xf32>, vector<8x6xf32>, vector<8x6xf32> -> vector<8x6xf32>
    %526 = arith.addf %522, %525 : vector<8x6xf32>
    %527 = arith.negf %526 : vector<8x6xf32>
    %528 = math.exp %527 : vector<8x6xf32>
    %cst_100 = arith.constant 1.000000e+00 : f32
    %529 = vector.broadcast %cst_100 : f32 to vector<8x6xf32>
    %530 = arith.addf %529, %528 : vector<8x6xf32>
    %531 = arith.divf %529, %530 : vector<8x6xf32>
    %c0_101 = arith.constant 0 : index
    %c0_102 = arith.constant 0 : index
    %532 = vector.load %arg3[%c0_101, %c0_102] : memref<8x6xf32, #tpu.memory_space<vmem>>, vector<8x6xf32>
    tpu.vector_store %arg3[%c0_101, %c0_102], %531 {strides = array<i32>} : memref<8x6xf32, #tpu.memory_space<vmem>>, vector<8x6xf32>,
    return
  }
}

</mosaic_0001>

<bundles_post_ra>
// kernel: lstnet_forward.1
= control target key start
LH: loop header
LB: loop body
LE: loop exit
PB: predicated region body
PF: predicated region fallthrough
CT: control target
= control target key end

     0   :  { %vm33_vm0 = vcmask 64512   ;;  %v5274_v34 = vmov 0.0   ;;  %vm402_vm1 = vcmask 130048   ;;  %vm610_vm10 = vcmask 261120   ;;  %s5270_s2 = inlined_call_operand.vmem [shape: f32[112,16], index: 2, kind: input, shape index: {}]   ;;  %s5271_s0 = inlined_call_operand.vmem [shape: f32[128,8], index: 0, kind: input, shape index: {}]   ;;  %s5272_s1 = inlined_call_operand.vmem [shape: f32[80,384], index: 1, kind: input, shape index: {}]   ;;  %s5273_s3 = inlined_call_operand.vmem [shape: f32[8,6], index: 3, kind: output, shape index: {}]  }
   0x1   :  { %v215_v0 = vld [vmem:[%s5270_s2 + $0x10] sm:$0xff]  ;;  %v32_v2 = vld [vmem:[%s5270_s2] sm:$0xff]  ;;  %v288_v3 = vld [vmem:[%s5270_s2 + $0x18] sm:$0xff] }
   0x2   :  { %v16_v1 = vld [vmem:[%s5271_s0 + $0x10] sm:$0xff]  ;;  %234 = vmatpush.msra.mxu2 %v215_v0  ;;  %88 = vmatpush.msra.mxu0 %v32_v2  ;;  %v14_v4 = vld [vmem:[%s5271_s0] sm:$0xff]  ;;  %v17_v5 = vld [vmem:[%s5271_s0 + $0x18] sm:$0xff] }
   0x3   :  { %3281 = vmatmul.msk.f32.vlgmr.msra.gmra.mxu2 %vm33_vm0, %v16_v1  ;;  %307 = vmatpush.msra.mxu3 %v288_v3  ;;  %v142_v6 = vld [vmem:[%s5270_s2 + $0x8] sm:$0xff]  ;;  %v3825_v8 = vld [vmem:[%s5272_s1 + $0x78] sm:$0xff]  ;;  %v378_v10 = vld [vmem:[%s5272_s1 + $0x20] sm:$0xff] }
   0x4   :  { %v15_v7 = vld [vmem:[%s5271_s0 + $0x8] sm:$0xff]  ;;  %3255 = vmatmul.msk.f32.vlgmr.msra.gmra.mxu0 %vm33_vm0, %v14_v4  ;;  %3294 = vmatmul.msk.f32.vlgmr.msra.gmra.mxu3 %vm33_vm0, %v17_v5  ;;  %v377_v9 = vld [vmem:[%s5272_s1 + $0x18] sm:$0xff]  ;;  %v3838_v11 = vld [vmem:[%s5272_s1 + $0x60] sm:$0xff] }
   0x5   :  { %161 = vmatpush.msra.mxu1 %v142_v6  ;;  %626 = vmatpush.msrb.mxu3 %v3825_v8  ;;  %v379_v12 = vld [vmem:[%s5272_s1 + $0x28] sm:$0xff]  ;;  %v18_v13 = vld [vmem:[%s5271_s0 + $0x20] sm:$0xff]  ;;  %v20_v15 = vld [vmem:[%s5271_s0 + $0x30] sm:$0xff] }
   0x6   :  { %3268 = vmatmul.msk.f32.vlgmr.msra.gmra.mxu1 %vm33_vm0, %v15_v7  ;;  %456 = vmatpush.msrb.mxu0 %v377_v9  ;;  %v19_v14 = vld [vmem:[%s5271_s0 + $0x28] sm:$0xff]  ;;  %v21_v17 = vld [vmem:[%s5271_s0 + $0x38] sm:$0xff]  ;;  %v374_v18 = vld [vmem:[%s5272_s1] sm:$0xff] }
   0x7   :  { %512 = vmatpush.msrb.mxu1 %v378_v10  ;;  %627 = vmatpush.msrb.mxu3 %v3838_v11  ;;  %v3867_v16 = vld [vmem:[%s5272_s1 + $0x48] sm:$0xff]  ;;  %v22_v19 = vld [vmem:[%s5271_s0 + $0x40] sm:$0xff]  ;;  %v3900_v22 = vld [vmem:[%s5272_s1 + $0x30] sm:$0xff] }
   0x8   :  { %568 = vmatpush.msrb.mxu2 %v379_v12  ;;  %457 = vmatpush.msrb.mxu0 %v374_v18  ;;  %v375_v20 = vld [vmem:[%s5272_s1 + $0x8] sm:$0xff]  ;;  %v24_v23 = vld [vmem:[%s5271_s0 + $0x50] sm:$0xff]  ;;  %v25_v25 = vld [vmem:[%s5271_s0 + $0x58] sm:$0xff] }
   0x9   :  { %628 = vmatpush.msrb.mxu3 %v3867_v16  ;;  %513 = vmatpush.msrb.mxu1 %v375_v20  ;;  %v23_v21 = vld [vmem:[%s5271_s0 + $0x48] sm:$0xff]  ;;  %v376_v24 = vld [vmem:[%s5272_s1 + $0x10] sm:$0xff]  ;;  %v26_v26 = vld [vmem:[%s5271_s0 + $0x60] sm:$0xff] }
   0xa   :  { %569 = vmatpush.msrb.mxu2 %v376_v24  ;;  %v27_v27 = vld [vmem:[%s5271_s0 + $0x68] sm:$0xff]  ;;  %v28_v28 = vld [vmem:[%s5271_s0 + $0x70] sm:$0xff]  ;;  %v29_v29 = vld [vmem:[%s5271_s0 + $0x78] sm:$0xff] }
   0xb   :  { %3282 = vmatmul.msk.f32.gmra.mxu2 %vm33_vm0, %v17_v5  ;;  %629 = vmatpush.msrb.mxu3 %v3900_v22  ;;  %v3952_v30 = vld [vmem:[%s5272_s1 + $0x80] sm:$0xff]  ;;  %v3960_v31 = vld [vmem:[%s5272_s1 + $0x68] sm:$0xff]  ;;  %v3968_v32 = vld [vmem:[%s5272_s1 + $0x50] sm:$0xff] }
   0xc   :  { %3295 = vmatmul.msk.f32.gmra.mxu3 %vm33_vm0, %v18_v13  ;;  %3256 = vmatmul.msk.f32.gmra.mxu0 %vm33_vm0, %v15_v7  ;;  %v3976_v33 = vld [vmem:[%s5272_s1 + $0x38] sm:$0xff]  ;;  %v3985_v35 = vld [vmem:[%s5272_s1 + $0x88] sm:$0xff]  ;;  %v3990_v36 = vld [vmem:[%s5272_s1 + $0x70] sm:$0xff] }
   0xd   :  { %1181 = vmatpush.msra.mxu2 %v3825_v8  ;;  %646 = vmatpush.msra.mxu3 %v3952_v30  ;;  %v3997_v37 = vld [vmem:[%s5272_s1 + $0x58] sm:$0xff]  ;;  %v4004_v38 = vld [vmem:[%s5272_s1 + $0x40] sm:$0xff] }
   0xe   :  { %3269 = vmatmul.msk.f32.gmra.mxu1 %vm33_vm0, %v16_v1  ;;  %1090 = vmatpush.msra.mxu0 %v3952_v30  ;;  %v4019_v39 = vld [vmem:[%s5270_s2 + $0x20] ss:$0 sm:$0xff] }
   0xf   :  { %1182 = vmatpush.msra.mxu2 %v3838_v11  ;;  %647 = vmatpush.msra.mxu3 %v3960_v31 }
  0x10   :  { %1091 = vmatpush.msra.mxu0 %v3960_v31  ;;  %1110 = vmatpush.msra.mxu1 %v3985_v35 }
  0x11   :  { %1183 = vmatpush.msra.mxu2 %v3867_v16  ;;  %648 = vmatpush.msra.mxu3 %v3968_v32 }
  0x12   :  { %1092 = vmatpush.msra.mxu0 %v3968_v32  ;;  %1111 = vmatpush.msra.mxu1 %v3990_v36 }
  0x13   :  { %3283 = vmatmul.msk.f32.gmra.mxu2 %vm33_vm0, %v18_v13  ;;  %649 = vmatpush.msra.mxu3 %v3976_v33 }
  0x14   :  { %3296 = vmatmul.msk.f32.gmra.mxu3 %vm33_vm0, %v19_v14  ;;  %3257 = vmatmul.msk.f32.gmra.mxu0 %vm33_vm0, %v16_v1 }
  0x15   :  { %1184 = vmatpush.msra.mxu2 %v3900_v22  ;;  %1093 = vmatpush.msra.mxu0 %v3976_v33 }
  0x16   :  { %3270 = vmatmul.msk.f32.gmra.mxu1 %vm33_vm0, %v17_v5 }
  0x17   :  { %1112 = vmatpush.msra.mxu1 %v3997_v37 }
  0x19   :  { %1113 = vmatpush.msra.mxu1 %v4004_v38 }
  0x1b   :  { %3284 = vmatmul.msk.f32.gmra.mxu2 %vm33_vm0, %v19_v14 }
  0x1c   :  { %3297 = vmatmul.msk.f32.gmra.mxu3 %vm33_vm0, %v20_v15  ;;  %3258 = vmatmul.msk.f32.gmra.mxu0 %vm33_vm0, %v17_v5 }
  0x1e   :  { %3271 = vmatmul.msk.f32.gmra.mxu1 %vm33_vm0, %v18_v13 }
  0x23   :  { %3285 = vmatmul.msk.f32.gmra.mxu2 %vm33_vm0, %v20_v15 }
  0x24   :  { %3298 = vmatmul.msk.f32.gmra.mxu3 %vm33_vm0, %v21_v17  ;;  %3259 = vmatmul.msk.f32.gmra.mxu0 %vm33_vm0, %v18_v13 }
  0x26   :  { %3272 = vmatmul.msk.f32.gmra.mxu1 %vm33_vm0, %v19_v14 }
  0x2b   :  { %3286 = vmatmul.msk.f32.gmra.mxu2 %vm33_vm0, %v21_v17 }
  0x2c   :  { %3299 = vmatmul.msk.f32.gmra.mxu3 %vm33_vm0, %v22_v19  ;;  %3260 = vmatmul.msk.f32.gmra.mxu0 %vm33_vm0, %v19_v14 }
  0x2e   :  { %3273 = vmatmul.msk.f32.gmra.mxu1 %vm33_vm0, %v20_v15 }
  0x33   :  { %3287 = vmatmul.msk.f32.gmra.mxu2 %vm33_vm0, %v22_v19 }
  0x34   :  { %3300 = vmatmul.msk.f32.gmra.mxu3 %vm33_vm0, %v23_v21  ;;  %3261 = vmatmul.msk.f32.gmra.mxu0 %vm33_vm0, %v20_v15 }
  0x36   :  { %3274 = vmatmul.msk.f32.gmra.mxu1 %vm33_vm0, %v21_v17 }
  0x3b   :  { %3288 = vmatmul.msk.f32.gmra.mxu2 %vm33_vm0, %v23_v21 }
  0x3c   :  { %3301 = vmatmul.msk.f32.gmra.mxu3 %vm33_vm0, %v24_v23  ;;  %3262 = vmatmul.msk.f32.gmra.mxu0 %vm33_vm0, %v21_v17 }
  0x3e   :  { %3275 = vmatmul.msk.f32.gmra.mxu1 %vm33_vm0, %v22_v19 }
  0x43   :  { %3289 = vmatmul.msk.f32.gmra.mxu2 %vm33_vm0, %v24_v23 }
  0x44   :  { %3302 = vmatmul.msk.f32.gmra.mxu3 %vm33_vm0, %v25_v25  ;;  %3263 = vmatmul.msk.f32.gmra.mxu0 %vm33_vm0, %v22_v19 }
  0x46   :  { %3276 = vmatmul.msk.f32.gmra.mxu1 %vm33_vm0, %v23_v21 }
  0x4b   :  { %3290 = vmatmul.msk.f32.gmra.mxu2 %vm33_vm0, %v25_v25 }
  0x4c   :  { %3303 = vmatmul.msk.f32.gmra.mxu3 %vm33_vm0, %v26_v26  ;;  %3264 = vmatmul.msk.f32.gmra.mxu0 %vm33_vm0, %v23_v21 }
  0x4e   :  { %3277 = vmatmul.msk.f32.gmra.mxu1 %vm33_vm0, %v24_v23 }
  0x53   :  { %3291 = vmatmul.msk.f32.gmra.mxu2 %vm33_vm0, %v26_v26 }
  0x54   :  { %3304 = vmatmul.msk.f32.gmra.mxu3 %vm33_vm0, %v27_v27  ;;  %3265 = vmatmul.msk.f32.gmra.mxu0 %vm33_vm0, %v24_v23 }
  0x56   :  { %3278 = vmatmul.msk.f32.gmra.mxu1 %vm33_vm0, %v25_v25 }
  0x5b   :  { %3292 = vmatmul.msk.f32.gmra.mxu2 %vm33_vm0, %v27_v27 }
  0x5c   :  { %3305 = vmatmul.msk.f32.gmra.mxu3 %vm33_vm0, %v28_v28  ;;  %3266 = vmatmul.msk.f32.gmra.mxu0 %vm33_vm0, %v25_v25 }
  0x5e   :  { %3279 = vmatmul.msk.f32.gmra.mxu1 %vm33_vm0, %v26_v26 }
  0x63   :  { %3293 = vmatmul.msk.f32.gmra.mxu2 %vm33_vm0, %v28_v28 }
  0x64   :  { %3306 = vmatmul.msk.f32.gmra.mxu3 %vm33_vm0, %v29_v29  ;;  %3267 = vmatmul.msk.f32.gmra.mxu0 %vm33_vm0, %v26_v26 }
  0x66   :  { %3280 = vmatmul.msk.f32.gmra.mxu1 %vm33_vm0, %v27_v27 }
  0x6c   :  { %630 = vmatmul.f32.vlgmr.msrb.gmra.mxu3 %v5274_v34 }
  0x6d   :  { %666 = vmatpush.msrb.mxu3 %v3985_v35 }
  0x6f   :  { %667 = vmatpush.msrb.mxu3 %v3990_v36 }
  0x71   :  { %668 = vmatpush.msrb.mxu3 %v3997_v37 }
  0x73   :  { %669 = vmatpush.msrb.mxu3 %v4004_v38 }
  0x74   :  { %650 = vmatmul.f32.vlgmr.msra.gmra.mxu3 %v5274_v34 }
  0x75   :  { %737 = vmatpush.msra.mxu3 %v3825_v8 }
  0x77   :  { %738 = vmatpush.msra.mxu3 %v3838_v11 }
  0x79   :  { %739 = vmatpush.msra.mxu3 %v3867_v16 }
  0x7b   :  { %740 = vmatpush.msra.mxu3 %v3900_v22 }
  0x7c   :  { %670 = vmatmul.f32.vlgmr.msrb.gmra.mxu3 %v5274_v34 }
  0x7d   :  { %757 = vmatpush.msrb.mxu3 %v3952_v30 }
  0x7f   :  { %758 = vmatpush.msrb.mxu3 %v3960_v31 }
  0x81   :  { %v90_v40 = vpop.f32.mrf.mxu0  ;;  %759 = vmatpush.msrb.mxu3 %v3968_v32 }
  0x82   :  { %v129_v41 = vadd.f32 %v4019_v39, %v90_v40 }
  0x83   :  { %v163_v42 = vpop.f32.mrf.mxu1  ;;  %760 = vmatpush.msrb.mxu3 %v3976_v33 }
  0x84   :  { %v202_v43 = vadd.f32 %v163_v42, %v129_v41 }
  0x86   :  { %v236_v44 = vpop.f32.mrf.mxu2 }
  0x87   :  { %v275_v45 = vadd.f32 %v236_v44, %v202_v43  ;;  %v309_v46 = vpop.f32.mrf.mxu3 }
  0x89   :  { %v348_v47 = vadd.f32 %v309_v46, %v275_v45  ;;  %v93_v48 = vpop.f32.mrf.mxu0 }
  0x8a   :  { %v130_v49 = vadd.f32 %v4019_v39, %v93_v48 }
  0x8b   :  { %v4027_v50 = vmax.f32 %v348_v47, 0.0  ;;  %v166_v51 = vpop.f32.mrf.mxu1 }
  0x8c   :  { %v203_v52 = vadd.f32 %v166_v51, %v130_v49 }
  0x8d   :  { %3308 = vmatmul.msk.f32.vlgmr.msrb.gmra.mxu0 %vm402_vm1, %v4027_v50  ;;  %3321 = vmatmul.msk.f32.vlgmr.msrb.gmra.mxu1 %vm402_vm1, %v4027_v50 }
  0x8e   :  { %3334 = vmatmul.msk.f32.vlgmr.msrb.gmra.mxu2 %vm402_vm1, %v4027_v50  ;;  %v239_v53 = vpop.f32.mrf.mxu2  ;;  %1221 = vmatpush.msrb.mxu0 %v3985_v35 }
  0x8f   :  { %v312_v54 = vpop.f32.mrf.mxu3  ;;  %v276_v55 = vadd.f32 %v239_v53, %v203_v52  ;;  %1292 = vmatpush.msrb.mxu1 %v3825_v8  ;;  %1312 = vmatpush.msrb.mxu2 %v3952_v30 }
  0x90   :  { %1222 = vmatpush.msrb.mxu0 %v3990_v36 }
  0x91   :  { %v349_v56 = vadd.f32 %v312_v54, %v276_v55  ;;  %v96_v57 = vpop.f32.mrf.mxu0  ;;  %1293 = vmatpush.msrb.mxu1 %v3838_v11  ;;  %1313 = vmatpush.msrb.mxu2 %v3960_v31 }
  0x92   :  { %v131_v58 = vadd.f32 %v4019_v39, %v96_v57  ;;  %1223 = vmatpush.msrb.mxu0 %v3997_v37 }
  0x93   :  { %v4043_v59 = vmax.f32 %v349_v56, 0.0  ;;  %v169_v60 = vpop.f32.mrf.mxu1  ;;  %1294 = vmatpush.msrb.mxu1 %v3867_v16  ;;  %1314 = vmatpush.msrb.mxu2 %v3968_v32 }
  0x94   :  { %v204_v61 = vadd.f32 %v169_v60, %v131_v58  ;;  %1224 = vmatpush.msrb.mxu0 %v4004_v38 }
  0x95   :  { %3309 = vmatmul.msk.f32.gmra.mxu0 %vm402_vm1, %v4043_v59  ;;  %3322 = vmatmul.msk.f32.gmra.mxu1 %vm402_vm1, %v4043_v59 }
  0x96   :  { %3335 = vmatmul.msk.f32.gmra.mxu2 %vm402_vm1, %v4043_v59  ;;  %v242_v62 = vpop.f32.mrf.mxu2  ;;  %1295 = vmatpush.msrb.mxu1 %v3900_v22 }
  0x97   :  { %v315_v63 = vpop.f32.mrf.mxu3  ;;  %v277_v0 = vadd.f32 %v242_v62, %v204_v61  ;;  %1315 = vmatpush.msrb.mxu2 %v3976_v33 }
  0x99   :  { %v350_v1 = vadd.f32 %v315_v63, %v277_v0  ;;  %v99_v2 = vpop.f32.mrf.mxu0 }
  0x9a   :  { %v132_v3 = vadd.f32 %v4019_v39, %v99_v2 }
  0x9b   :  { %v4057_v4 = vmax.f32 %v350_v1, 0.0  ;;  %v172_v5 = vpop.f32.mrf.mxu1 }
  0x9c   :  { %v205_v6 = vadd.f32 %v172_v5, %v132_v3 }
  0x9d   :  { %3310 = vmatmul.msk.f32.gmra.mxu0 %vm402_vm1, %v4057_v4  ;;  %3323 = vmatmul.msk.f32.gmra.mxu1 %vm402_vm1, %v4057_v4 }
  0x9e   :  { %3336 = vmatmul.msk.f32.gmra.mxu2 %vm402_vm1, %v4057_v4  ;;  %v245_v7 = vpop.f32.mrf.mxu2 }
  0x9f   :  { %v318_v9 = vpop.f32.mrf.mxu3  ;;  %v278_v10 = vadd.f32 %v245_v7, %v205_v6 }
  0xa1   :  { %v351_v12 = vadd.f32 %v318_v9, %v278_v10  ;;  %v102_v13 = vpop.f32.mrf.mxu0 }
  0xa2   :  { %v133_v14 = vadd.f32 %v4019_v39, %v102_v13 }
  0xa3   :  { %v4066_v15 = vmax.f32 %v351_v12, 0.0  ;;  %v175_v17 = vpop.f32.mrf.mxu1 }
  0xa4   :  { %v206_v18 = vadd.f32 %v175_v17, %v133_v14 }
  0xa5   :  { %3311 = vmatmul.msk.f32.gmra.mxu0 %vm402_vm1, %v4066_v15  ;;  %3324 = vmatmul.msk.f32.gmra.mxu1 %vm402_vm1, %v4066_v15 }
  0xa6   :  { %3337 = vmatmul.msk.f32.gmra.mxu2 %vm402_vm1, %v4066_v15  ;;  %v248_v19 = vpop.f32.mrf.mxu2 }
  0xa7   :  { %v321_v20 = vpop.f32.mrf.mxu3  ;;  %v279_v21 = vadd.f32 %v248_v19, %v206_v18 }
  0xa9   :  { %v352_v23 = vadd.f32 %v321_v20, %v279_v21  ;;  %v105_v24 = vpop.f32.mrf.mxu0 }
  0xaa   :  { %v134_v25 = vadd.f32 %v4019_v39, %v105_v24 }
  0xab   :  { %v4075_v26 = vmax.f32 %v352_v23, 0.0  ;;  %v178_v27 = vpop.f32.mrf.mxu1 }
  0xac   :  { %v207_v28 = vadd.f32 %v178_v27, %v134_v25 }
  0xad   :  { %3312 = vmatmul.msk.f32.gmra.mxu0 %vm402_vm1, %v4075_v26  ;;  %3325 = vmatmul.msk.f32.gmra.mxu1 %vm402_vm1, %v4075_v26 }
  0xae   :  { %3338 = vmatmul.msk.f32.gmra.mxu2 %vm402_vm1, %v4075_v26  ;;  %v251_v29 = vpop.f32.mrf.mxu2 }
  0xaf   :  { %v324_v40 = vpop.f32.mrf.mxu3  ;;  %v280_v41 = vadd.f32 %v251_v29, %v207_v28 }
  0xb1   :  { %v353_v42 = vadd.f32 %v324_v40, %v280_v41  ;;  %v108_v43 = vpop.f32.mrf.mxu0 }
  0xb2   :  { %v135_v44 = vadd.f32 %v4019_v39, %v108_v43 }
  0xb3   :  { %v4084_v45 = vmax.f32 %v353_v42, 0.0  ;;  %v181_v46 = vpop.f32.mrf.mxu1 }
  0xb4   :  { %v208_v47 = vadd.f32 %v181_v46, %v135_v44 }
  0xb5   :  { %3313 = vmatmul.msk.f32.gmra.mxu0 %vm402_vm1, %v4084_v45  ;;  %3326 = vmatmul.msk.f32.gmra.mxu1 %vm402_vm1, %v4084_v45 }
  0xb6   :  { %3339 = vmatmul.msk.f32.gmra.mxu2 %vm402_vm1, %v4084_v45  ;;  %v254_v48 = vpop.f32.mrf.mxu2 }
  0xb7   :  { %v327_v49 = vpop.f32.mrf.mxu3  ;;  %v281_v51 = vadd.f32 %v254_v48, %v208_v47 }
  0xb9   :  { %v354_v52 = vadd.f32 %v327_v49, %v281_v51  ;;  %v111_v53 = vpop.f32.mrf.mxu0 }
  0xba   :  { %v136_v54 = vadd.f32 %v4019_v39, %v111_v53 }
  0xbb   :  { %v4093_v55 = vmax.f32 %v354_v52, 0.0  ;;  %v184_v56 = vpop.f32.mrf.mxu1 }
  0xbc   :  { %v209_v57 = vadd.f32 %v184_v56, %v136_v54 }
  0xbd   :  { %3314 = vmatmul.msk.f32.gmra.mxu0 %vm402_vm1, %v4093_v55  ;;  %3327 = vmatmul.msk.f32.gmra.mxu1 %vm402_vm1, %v4093_v55 }
  0xbe   :  { %3340 = vmatmul.msk.f32.gmra.mxu2 %vm402_vm1, %v4093_v55  ;;  %v257_v58 = vpop.f32.mrf.mxu2 }
  0xbf   :  { %v330_v60 = vpop.f32.mrf.mxu3  ;;  %v282_v61 = vadd.f32 %v257_v58, %v209_v57 }
  0xc1   :  { %v355_v62 = vadd.f32 %v330_v60, %v282_v61  ;;  %v114_v63 = vpop.f32.mrf.mxu0 }
  0xc2   :  { %v137_v0 = vadd.f32 %v4019_v39, %v114_v63 }
  0xc3   :  { %v4102_v1 = vmax.f32 %v355_v62, 0.0  ;;  %v187_v2 = vpop.f32.mrf.mxu1 }
  0xc4   :  { %v210_v3 = vadd.f32 %v187_v2, %v137_v0 }
  0xc5   :  { %3315 = vmatmul.msk.f32.gmra.mxu0 %vm402_vm1, %v4102_v1  ;;  %3328 = vmatmul.msk.f32.gmra.mxu1 %vm402_vm1, %v4102_v1 }
  0xc6   :  { %3341 = vmatmul.msk.f32.gmra.mxu2 %vm402_vm1, %v4102_v1  ;;  %v260_v5 = vpop.f32.mrf.mxu2 }
  0xc7   :  { %v333_v6 = vpop.f32.mrf.mxu3  ;;  %v283_v7 = vadd.f32 %v260_v5, %v210_v3  ;;  %v3307_v3 = vld [vmem:[%s5272_s1 + $0xd8] ss:$8 sm:$0x7] }
  0xc8   :  { %v4157_v5 = vperm.slane %v3307_v3, 0 }
  0xc9   :  { %v356_v9 = vadd.f32 %v333_v6, %v283_v7  ;;  %v117_v10 = vpop.f32.mrf.mxu0  ;;  %v4159_v6 = vperm.slane %v3307_v3, 1 }
  0xca   :  { %v138_v12 = vadd.f32 %v4019_v39, %v117_v10 }
  0xcb   :  { %v4111_v13 = vmax.f32 %v356_v9, 0.0  ;;  %v190_v14 = vpop.f32.mrf.mxu1 }
  0xcc   :  { %v211_v17 = vadd.f32 %v190_v14, %v138_v12 }
  0xcd   :  { %3316 = vmatmul.msk.f32.gmra.mxu0 %vm402_vm1, %v4111_v13  ;;  %3329 = vmatmul.msk.f32.gmra.mxu1 %vm402_vm1, %v4111_v13 }
  0xce   :  { %3342 = vmatmul.msk.f32.gmra.mxu2 %vm402_vm1, %v4111_v13  ;;  %v263_v18 = vpop.f32.mrf.mxu2 }
  0xcf   :  { %v336_v19 = vpop.f32.mrf.mxu3  ;;  %v284_v20 = vadd.f32 %v263_v18, %v211_v17 }
  0xd1   :  { %v357_v21 = vadd.f32 %v336_v19, %v284_v20  ;;  %v120_v23 = vpop.f32.mrf.mxu0 }
  0xd2   :  { %v139_v24 = vadd.f32 %v4019_v39, %v120_v23 }
  0xd3   :  { %v4120_v25 = vmax.f32 %v357_v21, 0.0  ;;  %v193_v27 = vpop.f32.mrf.mxu1 }
  0xd4   :  { %v212_v28 = vadd.f32 %v193_v27, %v139_v24 }
  0xd5   :  { %3317 = vmatmul.msk.f32.gmra.mxu0 %vm402_vm1, %v4120_v25  ;;  %3330 = vmatmul.msk.f32.gmra.mxu1 %vm402_vm1, %v4120_v25 }
  0xd6   :  { %3343 = vmatmul.msk.f32.gmra.mxu2 %vm402_vm1, %v4120_v25  ;;  %v266_v29 = vpop.f32.mrf.mxu2 }
  0xd7   :  { %v339_v40 = vpop.f32.mrf.mxu3  ;;  %v285_v41 = vadd.f32 %v266_v29, %v212_v28 }
  0xd9   :  { %v358_v42 = vadd.f32 %v339_v40, %v285_v41  ;;  %v123_v43 = vpop.f32.mrf.mxu0 }
  0xda   :  { %v140_v44 = vadd.f32 %v4019_v39, %v123_v43 }
  0xdb   :  { %v4129_v46 = vmax.f32 %v358_v42, 0.0  ;;  %v196_v47 = vpop.f32.mrf.mxu1 }
  0xdc   :  { %v213_v48 = vadd.f32 %v196_v47, %v140_v44  ;;  %v4166_v44 = vld [vmem:[%s5272_s1 + $0xe9] ss:$0 sm:$0xff] }
  0xdd   :  { %5282 = vst [vmem:[#allocation2_spill] sm:$0xff] %v4129_v46  ;;  %3318 = vmatmul.msk.f32.gmra.mxu0 %vm402_vm1, %v4129_v46  ;;  %3331 = vmatmul.msk.f32.gmra.mxu1 %vm402_vm1, %v4129_v46 }
  0xde   :  { %3344 = vmatmul.msk.f32.gmra.mxu2 %vm402_vm1, %v4129_v46  ;;  %v269_v49 = vpop.f32.mrf.mxu2 }
  0xdf   :  { %v342_v51 = vpop.f32.mrf.mxu3  ;;  %v286_v52 = vadd.f32 %v269_v49, %v213_v48 }
  0xe1   :  { %v359_v53 = vadd.f32 %v342_v51, %v286_v52  ;;  %v126_v54 = vpop.f32.mrf.mxu0 }
  0xe2   :  { %v141_v56 = vadd.f32 %v4019_v39, %v126_v54 }
  0xe3   :  { %v4138_v57 = vmax.f32 %v359_v53, 0.0  ;;  %v199_v58 = vpop.f32.mrf.mxu1  ;;  %v4168_v53 = vperm.slane %v3307_v3, 2 }
  0xe4   :  { %v214_v60 = vadd.f32 %v199_v58, %v141_v56 }
  0xe5   :  { %5283 = vst [vmem:[#allocation3_spill] sm:$0xff] %v4138_v57  ;;  %3319 = vmatmul.msk.f32.gmra.mxu0 %vm402_vm1, %v4138_v57  ;;  %3332 = vmatmul.msk.f32.gmra.mxu1 %vm402_vm1, %v4138_v57 }
  0xe6   :  { %3345 = vmatmul.msk.f32.gmra.mxu2 %vm402_vm1, %v4138_v57  ;;  %v272_v61 = vpop.f32.mrf.mxu2 }
  0xe7   :  { %v287_v62 = vadd.f32 %v272_v61, %v214_v60  ;;  %v345_v63 = vpop.f32.mrf.mxu3 }
  0xe9   :  { %v360_v0 = vadd.f32 %v345_v63, %v287_v62 }
  0xeb   :  { %v4146_v2 = vmax.f32 %v360_v0, 0.0 }
  0xed   :  { %5284 = vst [vmem:[#allocation4_spill] sm:$0xff] %v4146_v2  ;;  %3320 = vmatmul.msk.f32.gmra.mxu0 %vm402_vm1, %v4146_v2  ;;  %3333 = vmatmul.msk.f32.gmra.mxu1 %vm402_vm1, %v4146_v2 }
  0xee   :  { %3346 = vmatmul.msk.f32.gmra.mxu2 %vm402_vm1, %v4146_v2 }
  0xef   :  { %v631_v39 = vpop.f32.mrf.mxu3 }
  0xf7   :  { %v651_v7 = vpop.f32.mrf.mxu3 }
  0xff   :  { %v671_v47 = vpop.f32.mrf.mxu3 }
 0x100   :  { %v714_v56 = vadd.f32 %v671_v47, %v4166_v44 }
 0x10a   :  { %v459_v9 = vpop.f32.mrf.mxu0  ;;  %v515_v10 = vpop.f32.mrf.mxu1 }
 0x10b   :  { %v460_v12 = vadd.f32 %v459_v9, %v4157_v5  ;;  %v516_v14 = vadd.f32 %v515_v10, %v4159_v6 }
 0x10d   :  { %v674_v17 = vadd.f32 %v631_v39, %v460_v12  ;;  %v694_v18 = vadd.f32 %v651_v7, %v516_v14 }
 0x10f   :  { %v3347_v19 = vmul.f32 -1.442695, %v674_v17  ;;  %v3348_v20 = vmul.f32 -1.442695, %v694_v18 }
 0x111   :  { %3506 = vpow2.f32 %v3347_v19  ;;  %v571_v58 = vpop.f32.mrf.mxu2 }
 0x112   :  { %3508 = vpow2.f32 %v3348_v20  ;;  %v572_v39 = vadd.f32 %v571_v58, %v4168_v53 }
 0x117   :  { %v3507_v21 = vpop.eup %3506 }
 0x118   :  { %v3509_v23 = vpop.eup %3508  ;;  %v678_v24 = vadd.f32 1.0, %v3507_v21 }
 0x119   :  { %v698_v27 = vadd.f32 1.0, %v3509_v23  ;;  %v462_v23 = vpop.f32.mrf.mxu0 }
 0x11a   :  { %3510 = vrcp.f32 %v678_v24  ;;  %v690_v48 = vand.u32 2147483648, %v678_v24  ;;  %v688_v51 = vand.u32 2147483647, %v678_v24  ;;  %vm684_vm3 = vweird.f32 %v678_v24 }
 0x11b   :  { %3512 = vrcp.f32 %v698_v27  ;;  %v710_v0 = vand.u32 2147483648, %v698_v27  ;;  %vm704_vm7 = vweird.f32 %v698_v27  ;;  %v708_v9 = vand.u32 2147483647, %v698_v27 }
 0x11c   :  { %v691_v60 = vor.u32 1.1754944e-38, %v690_v48  ;;  %vm689_vm5 = vcmp.eq.f32.partialorder %v688_v51, 8.507059e+37 }
 0x11d   :  { %v711_v12 = vor.u32 1.1754944e-38, %v710_v0  ;;  %vm709_vm9 = vcmp.eq.f32.partialorder %v708_v9, 8.507059e+37 }
 0x120   :  { %v3511_v28 = vpop.eup %3510 }
 0x121   :  { %v3513_v29 = vpop.eup %3512  ;;  %v680_v40 = vmul.f32 %v3511_v28, %v678_v24  ;;  %vm685_vm2 = vweird.f32 %v3511_v28  ;;  %v463_v24 = vadd.f32 %v462_v23, %v4157_v5 }
 0x122   :  { %v700_v41 = vmul.f32 %v3513_v29, %v698_v27  ;;  %vm686_vm4 = vmor %vm684_vm3, %vm685_vm2  ;;  %vm705_vm6 = vweird.f32 %v3513_v29 }
 0x123   :  { %v681_v42 = vsub.f32 1.0, %v680_v40  ;;  %vm706_vm8 = vmor %vm704_vm7, %vm705_vm6  ;;  %v518_v40 = vpop.f32.mrf.mxu1 }
 0x124   :  { %v701_v43 = vsub.f32 1.0, %v700_v41  ;;  %v519_v41 = vadd.f32 %v518_v40, %v4159_v6 }
 0x125   :  { %v682_v49 = vmul.f32 %v3511_v28, %v681_v42 }
 0x126   :  { %v702_v52 = vmul.f32 %v3513_v29, %v701_v43 }
 0x127   :  { %v683_v54 = vadd.f32 %v3511_v28, %v682_v49 }
 0x128   :  { %v703_v62 = vadd.f32 %v3513_v29, %v702_v52 }
 0x129   :  { %v687_v61 = vsel %vm686_vm4, %v3511_v28, %v683_v54 }
 0x12a   :  { %v692_v63 = vsel %vm689_vm5, %v691_v60, %v687_v61  ;;  %v707_v10 = vsel %vm706_vm8, %v3513_v29, %v703_v62 }
 0x12b   :  { %v715_v7 = vmul.f32 %v714_v56, %v692_v63  ;;  %v712_v14 = vsel %vm709_vm9, %v711_v12, %v707_v10 }
 0x12c   :  { %v718_v17 = vsub.f32 1.0, %v712_v14  ;;  %v720_v20 = vmul.f32 0.0, %v712_v14 }
 0x12d   :  { %v716_v3 = vadd.f32 %v715_v7, %v572_v39  ;;  %v574_v7 = vpop.f32.mrf.mxu2 }
 0x12f   :  { %3514 = vtanh.f32 %v716_v3 }
 0x135   :  { %v3515_v18 = vpop.eup %3514 }
 0x136   :  { %v719_v19 = vmul.f32 %v3515_v18, %v718_v17  ;;  %v575_v17 = vadd.f32 %v574_v7, %v4168_v53 }
 0x138   :  { %v4172_v21 = vadd.f32 %v720_v20, %v719_v19 }
 0x13a   :  { %3349 = vmatmul.msk.f32.vlgmr.msra.gmra.mxu3 %vm610_vm10, %v4172_v21 }
 0x13b   :  { %777 = vmatpush.msra.mxu3 %v3985_v35 }
 0x13d   :  { %778 = vmatpush.msra.mxu3 %v3990_v36 }
 0x13f   :  { %779 = vmatpush.msra.mxu3 %v3997_v37 }
 0x141   :  { %780 = vmatpush.msra.mxu3 %v4004_v38 }
 0x142   :  { %3350 = vmatmul.msk.f32.vlgmr.msrb.gmra.mxu3 %vm610_vm10, %v4172_v21 }
 0x143   :  { %848 = vmatpush.msrb.mxu3 %v3825_v8 }
 0x145   :  { %849 = vmatpush.msrb.mxu3 %v3838_v11 }
 0x147   :  { %850 = vmatpush.msrb.mxu3 %v3867_v16 }
 0x149   :  { %851 = vmatpush.msrb.mxu3 %v3900_v22 }
 0x14a   :  { %3351 = vmatmul.msk.f32.vlgmr.msra.gmra.mxu3 %vm610_vm10, %v4172_v21 }
 0x14b   :  { %868 = vmatpush.msra.mxu3 %v3952_v30 }
 0x14d   :  { %869 = vmatpush.msra.mxu3 %v3960_v31 }
 0x14f   :  { %870 = vmatpush.msra.mxu3 %v3968_v32 }
 0x151   :  { %871 = vmatpush.msra.mxu3 %v3976_v33 }
 0x1bd   :  { %v742_v27 = vpop.f32.mrf.mxu3 }
 0x1be   :  { %v785_v28 = vadd.f32 %v742_v27, %v463_v24 }
 0x1c0   :  { %v3352_v29 = vmul.f32 -1.442695, %v785_v28 }
 0x1c2   :  { %3516 = vpow2.f32 %v3352_v29 }
 0x1c5   :  { %v762_v42 = vpop.f32.mrf.mxu3 }
 0x1c6   :  { %v805_v43 = vadd.f32 %v762_v42, %v519_v41 }
 0x1c8   :  { %v3517_v47 = vpop.eup %3516  ;;  %v3353_v48 = vmul.f32 -1.442695, %v805_v43 }
 0x1c9   :  { %v789_v49 = vadd.f32 1.0, %v3517_v47 }
 0x1ca   :  { %3518 = vpow2.f32 %v3353_v48 }
 0x1cb   :  { %3520 = vrcp.f32 %v789_v49  ;;  %v801_v60 = vand.u32 2147483648, %v789_v49  ;;  %v799_v62 = vand.u32 2147483647, %v789_v49  ;;  %vm795_vm12 = vweird.f32 %v789_v49 }
 0x1cd   :  { %v782_v63 = vpop.f32.mrf.mxu3  ;;  %v802_v9 = vor.u32 1.1754944e-38, %v801_v60  ;;  %vm800_vm14 = vcmp.eq.f32.partialorder %v799_v62, 8.507059e+37 }
 0x1ce   :  { %v825_v12 = vadd.f32 %v782_v63, %v4166_v44 }
 0x1d0   :  { %v3519_v51 = vpop.eup %3518 }
 0x1d1   :  { %v3521_v52 = vpop.eup %3520  ;;  %v809_v54 = vadd.f32 1.0, %v3519_v51 }
 0x1d2   :  { %v791_v56 = vmul.f32 %v3521_v52, %v789_v49  ;;  %vm796_vm11 = vweird.f32 %v3521_v52 }
 0x1d3   :  { %3522 = vrcp.f32 %v809_v54  ;;  %vm797_vm13 = vmor %vm795_vm12, %vm796_vm11  ;;  %v821_v20 = vand.u32 2147483648, %v809_v54  ;;  %v819_v24 = vand.u32 2147483647, %v809_v54  ;;  %vm815_vm2 = vweird.f32 %v809_v54 }
 0x1d4   :  { %v792_v58 = vsub.f32 1.0, %v791_v56 }
 0x1d5   :  { %v822_v29 = vor.u32 1.1754944e-38, %v821_v20  ;;  %vm820_vm4 = vcmp.eq.f32.partialorder %v819_v24, 8.507059e+37  ;;  %v577_v24 = vpop.f32.mrf.mxu2 }
 0x1d6   :  { %v793_v61 = vmul.f32 %v3521_v52, %v792_v58  ;;  %v521_v58 = vpop.f32.mrf.mxu1 }
 0x1d7   :  { %v522_v60 = vadd.f32 %v521_v58, %v4159_v6 }
 0x1d8   :  { %v794_v0 = vadd.f32 %v3521_v52, %v793_v61 }
 0x1d9   :  { %v3523_v39 = vpop.eup %3522 }
 0x1da   :  { %v811_v3 = vmul.f32 %v3523_v39, %v809_v54  ;;  %v798_v10 = vsel %vm797_vm13, %v3521_v52, %v794_v0  ;;  %vm816_vm15 = vweird.f32 %v3523_v39 }
 0x1db   :  { %v803_v14 = vsel %vm800_vm14, %v802_v9, %v798_v10  ;;  %vm817_vm3 = vmor %vm815_vm2, %vm816_vm15 }
 0x1dc   :  { %v812_v18 = vsub.f32 1.0, %v811_v3  ;;  %v826_v19 = vmul.f32 %v825_v12, %v803_v14 }
 0x1de   :  { %v813_v23 = vmul.f32 %v3523_v39, %v812_v18  ;;  %v827_v27 = vadd.f32 %v826_v19, %v575_v17 }
 0x1e0   :  { %v814_v28 = vadd.f32 %v3523_v39, %v813_v23  ;;  %3524 = vtanh.f32 %v827_v27 }
 0x1e2   :  { %v818_v40 = vsel %vm817_vm3, %v3523_v39, %v814_v28 }
 0x1e3   :  { %v823_v41 = vsel %vm820_vm4, %v822_v29, %v818_v40 }
 0x1e4   :  { %v829_v42 = vsub.f32 1.0, %v823_v41  ;;  %v831_v48 = vmul.f32 %v823_v41, %v4172_v21  ;;  %v465_v21 = vpop.f32.mrf.mxu0 }
 0x1e5   :  { %v466_v51 = vadd.f32 %v465_v21, %v4157_v5 }
 0x1e6   :  { %v3525_v43 = vpop.eup %3524 }
 0x1e7   :  { %v830_v47 = vmul.f32 %v3525_v43, %v829_v42  ;;  %v578_v42 = vadd.f32 %v577_v24, %v4168_v53 }
 0x1e9   :  { %v4197_v49 = vadd.f32 %v831_v48, %v830_v47 }
 0x1eb   :  { %3354 = vmatmul.msk.f32.vlgmr.msrb.gmra.mxu3 %vm610_vm10, %v4197_v49 }
 0x1ec   :  { %888 = vmatpush.msrb.mxu3 %v3985_v35 }
 0x1ee   :  { %889 = vmatpush.msrb.mxu3 %v3990_v36 }
 0x1f0   :  { %890 = vmatpush.msrb.mxu3 %v3997_v37 }
 0x1f2   :  { %891 = vmatpush.msrb.mxu3 %v4004_v38 }
 0x1f3   :  { %3355 = vmatmul.msk.f32.vlgmr.msra.gmra.mxu3 %vm610_vm10, %v4197_v49 }
 0x1f4   :  { %959 = vmatpush.msra.mxu3 %v3825_v8 }
 0x1f6   :  { %960 = vmatpush.msra.mxu3 %v3838_v11 }
 0x1f8   :  { %961 = vmatpush.msra.mxu3 %v3867_v16 }
 0x1fa   :  { %962 = vmatpush.msra.mxu3 %v3900_v22 }
 0x1fb   :  { %3356 = vmatmul.msk.f32.vlgmr.msrb.gmra.mxu3 %vm610_vm10, %v4197_v49 }
 0x1fc   :  { %979 = vmatpush.msrb.mxu3 %v3952_v30 }
 0x1fe   :  { %980 = vmatpush.msrb.mxu3 %v3960_v31 }
 0x200   :  { %981 = vmatpush.msrb.mxu3 %v3968_v32 }
 0x202   :  { %982 = vmatpush.msrb.mxu3 %v3976_v33 }
 0x26e   :  { %v853_v52 = vpop.f32.mrf.mxu3 }
 0x26f   :  { %v896_v54 = vadd.f32 %v853_v52, %v466_v51 }
 0x271   :  { %v3357_v56 = vmul.f32 -1.442695, %v896_v54 }
 0x273   :  { %3526 = vpow2.f32 %v3357_v56 }
 0x276   :  { %v873_v61 = vpop.f32.mrf.mxu3 }
 0x277   :  { %v916_v62 = vadd.f32 %v873_v61, %v522_v60 }
 0x279   :  { %v3527_v63 = vpop.eup %3526  ;;  %v3358_v0 = vmul.f32 -1.442695, %v916_v62 }
 0x27a   :  { %v900_v39 = vadd.f32 1.0, %v3527_v63 }
 0x27b   :  { %3528 = vpow2.f32 %v3358_v0 }
 0x27c   :  { %3530 = vrcp.f32 %v900_v39  ;;  %v912_v14 = vand.u32 2147483648, %v900_v39  ;;  %v910_v18 = vand.u32 2147483647, %v900_v39  ;;  %vm906_vm6 = vweird.f32 %v900_v39 }
 0x27e   :  { %v893_v19 = vpop.f32.mrf.mxu3  ;;  %v913_v27 = vor.u32 1.1754944e-38, %v912_v14  ;;  %vm911_vm8 = vcmp.eq.f32.partialorder %v910_v18, 8.507059e+37 }
 0x27f   :  { %v936_v40 = vadd.f32 %v893_v19, %v4166_v44 }
 0x281   :  { %v3529_v7 = vpop.eup %3528 }
 0x282   :  { %v3531_v9 = vpop.eup %3530  ;;  %v920_v3 = vadd.f32 1.0, %v3529_v7 }
 0x283   :  { %v902_v10 = vmul.f32 %v3531_v9, %v900_v39  ;;  %vm907_vm5 = vweird.f32 %v3531_v9 }
 0x284   :  { %3532 = vrcp.f32 %v920_v3  ;;  %vm908_vm7 = vmor %vm906_vm6, %vm907_vm5  ;;  %v932_v48 = vand.u32 2147483648, %v920_v3  ;;  %v930_v51 = vand.u32 2147483647, %v920_v3  ;;  %vm926_vm11 = vweird.f32 %v920_v3 }
 0x285   :  { %v903_v12 = vsub.f32 1.0, %v902_v10 }
 0x286   :  { %v933_v56 = vor.u32 1.1754944e-38, %v932_v48  ;;  %vm931_vm13 = vcmp.eq.f32.partialorder %v930_v51, 8.507059e+37 }
 0x287   :  { %v904_v17 = vmul.f32 %v3531_v9, %v903_v12 }
 0x289   :  { %v905_v20 = vadd.f32 %v3531_v9, %v904_v17 }
 0x28a   :  { %v3533_v23 = vpop.eup %3532 }
 0x28b   :  { %v922_v28 = vmul.f32 %v3533_v23, %v920_v3  ;;  %v909_v29 = vsel %vm908_vm7, %v3531_v9, %v905_v20  ;;  %vm927_vm9 = vweird.f32 %v3533_v23 }
 0x28c   :  { %v914_v41 = vsel %vm911_vm8, %v913_v27, %v909_v29  ;;  %vm928_vm12 = vmor %vm926_vm11, %vm927_vm9 }
 0x28d   :  { %v923_v43 = vsub.f32 1.0, %v922_v28  ;;  %v937_v47 = vmul.f32 %v936_v40, %v914_v41 }
 0x28f   :  { %v924_v21 = vmul.f32 %v3533_v23, %v923_v43  ;;  %v938_v52 = vadd.f32 %v937_v47, %v578_v42  ;;  %v580_v43 = vpop.f32.mrf.mxu2 }
 0x291   :  { %v925_v54 = vadd.f32 %v3533_v23, %v924_v21  ;;  %3534 = vtanh.f32 %v938_v52 }
 0x293   :  { %v929_v58 = vsel %vm928_vm12, %v3533_v23, %v925_v54  ;;  %v581_v54 = vadd.f32 %v580_v43, %v4168_v53 }
 0x294   :  { %v934_v60 = vsel %vm931_vm13, %v933_v56, %v929_v58 }
 0x295   :  { %v940_v61 = vsub.f32 1.0, %v934_v60  ;;  %v942_v0 = vmul.f32 %v934_v60, %v4197_v49  ;;  %v468_v49 = vpop.f32.mrf.mxu0 }
 0x297   :  { %v3535_v62 = vpop.eup %3534 }
 0x298   :  { %v941_v63 = vmul.f32 %v3535_v62, %v940_v61 }
 0x29a   :  { %v4222_v39 = vadd.f32 %v942_v0, %v941_v63 }
 0x29c   :  { %3359 = vmatmul.msk.f32.vlgmr.msra.gmra.mxu3 %vm610_vm10, %v4222_v39 }
 0x29d   :  { %999 = vmatpush.msra.mxu3 %v3985_v35 }
 0x29f   :  { %1000 = vmatpush.msra.mxu3 %v3990_v36 }
 0x2a1   :  { %1001 = vmatpush.msra.mxu3 %v3997_v37 }
 0x2a3   :  { %1002 = vmatpush.msra.mxu3 %v4004_v38 }
 0x2a4   :  { %3360 = vmatmul.msk.f32.vlgmr.msrb.gmra.mxu3 %vm610_vm10, %v4222_v39 }
 0x2a5   :  { %1070 = vmatpush.msrb.mxu3 %v3825_v8  ;;  %v469_v8 = vadd.f32 %v468_v49, %v4157_v5 }
 0x2a7   :  { %1071 = vmatpush.msrb.mxu3 %v3838_v11 }
 0x2a9   :  { %1072 = vmatpush.msrb.mxu3 %v3867_v16  ;;  %v524_v16 = vpop.f32.mrf.mxu1 }
 0x2ab   :  { %1073 = vmatpush.msrb.mxu3 %v3900_v22  ;;  %v525_v22 = vadd.f32 %v524_v16, %v4159_v6 }
 0x2ac   :  { %3361 = vmatmul.msk.f32.vlgmr.msra.gmra.mxu3 %vm610_vm10, %v4222_v39 }
 0x2ad   :  { %1201 = vmatpush.msra.mxu3 %v3952_v30 }
 0x2af   :  { %1202 = vmatpush.msra.mxu3 %v3960_v31 }
 0x2b1   :  { %1203 = vmatpush.msra.mxu3 %v3968_v32 }
 0x2b3   :  { %1204 = vmatpush.msra.mxu3 %v3976_v33 }
 0x31f   :  { %v964_v7 = vpop.f32.mrf.mxu3 }
 0x320   :  { %v1007_v11 = vadd.f32 %v964_v7, %v469_v8 }
 0x322   :  { %v3362_v9 = vmul.f32 -1.442695, %v1007_v11 }
 0x324   :  { %3536 = vpow2.f32 %v3362_v9 }
 0x327   :  { %v984_v3 = vpop.f32.mrf.mxu3 }
 0x328   :  { %v1027_v10 = vadd.f32 %v984_v3, %v525_v22 }
 0x32a   :  { %v3537_v12 = vpop.eup %3536  ;;  %v3363_v14 = vmul.f32 -1.442695, %v1027_v10  ;;  %v4259_v10 = vld [vmem:[%s5272_s1 + $0x78] sm:$0xff] }
 0x32b   :  { %v1011_v17 = vadd.f32 1.0, %v3537_v12 }
 0x32c   :  { %3538 = vpow2.f32 %v3363_v14  ;;  %v527_v14 = vpop.f32.mrf.mxu1 }
 0x32d   :  { %3540 = vrcp.f32 %v1011_v17  ;;  %v1023_v27 = vand.u32 2147483648, %v1011_v17  ;;  %v1021_v29 = vand.u32 2147483647, %v1011_v17  ;;  %vm1017_vm15 = vweird.f32 %v1011_v17 }
 0x32f   :  { %v1004_v40 = vpop.f32.mrf.mxu3  ;;  %v1024_v47 = vor.u32 1.1754944e-38, %v1023_v27  ;;  %vm1022_vm3 = vcmp.eq.f32.partialorder %v1021_v29, 8.507059e+37 }
 0x330   :  { %v1047_v51 = vadd.f32 %v1004_v40, %v4166_v44 }
 0x332   :  { %v3539_v18 = vpop.eup %3538 }
 0x333   :  { %v3541_v19 = vpop.eup %3540  ;;  %v1031_v20 = vadd.f32 1.0, %v3539_v18 }
 0x334   :  { %v1013_v23 = vmul.f32 %v3541_v19, %v1011_v17  ;;  %vm1018_vm14 = vweird.f32 %v3541_v19 }
 0x335   :  { %3542 = vrcp.f32 %v1031_v20  ;;  %vm1019_vm2 = vmor %vm1017_vm15, %vm1018_vm14  ;;  %v1043_v60 = vand.u32 2147483648, %v1031_v20  ;;  %v1041_v62 = vand.u32 2147483647, %v1031_v20  ;;  %vm1037_vm5 = vweird.f32 %v1031_v20 }
 0x336   :  { %v1014_v24 = vsub.f32 1.0, %v1013_v23 }
 0x337   :  { %v1044_v49 = vor.u32 1.1754944e-38, %v1043_v60  ;;  %vm1042_vm7 = vcmp.eq.f32.partialorder %v1041_v62, 8.507059e+37 }
 0x338   :  { %v1015_v28 = vmul.f32 %v3541_v19, %v1014_v24 }
 0x33a   :  { %v1016_v41 = vadd.f32 %v3541_v19, %v1015_v28  ;;  %v528_v28 = vadd.f32 %v527_v14, %v4159_v6  ;;  %v583_v14 = vpop.f32.mrf.mxu2 }
 0x33b   :  { %v3543_v42 = vpop.eup %3542 }
 0x33c   :  { %v1033_v48 = vmul.f32 %v3543_v42, %v1031_v20  ;;  %v1020_v21 = vsel %vm1019_vm2, %v3541_v19, %v1016_v41  ;;  %vm1038_vm4 = vweird.f32 %v3543_v42 }
 0x33d   :  { %v1025_v52 = vsel %vm1022_vm3, %v1024_v47, %v1020_v21  ;;  %vm1039_vm6 = vmor %vm1037_vm5, %vm1038_vm4 }
 0x33e   :  { %v1034_v56 = vsub.f32 1.0, %v1033_v48  ;;  %v1048_v58 = vmul.f32 %v1047_v51, %v1025_v52 }
 0x340   :  { %v1035_v61 = vmul.f32 %v3543_v42, %v1034_v56  ;;  %v1049_v63 = vadd.f32 %v1048_v58, %v581_v54 }
 0x342   :  { %v1036_v0 = vadd.f32 %v3543_v42, %v1035_v61  ;;  %3544 = vtanh.f32 %v1049_v63 }
 0x344   :  { %v1040_v8 = vsel %vm1039_vm6, %v3543_v42, %v1036_v0 }
 0x345   :  { %v1045_v7 = vsel %vm1042_vm7, %v1044_v49, %v1040_v8 }
 0x346   :  { %v1051_v11 = vsub.f32 1.0, %v1045_v7  ;;  %v1053_v22 = vmul.f32 %v1045_v7, %v4222_v39  ;;  %v4267_v39 = vld [vmem:[%s5272_s1 + $0x60] sm:$0xff] }
 0x348   :  { %v3545_v9 = vpop.eup %3544 }
 0x349   :  { %v1052_v16 = vmul.f32 %v3545_v9, %v1051_v11 }
 0x34b   :  { %v4247_v3 = vadd.f32 %v1053_v22, %v1052_v16 }
 0x34d   :  { %3364 = vmatmul.msk.f32.vlgmr.msrb.gmra.mxu3 %vm610_vm10, %v4247_v3  ;;  %3365 = vmatmul.msk.f32.vlgmr.msra.gmra.mxu0 %vm610_vm10, %v4247_v3 }
 0x34e   :  { %3366 = vmatmul.msk.f32.vlgmr.msra.gmra.mxu1 %vm610_vm10, %v4247_v3  ;;  %1332 = vmatpush.msrb.mxu3 %v3985_v35  ;;  %v4275_v35 = vld [vmem:[%s5272_s1 + $0x48] sm:$0xff] }
 0x34f   :  { %1403 = vmatpush.msra.mxu0 %v4259_v10  ;;  %1423 = vmatpush.msra.mxu1 %v3952_v30  ;;  %v4283_v30 = vld [vmem:[%s5272_s1 + $0x30] sm:$0xff] }
 0x350   :  { %1333 = vmatpush.msrb.mxu3 %v3990_v36 }
 0x351   :  { %1404 = vmatpush.msra.mxu0 %v4267_v39  ;;  %1424 = vmatpush.msra.mxu1 %v3960_v31  ;;  %v471_v31 = vpop.f32.mrf.mxu0 }
 0x352   :  { %1334 = vmatpush.msrb.mxu3 %v3997_v37  ;;  %v472_v43 = vadd.f32 %v471_v31, %v4157_v5 }
 0x353   :  { %1405 = vmatpush.msra.mxu0 %v4275_v35  ;;  %1425 = vmatpush.msra.mxu1 %v3968_v32 }
 0x354   :  { %1335 = vmatpush.msrb.mxu3 %v4004_v38  ;;  %v4295_v38 = vpop.f32.mrf.mxu1 }
 0x355   :  { %1406 = vmatpush.msra.mxu0 %v4283_v30  ;;  %1426 = vmatpush.msra.mxu1 %v3976_v33 }
 0x359   :  { %v4287_v36 = vpop.f32.mrf.mxu0 }
 0x35c   :  { %v4299_v18 = vpop.f32.mrf.mxu1 }
 0x361   :  { %v4289_v37 = vpop.f32.mrf.mxu0 }
 0x364   :  { %v4303_v20 = vpop.f32.mrf.mxu1 }
 0x369   :  { %v4291_v12 = vpop.f32.mrf.mxu0 }
 0x36c   :  { %v4307_v23 = vpop.f32.mrf.mxu1 }
 0x371   :  { %v4293_v32 = vpop.f32.mrf.mxu0 }
 0x374   :  { %v4311_v27 = vpop.f32.mrf.mxu1 }
 0x379   :  { %v4297_v17 = vpop.f32.mrf.mxu0 }
 0x37c   :  { %v4314_v42 = vpop.f32.mrf.mxu1 }
 0x381   :  { %v4301_v19 = vpop.f32.mrf.mxu0 }
 0x384   :  { %v4317_v54 = vpop.f32.mrf.mxu1 }
 0x385   :  { %5287 = vst [vmem:[#allocation7_spill] sm:$0xff] %v4317_v54 }
 0x389   :  { %v4305_v33 = vpop.f32.mrf.mxu0 }
 0x38a   :  { %5285 = vst [vmem:[#allocation5_spill] sm:$0xff] %v4305_v33 }
 0x38c   :  { %v4319_v61 = vpop.f32.mrf.mxu1 }
 0x38d   :  { %5288 = vst [vmem:[#allocation8_spill] sm:$0xff] %v4319_v61 }
 0x391   :  { %v4309_v24 = vpop.f32.mrf.mxu0 }
 0x392   :  { %5286 = vst [vmem:[#allocation6_spill] sm:$0xff] %v4309_v24 }
 0x3ca   :  { %v1095_v29 = vpop.f32.mrf.mxu0 }
 0x3cb   :  { %v1138_v40 = vadd.f32 %v1095_v29, %v528_v28  ;;  %v1115_v22 = vpop.f32.mrf.mxu1 }
 0x3cc   :  { %v1158_v29 = vadd.f32 %v1115_v22, %v4166_v44  ;;  %v4368_v22 = vld [vmem:[%s5272_s1 + $0x50] sm:$0xff] }
 0x3cd   :  { %v3368_v41 = vmul.f32 -1.442695, %v1138_v40 }
 0x3cf   :  { %3546 = vpow2.f32 %v3368_v41 }
 0x3d0   :  { %v1075_v47 = vpop.f32.mrf.mxu3 }
 0x3d1   :  { %v1118_v48 = vadd.f32 %v1075_v47, %v472_v43  ;;  %v584_v47 = vadd.f32 %v583_v14, %v4168_v53  ;;  %v4381_v14 = vld [vmem:[%s5272_s1 + $0x38] sm:$0xff] }
 0x3d3   :  { %v3367_v21 = vmul.f32 -1.442695, %v1118_v48 }
 0x3d5   :  { %v3547_v51 = vpop.eup %3546  ;;  %3548 = vpow2.f32 %v3367_v21 }
 0x3d6   :  { %v1142_v52 = vadd.f32 1.0, %v3547_v51 }
 0x3d8   :  { %3550 = vrcp.f32 %v1142_v52  ;;  %v1154_v48 = vand.u32 2147483648, %v1142_v52  ;;  %vm1148_vm14 = vweird.f32 %v1142_v52  ;;  %v1152_v51 = vand.u32 2147483647, %v1142_v52 }
 0x3da   :  { %vm1153_vm2 = vcmp.eq.f32.partialorder %v1152_v51, 8.507059e+37  ;;  %v475_v51 = vadd.f32 %v4287_v36, %v4157_v5 }
 0x3db   :  { %v3549_v56 = vpop.eup %3548 }
 0x3dc   :  { %v1122_v58 = vadd.f32 1.0, %v3549_v56 }
 0x3de   :  { %3552 = vrcp.f32 %v1122_v58  ;;  %v3551_v60 = vpop.eup %3550  ;;  %v1134_v7 = vand.u32 2147483648, %v1122_v58  ;;  %v1132_v9 = vand.u32 2147483647, %v1122_v58  ;;  %vm1128_vm9 = vweird.f32 %v1122_v58 }
 0x3df   :  { %v1144_v62 = vmul.f32 %v3551_v60, %v1142_v52  ;;  %vm1149_vm13 = vweird.f32 %v3551_v60  ;;  %v4335_v52 = vld [vmem:[%s5272_s1 + $0x88] sm:$0xff] }
 0x3e0   :  { %v1135_v28 = vor.u32 1.1754944e-38, %v1134_v7  ;;  %vm1133_vm12 = vcmp.eq.f32.partialorder %v1132_v9, 8.507059e+37  ;;  %vm1150_vm15 = vmor %vm1148_vm14, %vm1149_vm13  ;;  %v4355_v9 = vld [vmem:[%s5272_s1 + $0x68] sm:$0xff] }
 0x3e1   :  { %v1145_v49 = vsub.f32 1.0, %v1144_v62 }
 0x3e3   :  { %v1146_v16 = vmul.f32 %v3551_v60, %v1145_v49 }
 0x3e4   :  { %v3553_v63 = vpop.eup %3552 }
 0x3e5   :  { %v1124_v0 = vmul.f32 %v3553_v63, %v1122_v58  ;;  %vm1129_vm8 = vweird.f32 %v3553_v63  ;;  %v1147_v41 = vadd.f32 %v3551_v60, %v1146_v16  ;;  %v1155_v58 = vor.u32 1.1754944e-38, %v1154_v48  ;;  %v4361_v16 = vld [vmem:[%s5272_s1 + $0x58] sm:$0xff] }
 0x3e6   :  { %vm1130_vm11 = vmor %vm1128_vm9, %vm1129_vm8 }
 0x3e7   :  { %v1125_v8 = vsub.f32 1.0, %v1124_v0  ;;  %v1151_v62 = vsel %vm1150_vm15, %v3551_v60, %v1147_v41  ;;  %v4348_v60 = vld [vmem:[%s5272_s1 + $0x70] sm:$0xff] }
 0x3e8   :  { %v1156_v0 = vsel %vm1153_vm2, %v1155_v58, %v1151_v62 }
 0x3e9   :  { %v1126_v11 = vmul.f32 %v3553_v63, %v1125_v8  ;;  %v1162_v49 = vsub.f32 1.0, %v1156_v0  ;;  %v1164_v7 = vmul.f32 %v1156_v0, %v4247_v3  ;;  %v4342_v3 = vld [vmem:[%s5272_s1 + $0x80] sm:$0xff] }
 0x3eb   :  { %v1127_v31 = vadd.f32 %v3553_v63, %v1126_v11 }
 0x3ed   :  { %v1131_v40 = vsel %vm1130_vm11, %v3553_v63, %v1127_v31  ;;  %v4374_v31 = vld [vmem:[%s5272_s1 + $0x40] sm:$0xff] }
 0x3ee   :  { %v1136_v43 = vsel %vm1133_vm12, %v1135_v28, %v1131_v40  ;;  %v586_v28 = vpop.f32.mrf.mxu2 }
 0x3ef   :  { %v1159_v21 = vmul.f32 %v1158_v29, %v1136_v43 }
 0x3f1   :  { %v1160_v56 = vadd.f32 %v1159_v21, %v584_v47 }
 0x3f3   :  { %3554 = vtanh.f32 %v1160_v56  ;;  %v531_v56 = vadd.f32 %v4295_v38, %v4159_v6 }
 0x3f6   :  { %v4384_v29 = vpop.f32.mrf.mxu2 }
 0x3f9   :  { %v3555_v8 = vpop.eup %3554 }
 0x3fa   :  { %v1163_v63 = vmul.f32 %v3555_v8, %v1162_v49 }
 0x3fc   :  { %v4324_v11 = vadd.f32 %v1164_v7, %v1163_v63 }
 0x3fe   :  { %3369 = vmatmul.msk.f32.vlgmr.msra.gmra.mxu2 %vm610_vm10, %v4324_v11  ;;  %3370 = vmatmul.msk.f32.vlgmr.msra.gmra.mxu3 %vm610_vm10, %v4324_v11  ;;  %v4386_v40 = vpop.f32.mrf.mxu2 }
 0x3ff   :  { %3371 = vmatmul.msk.f32.vlgmr.msrb.gmra.mxu0 %vm610_vm10, %v4324_v11  ;;  %1443 = vmatpush.msra.mxu2 %v4335_v52 }
 0x400   :  { %1514 = vmatpush.msra.mxu3 %v4259_v10  ;;  %1534 = vmatpush.msrb.mxu0 %v4342_v3 }
 0x401   :  { %1444 = vmatpush.msra.mxu2 %v4348_v60 }
 0x402   :  { %1515 = vmatpush.msra.mxu3 %v4267_v39  ;;  %1535 = vmatpush.msrb.mxu0 %v4355_v9 }
 0x403   :  { %1445 = vmatpush.msra.mxu2 %v4361_v16 }
 0x404   :  { %1516 = vmatpush.msra.mxu3 %v4275_v35  ;;  %1536 = vmatpush.msrb.mxu0 %v4368_v22 }
 0x405   :  { %1446 = vmatpush.msra.mxu2 %v4374_v31 }
 0x406   :  { %1517 = vmatpush.msra.mxu3 %v4283_v30  ;;  %1537 = vmatpush.msrb.mxu0 %v4381_v14  ;;  %v4388_v41 = vpop.f32.mrf.mxu2 }
 0x40e   :  { %v4390_v43 = vpop.f32.mrf.mxu2 }
 0x416   :  { %v4392_v47 = vpop.f32.mrf.mxu2 }
 0x41e   :  { %v4394_v48 = vpop.f32.mrf.mxu2 }
 0x41f   :  { %5289 = vst [vmem:[#allocation9_spill] sm:$0xff] %v4394_v48 }
 0x426   :  { %v4396_v21 = vpop.f32.mrf.mxu2 }
 0x427   :  { %5290 = vst [vmem:[#allocation10_spill] sm:$0xff] %v4396_v21 }
 0x481   :  { %v1186_v62 = vpop.f32.mrf.mxu2  ;;  %v1206_v58 = vpop.f32.mrf.mxu3 }
 0x482   :  { %v1229_v0 = vadd.f32 %v1186_v62, %v475_v51  ;;  %v1249_v49 = vadd.f32 %v1206_v58, %v531_v56  ;;  %v1226_v56 = vpop.f32.mrf.mxu0 }
 0x484   :  { %v3372_v8 = vmul.f32 -1.442695, %v1229_v0  ;;  %v3373_v63 = vmul.f32 -1.442695, %v1249_v49 }
 0x486   :  { %3556 = vpow2.f32 %v3372_v8 }
 0x487   :  { %3558 = vpow2.f32 %v3373_v63 }
 0x48c   :  { %v3557_v7 = vpop.eup %3556 }
 0x48d   :  { %v3559_v34 = vpop.eup %3558  ;;  %v1233_v24 = vadd.f32 1.0, %v3557_v7  ;;  %v587_v7 = vadd.f32 %v586_v28, %v4168_v53 }
 0x48e   :  { %v1253_v61 = vadd.f32 1.0, %v3559_v34  ;;  %v1269_v34 = vadd.f32 %v1226_v56, %v4166_v44 }
 0x48f   :  { %3560 = vrcp.f32 %v1233_v24  ;;  %v1245_v38 = vand.u32 2147483648, %v1233_v24  ;;  %v1243_v51 = vand.u32 2147483647, %v1233_v24  ;;  %vm1239_vm4 = vweird.f32 %v1233_v24 }
 0x490   :  { %3562 = vrcp.f32 %v1253_v61  ;;  %vm1259_vm8 = vweird.f32 %v1253_v61 }
 0x491   :  { %v1246_v0 = vor.u32 1.1754944e-38, %v1245_v38  ;;  %vm1244_vm6 = vcmp.eq.f32.partialorder %v1243_v51, 8.507059e+37 }
 0x495   :  { %v3561_v21 = vpop.eup %3560 }
 0x496   :  { %v3563_v48 = vpop.eup %3562  ;;  %v1235_v36 = vmul.f32 %v3561_v21, %v1233_v24  ;;  %vm1240_vm3 = vweird.f32 %v3561_v21 }
 0x497   :  { %v1255_v54 = vmul.f32 %v3563_v48, %v1253_v61  ;;  %vm1241_vm5 = vmor %vm1239_vm4, %vm1240_vm3  ;;  %vm1260_vm7 = vweird.f32 %v3563_v48 }
 0x498   :  { %v1236_v33 = vsub.f32 1.0, %v1235_v36  ;;  %vm1261_vm9 = vmor %vm1259_vm8, %vm1260_vm7 }
 0x499   :  { %v1256_v2 = vsub.f32 1.0, %v1255_v54  ;;  %v1265_v54 = vand.u32 2147483648, %v1253_v61 }
 0x49a   :  { %v1237_v57 = vmul.f32 %v3561_v21, %v1236_v33  ;;  %v1263_v33 = vand.u32 2147483647, %v1253_v61 }
 0x49b   :  { %v1257_v62 = vmul.f32 %v3563_v48, %v1256_v2 }
 0x49c   :  { %v1238_v58 = vadd.f32 %v3561_v21, %v1237_v57  ;;  %v1266_v57 = vor.u32 1.1754944e-38, %v1265_v54  ;;  %vm1264_vm11 = vcmp.eq.f32.partialorder %v1263_v33, 8.507059e+37 }
 0x49d   :  { %v1258_v63 = vadd.f32 %v3563_v48, %v1257_v62 }
 0x49e   :  { %v1242_v49 = vsel %vm1241_vm5, %v3561_v21, %v1238_v58 }
 0x49f   :  { %v1247_v8 = vsel %vm1244_vm6, %v1246_v0, %v1242_v49  ;;  %v1262_v2 = vsel %vm1261_vm9, %v3563_v48, %v1258_v63  ;;  %v534_v48 = vadd.f32 %v4299_v18, %v4159_v6 }
 0x4a0   :  { %v1270_v36 = vmul.f32 %v1269_v34, %v1247_v8  ;;  %v1267_v24 = vsel %vm1264_vm11, %v1266_v57, %v1262_v2 }
 0x4a1   :  { %v1273_v38 = vsub.f32 1.0, %v1267_v24  ;;  %v1275_v51 = vmul.f32 %v1267_v24, %v4324_v11 }
 0x4a2   :  { %v1271_v46 = vadd.f32 %v1270_v36, %v587_v7 }
 0x4a4   :  { %3564 = vtanh.f32 %v1271_v46  ;;  %v478_v46 = vadd.f32 %v4289_v37, %v4157_v5 }
 0x4aa   :  { %v3565_v56 = vpop.eup %3564 }
 0x4ab   :  { %v1274_v21 = vmul.f32 %v3565_v56, %v1273_v38 }
 0x4ad   :  { %v4405_v62 = vadd.f32 %v1275_v51, %v1274_v21 }
 0x4af   :  { %3374 = vmatmul.msk.f32.vlgmr.msrb.gmra.mxu1 %vm610_vm10, %v4405_v62  ;;  %3375 = vmatmul.msk.f32.vlgmr.msrb.gmra.mxu2 %vm610_vm10, %v4405_v62 }
 0x4b0   :  { %3376 = vmatmul.msk.f32.vlgmr.msrb.gmra.mxu3 %vm610_vm10, %v4405_v62  ;;  %1554 = vmatpush.msrb.mxu1 %v4335_v52 }
 0x4b1   :  { %1625 = vmatpush.msrb.mxu2 %v4259_v10  ;;  %1645 = vmatpush.msrb.mxu3 %v4342_v3 }
 0x4b2   :  { %1555 = vmatpush.msrb.mxu1 %v4348_v60 }
 0x4b3   :  { %1626 = vmatpush.msrb.mxu2 %v4267_v39  ;;  %1646 = vmatpush.msrb.mxu3 %v4355_v9 }
 0x4b4   :  { %1556 = vmatpush.msrb.mxu1 %v4361_v16 }
 0x4b5   :  { %1627 = vmatpush.msrb.mxu2 %v4275_v35  ;;  %1647 = vmatpush.msrb.mxu3 %v4368_v22 }
 0x4b6   :  { %1557 = vmatpush.msrb.mxu1 %v4374_v31 }
 0x4b7   :  { %1628 = vmatpush.msrb.mxu2 %v4283_v30  ;;  %1648 = vmatpush.msrb.mxu3 %v4381_v14 }
 0x52c   :  { %v1297_v61 = vpop.f32.mrf.mxu1 }
 0x52d   :  { %v1340_v11 = vadd.f32 %v1297_v61, %v478_v46 }
 0x52f   :  { %v3377_v28 = vmul.f32 -1.442695, %v1340_v11  ;;  %v590_v11 = vadd.f32 %v4384_v29, %v4168_v53 }
 0x531   :  { %3566 = vpow2.f32 %v3377_v28 }
 0x532   :  { %v1317_v58 = vpop.f32.mrf.mxu2 }
 0x533   :  { %v1360_v0 = vadd.f32 %v1317_v58, %v534_v48  ;;  %v1337_v18 = vpop.f32.mrf.mxu3 }
 0x534   :  { %v1380_v61 = vadd.f32 %v1337_v18, %v4166_v44 }
 0x535   :  { %v3378_v34 = vmul.f32 -1.442695, %v1360_v0 }
 0x537   :  { %v3567_v49 = vpop.eup %3566  ;;  %3568 = vpow2.f32 %v3378_v34 }
 0x538   :  { %v1344_v8 = vadd.f32 1.0, %v3567_v49 }
 0x53a   :  { %3570 = vrcp.f32 %v1344_v8  ;;  %v1356_v33 = vand.u32 2147483648, %v1344_v8  ;;  %v1354_v57 = vand.u32 2147483647, %v1344_v8  ;;  %vm1350_vm13 = vweird.f32 %v1344_v8 }
 0x53c   :  { %v1357_v21 = vor.u32 1.1754944e-38, %v1356_v33  ;;  %vm1355_vm15 = vcmp.eq.f32.partialorder %v1354_v57, 8.507059e+37 }
 0x53d   :  { %v3569_v63 = vpop.eup %3568 }
 0x53e   :  { %v1364_v7 = vadd.f32 1.0, %v3569_v63 }
 0x540   :  { %v3571_v36 = vpop.eup %3570  ;;  %3572 = vrcp.f32 %v1364_v7  ;;  %v1376_v58 = vand.u32 2147483648, %v1364_v7  ;;  %v1374_v34 = vand.u32 2147483647, %v1364_v7  ;;  %vm1370_vm3 = vweird.f32 %v1364_v7 }
 0x541   :  { %v1346_v54 = vmul.f32 %v3571_v36, %v1344_v8  ;;  %vm1351_vm12 = vweird.f32 %v3571_v36 }
 0x542   :  { %vm1352_vm14 = vmor %vm1350_vm13, %vm1351_vm12  ;;  %v1377_v8 = vor.u32 1.1754944e-38, %v1376_v58  ;;  %vm1375_vm5 = vcmp.eq.f32.partialorder %v1374_v34, 8.507059e+37 }
 0x543   :  { %v1347_v37 = vsub.f32 1.0, %v1346_v54 }
 0x545   :  { %v1348_v2 = vmul.f32 %v3571_v36, %v1347_v37 }
 0x546   :  { %v3573_v24 = vpop.eup %3572 }
 0x547   :  { %v1366_v38 = vmul.f32 %v3573_v24, %v1364_v7  ;;  %v1349_v56 = vadd.f32 %v3571_v36, %v1348_v2  ;;  %vm1371_vm2 = vweird.f32 %v3573_v24  ;;  %v537_v7 = vadd.f32 %v4303_v20, %v4159_v6 }
 0x548   :  { %vm1372_vm4 = vmor %vm1370_vm3, %vm1371_vm2 }
 0x549   :  { %v1367_v51 = vsub.f32 1.0, %v1366_v38  ;;  %v1353_v46 = vsel %vm1352_vm14, %v3571_v36, %v1349_v56 }
 0x54a   :  { %v1358_v28 = vsel %vm1355_vm15, %v1357_v21, %v1353_v46 }
 0x54b   :  { %v1368_v48 = vmul.f32 %v3573_v24, %v1367_v51  ;;  %v1381_v0 = vmul.f32 %v1380_v61, %v1358_v28 }
 0x54d   :  { %v1369_v49 = vadd.f32 %v3573_v24, %v1368_v48  ;;  %v1382_v63 = vadd.f32 %v1381_v0, %v590_v11 }
 0x54f   :  { %v1373_v54 = vsel %vm1372_vm4, %v3573_v24, %v1369_v49  ;;  %3574 = vtanh.f32 %v1382_v63 }
 0x550   :  { %v1378_v36 = vsel %vm1375_vm5, %v1377_v8, %v1373_v54 }
 0x551   :  { %v1384_v37 = vsub.f32 1.0, %v1378_v36  ;;  %v1386_v29 = vmul.f32 %v1378_v36, %v4405_v62  ;;  %v481_v62 = vadd.f32 %v4291_v12, %v4157_v5 }
 0x555   :  { %v3575_v44 = vpop.eup %3574 }
 0x556   :  { %v1385_v33 = vmul.f32 %v3575_v44, %v1384_v37 }
 0x558   :  { %v4433_v2 = vadd.f32 %v1386_v29, %v1385_v33  ;;  %v4460_v33 = vld [vmem:[%s5272_s1 + $0xe9] ss:$0 sm:$0xff] }
 0x55a   :  { %3379 = vmatmul.msk.f32.vlgmr.msra.gmra.mxu0 %vm610_vm10, %v4433_v2  ;;  %3380 = vmatmul.msk.f32.vlgmr.msra.gmra.mxu1 %vm610_vm10, %v4433_v2 }
 0x55b   :  { %3381 = vmatmul.msk.f32.vlgmr.msra.gmra.mxu2 %vm610_vm10, %v4433_v2  ;;  %1665 = vmatpush.msra.mxu0 %v4335_v52 }
 0x55c   :  { %1736 = vmatpush.msra.mxu1 %v4259_v10  ;;  %1756 = vmatpush.msra.mxu2 %v4342_v3 }
 0x55d   :  { %1666 = vmatpush.msra.mxu0 %v4348_v60 }
 0x55e   :  { %1737 = vmatpush.msra.mxu1 %v4267_v39  ;;  %1757 = vmatpush.msra.mxu2 %v4355_v9 }
 0x55f   :  { %1667 = vmatpush.msra.mxu0 %v4361_v16 }
 0x560   :  { %1738 = vmatpush.msra.mxu1 %v4275_v35  ;;  %1758 = vmatpush.msra.mxu2 %v4368_v22 }
 0x561   :  { %1668 = vmatpush.msra.mxu0 %v4374_v31 }
 0x562   :  { %1739 = vmatpush.msra.mxu1 %v4283_v30  ;;  %1759 = vmatpush.msra.mxu2 %v4381_v14 }
 0x5d7   :  { %v1408_v57 = vpop.f32.mrf.mxu0  ;;  %v1428_v24 = vpop.f32.mrf.mxu1 }
 0x5d8   :  { %v1451_v18 = vadd.f32 %v1408_v57, %v481_v62  ;;  %v1471_v38 = vadd.f32 %v1428_v24, %v537_v7  ;;  %v593_v57 = vadd.f32 %v4386_v40, %v4168_v53  ;;  %v540_v40 = vadd.f32 %v4307_v23, %v4159_v6 }
 0x5da   :  { %v3382_v56 = vmul.f32 -1.442695, %v1451_v18  ;;  %v3383_v21 = vmul.f32 -1.442695, %v1471_v38 }
 0x5dc   :  { %3576 = vpow2.f32 %v3382_v56 }
 0x5dd   :  { %3578 = vpow2.f32 %v3383_v21 }
 0x5de   :  { %v1448_v54 = vpop.f32.mrf.mxu2 }
 0x5df   :  { %v1491_v29 = vadd.f32 %v4460_v33, %v1448_v54 }
 0x5e2   :  { %v3577_v51 = vpop.eup %3576 }
 0x5e3   :  { %v3579_v46 = vpop.eup %3578  ;;  %v1455_v61 = vadd.f32 1.0, %v3577_v51 }
 0x5e4   :  { %v1475_v11 = vadd.f32 1.0, %v3579_v46 }
 0x5e5   :  { %3580 = vrcp.f32 %v1455_v61  ;;  %v1467_v34 = vand.u32 2147483648, %v1455_v61  ;;  %v1465_v63 = vand.u32 2147483647, %v1455_v61  ;;  %vm1461_vm7 = vweird.f32 %v1455_v61 }
 0x5e6   :  { %3582 = vrcp.f32 %v1475_v11  ;;  %v1487_v24 = vand.u32 2147483648, %v1475_v11  ;;  %vm1481_vm12 = vweird.f32 %v1475_v11  ;;  %v1485_v38 = vand.u32 2147483647, %v1475_v11 }
 0x5e7   :  { %v1468_v37 = vor.u32 1.1754944e-38, %v1467_v34  ;;  %vm1466_vm9 = vcmp.eq.f32.partialorder %v1465_v63, 8.507059e+37 }
 0x5e8   :  { %v1488_v51 = vor.u32 1.1754944e-38, %v1487_v24  ;;  %vm1486_vm14 = vcmp.eq.f32.partialorder %v1485_v38, 8.507059e+37 }
 0x5eb   :  { %v3581_v28 = vpop.eup %3580 }
 0x5ec   :  { %v3583_v48 = vpop.eup %3582  ;;  %v1457_v12 = vmul.f32 %v3581_v28, %v1455_v61  ;;  %vm1462_vm6 = vweird.f32 %v3581_v28 }
 0x5ed   :  { %v1477_v58 = vmul.f32 %v3583_v48, %v1475_v11  ;;  %vm1463_vm8 = vmor %vm1461_vm7, %vm1462_vm6  ;;  %vm1482_vm11 = vweird.f32 %v3583_v48 }
 0x5ee   :  { %v1458_v0 = vsub.f32 1.0, %v1457_v12  ;;  %vm1483_vm13 = vmor %vm1481_vm12, %vm1482_vm11 }
 0x5ef   :  { %v1478_v20 = vsub.f32 1.0, %v1477_v58 }
 0x5f0   :  { %v1459_v49 = vmul.f32 %v3581_v28, %v1458_v0 }
 0x5f1   :  { %v1479_v8 = vmul.f32 %v3583_v48, %v1478_v20  ;;  %v484_v20 = vadd.f32 %v4293_v32, %v4157_v5 }
 0x5f2   :  { %v1460_v36 = vadd.f32 %v3581_v28, %v1459_v49 }
 0x5f3   :  { %v1480_v62 = vadd.f32 %v3583_v48, %v1479_v8 }
 0x5f4   :  { %v1464_v44 = vsel %vm1463_vm8, %v3581_v28, %v1460_v36 }
 0x5f5   :  { %v1469_v7 = vsel %vm1466_vm9, %v1468_v37, %v1464_v44  ;;  %v1484_v21 = vsel %vm1483_vm13, %v3583_v48, %v1480_v62 }
 0x5f6   :  { %v1492_v18 = vmul.f32 %v1491_v29, %v1469_v7  ;;  %v1489_v46 = vsel %vm1486_vm14, %v1488_v51, %v1484_v21 }
 0x5f7   :  { %v1495_v61 = vsub.f32 1.0, %v1489_v46  ;;  %v1497_v58 = vmul.f32 %v1489_v46, %v4433_v2 }
 0x5f8   :  { %v1493_v56 = vadd.f32 %v1492_v18, %v593_v57 }
 0x5fa   :  { %3584 = vtanh.f32 %v1493_v56 }
 0x600   :  { %v3585_v28 = vpop.eup %3584 }
 0x601   :  { %v1496_v12 = vmul.f32 %v3585_v28, %v1495_v61 }
 0x603   :  { %v4466_v0 = vadd.f32 %v1497_v58, %v1496_v12  ;;  %v596_v58 = vadd.f32 %v4388_v41, %v4168_v53 }
 0x605   :  { %3384 = vmatmul.msk.f32.vlgmr.msra.gmra.mxu3 %vm610_vm10, %v4466_v0  ;;  %3385 = vmatmul.msk.f32.vlgmr.msrb.gmra.mxu0 %vm610_vm10, %v4466_v0 }
 0x606   :  { %3386 = vmatmul.msk.f32.vlgmr.msrb.gmra.mxu1 %vm610_vm10, %v4466_v0  ;;  %1776 = vmatpush.msra.mxu3 %v4335_v52 }
 0x607   :  { %1847 = vmatpush.msrb.mxu0 %v4259_v10  ;;  %1867 = vmatpush.msrb.mxu1 %v4342_v3 }
 0x608   :  { %1777 = vmatpush.msra.mxu3 %v4348_v60 }
 0x609   :  { %1848 = vmatpush.msrb.mxu0 %v4267_v39  ;;  %1868 = vmatpush.msrb.mxu1 %v4355_v9 }
 0x60a   :  { %1778 = vmatpush.msra.mxu3 %v4361_v16 }
 0x60b   :  { %1849 = vmatpush.msrb.mxu0 %v4275_v35  ;;  %1869 = vmatpush.msrb.mxu1 %v4368_v22 }
 0x60c   :  { %1779 = vmatpush.msra.mxu3 %v4374_v31 }
 0x60d   :  { %1850 = vmatpush.msrb.mxu0 %v4283_v30  ;;  %1870 = vmatpush.msrb.mxu1 %v4381_v14 }
 0x682   :  { %v1539_v2 = vpop.f32.mrf.mxu0 }
 0x683   :  { %v1582_v11 = vadd.f32 %v1539_v2, %v540_v40  ;;  %v1559_v56 = vpop.f32.mrf.mxu1 }
 0x684   :  { %v1602_v46 = vadd.f32 %v4460_v33, %v1559_v56 }
 0x685   :  { %v3388_v48 = vmul.f32 -1.442695, %v1582_v11 }
 0x687   :  { %3586 = vpow2.f32 %v3388_v48 }
 0x688   :  { %v1519_v34 = vpop.f32.mrf.mxu3 }
 0x689   :  { %v1562_v49 = vadd.f32 %v1519_v34, %v484_v20 }
 0x68b   :  { %v3387_v63 = vmul.f32 -1.442695, %v1562_v49 }
 0x68d   :  { %v3587_v8 = vpop.eup %3586  ;;  %3588 = vpow2.f32 %v3387_v63 }
 0x68e   :  { %v1586_v54 = vadd.f32 1.0, %v3587_v8 }
 0x690   :  { %3590 = vrcp.f32 %v1586_v54  ;;  %v1598_v40 = vand.u32 2147483648, %v1586_v54  ;;  %vm1592_vm6 = vweird.f32 %v1586_v54  ;;  %v1596_v11 = vand.u32 2147483647, %v1586_v54 }
 0x692   :  { %v1599_v34 = vor.u32 1.1754944e-38, %v1598_v40  ;;  %vm1597_vm8 = vcmp.eq.f32.partialorder %v1596_v11, 8.507059e+37 }
 0x693   :  { %v3589_v36 = vpop.eup %3588 }
 0x694   :  { %v1566_v37 = vadd.f32 1.0, %v3589_v36 }
 0x696   :  { %3592 = vrcp.f32 %v1566_v37  ;;  %v3591_v44 = vpop.eup %3590  ;;  %v1578_v24 = vand.u32 2147483648, %v1566_v37  ;;  %v1576_v32 = vand.u32 2147483647, %v1566_v37  ;;  %vm1572_vm2 = vweird.f32 %v1566_v37 }
 0x697   :  { %v1588_v29 = vmul.f32 %v3591_v44, %v1586_v54  ;;  %vm1593_vm5 = vweird.f32 %v3591_v44 }
 0x698   :  { %v1579_v51 = vor.u32 1.1754944e-38, %v1578_v24  ;;  %vm1577_vm4 = vcmp.eq.f32.partialorder %v1576_v32, 8.507059e+37  ;;  %vm1594_vm7 = vmor %vm1592_vm6, %vm1593_vm5 }
 0x699   :  { %v1589_v7 = vsub.f32 1.0, %v1588_v29 }
 0x69b   :  { %v1590_v38 = vmul.f32 %v3591_v44, %v1589_v7 }
 0x69c   :  { %v3593_v23 = vpop.eup %3592 }
 0x69d   :  { %v1568_v62 = vmul.f32 %v3593_v23, %v1566_v37  ;;  %vm1573_vm15 = vweird.f32 %v3593_v23  ;;  %v1591_v28 = vadd.f32 %v3591_v44, %v1590_v38 }
 0x69e   :  { %vm1574_vm3 = vmor %vm1572_vm2, %vm1573_vm15 }
 0x69f   :  { %v1569_v57 = vsub.f32 1.0, %v1568_v62  ;;  %v1595_v20 = vsel %vm1594_vm7, %v3591_v44, %v1591_v28 }
 0x6a0   :  { %v1600_v49 = vsel %vm1597_vm8, %v1599_v34, %v1595_v20 }
 0x6a1   :  { %v1570_v18 = vmul.f32 %v3593_v23, %v1569_v57  ;;  %v1606_v63 = vsub.f32 1.0, %v1600_v49  ;;  %v1608_v37 = vmul.f32 %v1600_v49, %v4466_v0 }
 0x6a3   :  { %v1571_v21 = vadd.f32 %v3593_v23, %v1570_v18 }
 0x6a5   :  { %v1575_v61 = vsel %vm1574_vm3, %v3593_v23, %v1571_v21 }
 0x6a6   :  { %v1580_v12 = vsel %vm1577_vm4, %v1579_v51, %v1575_v61 }
 0x6a7   :  { %v1603_v2 = vmul.f32 %v1602_v46, %v1580_v12 }
 0x6a9   :  { %v1604_v48 = vadd.f32 %v1603_v2, %v596_v58  ;;  %v599_v58 = vadd.f32 %v4390_v43, %v4168_v53  ;;  %v490_v43 = vadd.f32 %v4301_v19, %v4157_v5  ;;  %v2054_v19 = vld [vmem:[%s5272_s1 + $0x90] sm:$0xff] }
 0x6ab   :  { %3594 = vtanh.f32 %v1604_v48 }
 0x6b1   :  { %v3595_v8 = vpop.eup %3594 }
 0x6b2   :  { %v1607_v36 = vmul.f32 %v3595_v8, %v1606_v63 }
 0x6b4   :  { %v4494_v29 = vadd.f32 %v1608_v37, %v1607_v36 }
 0x6b6   :  { %3389 = vmatmul.msk.f32.vlgmr.msrb.gmra.mxu2 %vm610_vm10, %v4494_v29  ;;  %3390 = vmatmul.msk.f32.vlgmr.msrb.gmra.mxu3 %vm610_vm10, %v4494_v29 }
 0x6b7   :  { %3391 = vmatmul.msk.f32.vlgmr.msra.gmra.mxu0 %vm610_vm10, %v4494_v29  ;;  %1887 = vmatpush.msrb.mxu2 %v4335_v52 }
 0x6b8   :  { %1958 = vmatpush.msrb.mxu3 %v4259_v10  ;;  %1978 = vmatpush.msra.mxu0 %v4342_v3  ;;  %v487_v10 = vadd.f32 %v4297_v17, %v4157_v5 }
 0x6b9   :  { %1888 = vmatpush.msrb.mxu2 %v4348_v60 }
 0x6ba   :  { %1959 = vmatpush.msrb.mxu3 %v4267_v39  ;;  %1979 = vmatpush.msra.mxu0 %v4355_v9  ;;  %v543_v39 = vadd.f32 %v4311_v27, %v4159_v6 }
 0x6bb   :  { %1889 = vmatpush.msrb.mxu2 %v4361_v16 }
 0x6bc   :  { %1960 = vmatpush.msrb.mxu3 %v4275_v35  ;;  %1980 = vmatpush.msra.mxu0 %v4368_v22 }
 0x6bd   :  { %1890 = vmatpush.msrb.mxu2 %v4374_v31 }
 0x6be   :  { %1961 = vmatpush.msrb.mxu3 %v4283_v30  ;;  %1981 = vmatpush.msra.mxu0 %v4381_v14 }
 0x734   :  { %v1670_v38 = vpop.f32.mrf.mxu0 }
 0x735   :  { %v1713_v46 = vadd.f32 %v4460_v33, %v1670_v38  ;;  %v602_v38 = vadd.f32 %v4392_v47, %v4168_v53 }
 0x739   :  { %v1630_v3 = vpop.f32.mrf.mxu2  ;;  %v1650_v9 = vpop.f32.mrf.mxu3 }
 0x73a   :  { %v1673_v41 = vadd.f32 %v1630_v3, %v487_v10  ;;  %v1693_v0 = vadd.f32 %v1650_v9, %v543_v39  ;;  %v546_v9 = vadd.f32 %v4314_v42, %v4159_v6 }
 0x73c   :  { %v3392_v54 = vmul.f32 -1.442695, %v1673_v41  ;;  %v3393_v35 = vmul.f32 -1.442695, %v1693_v0 }
 0x73e   :  { %3596 = vpow2.f32 %v3392_v54 }
 0x73f   :  { %3598 = vpow2.f32 %v3393_v35 }
 0x744   :  { %v3597_v22 = vpop.eup %3596 }
 0x745   :  { %v3599_v44 = vpop.eup %3598  ;;  %v1677_v23 = vadd.f32 1.0, %v3597_v22 }
 0x746   :  { %v1697_v30 = vadd.f32 1.0, %v3599_v44 }
 0x747   :  { %3600 = vrcp.f32 %v1677_v23  ;;  %v1689_v27 = vand.u32 2147483648, %v1677_v23  ;;  %v1687_v32 = vand.u32 2147483647, %v1677_v23  ;;  %vm1683_vm11 = vweird.f32 %v1677_v23 }
 0x748   :  { %3602 = vrcp.f32 %v1697_v30  ;;  %v1709_v2 = vand.u32 2147483648, %v1697_v30  ;;  %vm1703_vm15 = vweird.f32 %v1697_v30  ;;  %v1707_v11 = vand.u32 2147483647, %v1697_v30 }
 0x749   :  { %v1690_v51 = vor.u32 1.1754944e-38, %v1689_v27  ;;  %vm1688_vm13 = vcmp.eq.f32.partialorder %v1687_v32, 8.507059e+37 }
 0x74a   :  { %v1710_v34 = vor.u32 1.1754944e-38, %v1709_v2  ;;  %vm1708_vm3 = vcmp.eq.f32.partialorder %v1707_v11, 8.507059e+37 }
 0x74d   :  { %v3601_v14 = vpop.eup %3600 }
 0x74e   :  { %v3603_v62 = vpop.eup %3602  ;;  %v1679_v17 = vmul.f32 %v3601_v14, %v1677_v23  ;;  %vm1684_vm9 = vweird.f32 %v3601_v14 }
 0x74f   :  { %v1699_v7 = vmul.f32 %v3603_v62, %v1697_v30  ;;  %vm1685_vm12 = vmor %vm1683_vm11, %vm1684_vm9  ;;  %vm1704_vm14 = vweird.f32 %v3603_v62 }
 0x750   :  { %v1680_v57 = vsub.f32 1.0, %v1679_v17  ;;  %vm1705_vm2 = vmor %vm1703_vm15, %vm1704_vm14 }
 0x751   :  { %v1700_v24 = vsub.f32 1.0, %v1699_v7 }
 0x752   :  { %v1681_v18 = vmul.f32 %v3601_v14, %v1680_v57 }
 0x753   :  { %v1701_v56 = vmul.f32 %v3603_v62, %v1700_v24 }
 0x754   :  { %v1682_v21 = vadd.f32 %v3601_v14, %v1681_v18 }
 0x755   :  { %v1702_v12 = vadd.f32 %v3603_v62, %v1701_v56 }
 0x756   :  { %v1686_v61 = vsel %vm1685_vm12, %v3601_v14, %v1682_v21 }
 0x757   :  { %v1691_v28 = vsel %vm1688_vm13, %v1690_v51, %v1686_v61  ;;  %v1706_v20 = vsel %vm1705_vm2, %v3603_v62, %v1702_v12 }
 0x758   :  { %v1714_v40 = vmul.f32 %v1713_v46, %v1691_v28  ;;  %v1711_v49 = vsel %vm1708_vm3, %v1710_v34, %v1706_v20 }
 0x759   :  { %v1717_v63 = vsub.f32 1.0, %v1711_v49  ;;  %v1719_v37 = vmul.f32 %v1711_v49, %v4494_v29  ;;  %v5291_v49 = vld [vmem:[#allocation2_spill] sm:$0xff] }
 0x75a   :  { %v1715_v48 = vadd.f32 %v1714_v40, %v599_v58 }
 0x75c   :  { %3604 = vtanh.f32 %v1715_v48 }
 0x762   :  { %v3605_v8 = vpop.eup %3604 }
 0x763   :  { %v1718_v36 = vmul.f32 %v3605_v8, %v1717_v63  ;;  %v5292_v63 = vld [vmem:[#allocation3_spill] sm:$0xff]  ;;  %v5293_v8 = vld [vmem:[#allocation4_spill] sm:$0xff] }
 0x765   :  { %v4522_v10 = vadd.f32 %v1719_v37, %v1718_v36  ;;  %v5294_v36 = vld [vmem:[#allocation5_spill] sm:$0xff] }
 0x766   :  { %v493_v37 = vadd.f32 %v5294_v36, %v4157_v5 }
 0x767   :  { %3394 = vmatmul.msk.f32.vlgmr.msra.gmra.mxu1 %vm610_vm10, %v4522_v10  ;;  %3395 = vmatmul.msk.f32.vlgmr.msra.gmra.mxu2 %vm610_vm10, %v4522_v10 }
 0x768   :  { %3396 = vmatmul.msk.f32.vlgmr.msra.gmra.mxu3 %vm610_vm10, %v4522_v10  ;;  %1998 = vmatpush.msra.mxu1 %v4335_v52 }
 0x76a   :  { %1999 = vmatpush.msra.mxu1 %v4348_v60 }
 0x76c   :  { %2000 = vmatpush.msra.mxu1 %v4361_v16  ;;  %v2057_v16 = vld [vmem:[%s5272_s1 + $0xa8] sm:$0xff] }
 0x76d   :  { %2087 = vmatpush.msra.mxu2 %v2057_v16 }
 0x76e   :  { %2001 = vmatpush.msra.mxu1 %v4374_v31 }
 0x76f   :  { %2088 = vmatpush.msra.mxu2 %v2054_v19 }
 0x7e4   :  { %v1741_v29 = vpop.f32.mrf.mxu1 }
 0x7e5   :  { %v1784_v39 = vadd.f32 %v1741_v29, %v490_v43 }
 0x7e7   :  { %v3397_v3 = vmul.f32 -1.442695, %v1784_v39 }
 0x7e9   :  { %3606 = vpow2.f32 %v3397_v3 }
 0x7ea   :  { %v1761_v41 = vpop.f32.mrf.mxu2 }
 0x7eb   :  { %v1804_v0 = vadd.f32 %v1761_v41, %v546_v9  ;;  %v1781_v17 = vpop.f32.mrf.mxu3 }
 0x7ec   :  { %v1824_v32 = vadd.f32 %v4460_v33, %v1781_v17 }
 0x7ed   :  { %v3398_v54 = vmul.f32 -1.442695, %v1804_v0 }
 0x7ef   :  { %v3607_v52 = vpop.eup %3606  ;;  %3608 = vpow2.f32 %v3398_v54 }
 0x7f0   :  { %v1788_v60 = vadd.f32 1.0, %v3607_v52 }
 0x7f2   :  { %3610 = vrcp.f32 %v1788_v60  ;;  %v1800_v23 = vand.u32 2147483648, %v1788_v60  ;;  %v1798_v14 = vand.u32 2147483647, %v1788_v60  ;;  %vm1794_vm5 = vweird.f32 %v1788_v60 }
 0x7f4   :  { %v1801_v27 = vor.u32 1.1754944e-38, %v1800_v23  ;;  %vm1799_vm7 = vcmp.eq.f32.partialorder %v1798_v14, 8.507059e+37  ;;  %v2056_v23 = vld [vmem:[%s5272_s1 + $0xa0] sm:$0xff] }
 0x7f5   :  { %v3609_v31 = vpop.eup %3608 }
 0x7f6   :  { %v1808_v35 = vadd.f32 1.0, %v3609_v31 }
 0x7f8   :  { %v3611_v42 = vpop.eup %3610  ;;  %3612 = vrcp.f32 %v1808_v35  ;;  %v1820_v51 = vand.u32 2147483648, %v1808_v35  ;;  %v1818_v61 = vand.u32 2147483647, %v1808_v35  ;;  %vm1814_vm9 = vweird.f32 %v1808_v35 }
 0x7f9   :  { %v1790_v22 = vmul.f32 %v3611_v42, %v1788_v60  ;;  %vm1795_vm4 = vweird.f32 %v3611_v42 }
 0x7fa   :  { %vm1796_vm6 = vmor %vm1794_vm5, %vm1795_vm4  ;;  %v1821_v58 = vor.u32 1.1754944e-38, %v1820_v51  ;;  %vm1819_vm12 = vcmp.eq.f32.partialorder %v1818_v61, 8.507059e+37 }
 0x7fb   :  { %v1791_v44 = vsub.f32 1.0, %v1790_v22  ;;  %v2059_v22 = vld [vmem:[%s5272_s1 + $0xb8] sm:$0xff] }
 0x7fd   :  { %v1792_v30 = vmul.f32 %v3611_v42, %v1791_v44  ;;  %v2055_v44 = vld [vmem:[%s5272_s1 + $0x98] sm:$0xff] }
 0x7fe   :  { %v3613_v62 = vpop.eup %3612 }
 0x7ff   :  { %v1810_v7 = vmul.f32 %v3613_v62, %v1808_v35  ;;  %v1793_v57 = vadd.f32 %v3611_v42, %v1792_v30  ;;  %vm1815_vm8 = vweird.f32 %v3613_v62  ;;  %v4589_v35 = vld [vmem:[%s5272_s1 + $0xc0] sm:$0xff] }
 0x800   :  { %vm1816_vm11 = vmor %vm1814_vm9, %vm1815_vm8 }
 0x801   :  { %v1811_v24 = vsub.f32 1.0, %v1810_v7  ;;  %v1797_v18 = vsel %vm1796_vm6, %v3611_v42, %v1793_v57  ;;  %v2058_v42 = vld [vmem:[%s5272_s1 + $0xb0] sm:$0xff] }
 0x802   :  { %v1802_v56 = vsel %vm1799_vm7, %v1801_v27, %v1797_v18  ;;  %2142 = vmatpush.msra.mxu3 %v2058_v42 }
 0x803   :  { %v1812_v21 = vmul.f32 %v3613_v62, %v1811_v24  ;;  %v1825_v46 = vmul.f32 %v1824_v32, %v1802_v56  ;;  %v4607_v24 = vld [vmem:[%s5272_s1 + $0xc8] sm:$0xff] }
 0x804   :  { %2143 = vmatpush.msra.mxu3 %v2055_v44 }
 0x805   :  { %v1813_v28 = vadd.f32 %v3613_v62, %v1812_v21  ;;  %v1826_v12 = vadd.f32 %v1825_v46, %v602_v38 }
 0x807   :  { %v1817_v40 = vsel %vm1816_vm11, %v3613_v62, %v1813_v28  ;;  %3614 = vtanh.f32 %v1826_v12  ;;  %v5296_v12 = vld [vmem:[#allocation9_spill] sm:$0xff] }
 0x808   :  { %v1822_v2 = vsel %vm1819_vm12, %v1821_v58, %v1817_v40  ;;  %v605_v58 = vadd.f32 %v5296_v12, %v4168_v53 }
 0x809   :  { %v1828_v11 = vsub.f32 1.0, %v1822_v2  ;;  %v1830_v47 = vmul.f32 %v1822_v2, %v4522_v10  ;;  %v5295_v10 = vld [vmem:[#allocation7_spill] sm:$0xff] }
 0x80a   :  { %v549_v43 = vadd.f32 %v5295_v10, %v4159_v6 }
 0x80d   :  { %v3615_v48 = vpop.eup %3614 }
 0x80e   :  { %v1829_v20 = vmul.f32 %v3615_v48, %v1828_v11 }
 0x810   :  { %v4548_v34 = vadd.f32 %v1830_v47, %v1829_v20 }
 0x812   :  { %3399 = vmatmul.msk.f32.vlgmr.msrb.gmra.mxu0 %vm610_vm10, %v4548_v34  ;;  %3400 = vmatmul.msk.f32.vlgmr.msrb.gmra.mxu1 %vm610_vm10, %v4548_v34 }
 0x813   :  { %3401 = vmatmul.msk.f32.vlgmr.msrb.gmra.mxu2 %vm610_vm10, %v4548_v34  ;;  %2255 = vmatpush.msrb.mxu1 %v4589_v35 }
 0x814   :  { %2197 = vmatpush.msrb.mxu0 %v2059_v22  ;;  %2575 = vmatpush.msrb.mxu2 %v4607_v24 }
 0x816   :  { %2198 = vmatpush.msrb.mxu0 %v2056_v23 }
 0x81b   :  { %3410 = vmatmul.msk.f32.vlgmr.msra.gmra.mxu2 %vm402_vm1, %v4027_v50 }
 0x823   :  { %3411 = vmatmul.msk.f32.gmra.mxu2 %vm402_vm1, %v4043_v59 }
 0x82b   :  { %3412 = vmatmul.msk.f32.gmra.mxu2 %vm402_vm1, %v4057_v4 }
 0x833   :  { %3413 = vmatmul.msk.f32.gmra.mxu2 %vm402_vm1, %v4066_v15 }
 0x83b   :  { %3414 = vmatmul.msk.f32.gmra.mxu2 %vm402_vm1, %v4075_v26 }
 0x843   :  { %3415 = vmatmul.msk.f32.gmra.mxu2 %vm402_vm1, %v4084_v45 }
 0x84b   :  { %3416 = vmatmul.msk.f32.gmra.mxu2 %vm402_vm1, %v4093_v55 }
 0x853   :  { %3417 = vmatmul.msk.f32.gmra.mxu2 %vm402_vm1, %v4102_v1 }
 0x85b   :  { %3418 = vmatmul.msk.f32.gmra.mxu2 %vm402_vm1, %v4111_v13 }
 0x863   :  { %3419 = vmatmul.msk.f32.gmra.mxu2 %vm402_vm1, %v4120_v25 }
 0x86b   :  { %3420 = vmatmul.msk.f32.gmra.mxu2 %vm402_vm1, %v5291_v49 }
 0x873   :  { %3421 = vmatmul.msk.f32.gmra.mxu2 %vm402_vm1, %v5292_v63 }
 0x87b   :  { %3422 = vmatmul.msk.f32.gmra.mxu2 %vm402_vm1, %v5293_v8 }
 0x88f   :  { %v1852_v29 = vpop.f32.mrf.mxu0  ;;  %v1872_v39 = vpop.f32.mrf.mxu1 }
 0x890   :  { %v1895_v3 = vadd.f32 %v1852_v29, %v493_v37  ;;  %v1915_v9 = vadd.f32 %v1872_v39, %v549_v43 }
 0x892   :  { %v3402_v41 = vmul.f32 -1.442695, %v1895_v3  ;;  %v3403_v0 = vmul.f32 -1.442695, %v1915_v9  ;;  %v2062_v3 = vld [vmem:[%s5272_s1 + $0xd0] sm:$0xff] }
 0x893   :  { %2895 = vmatpush.msra.mxu2 %v2062_v3 }
 0x894   :  { %3616 = vpow2.f32 %v3402_v41 }
 0x895   :  { %3618 = vpow2.f32 %v3403_v0 }
 0x896   :  { %v1892_v54 = vpop.f32.mrf.mxu2 }
 0x897   :  { %v1935_v46 = vadd.f32 %v4460_v33, %v1892_v54 }
 0x89a   :  { %v3617_v52 = vpop.eup %3616 }
 0x89b   :  { %v3619_v60 = vpop.eup %3618  ;;  %v1899_v16 = vadd.f32 1.0, %v3617_v52 }
 0x89c   :  { %v1919_v19 = vadd.f32 1.0, %v3619_v60 }
 0x89d   :  { %3620 = vrcp.f32 %v1899_v16  ;;  %v1911_v27 = vand.u32 2147483648, %v1899_v16  ;;  %v1909_v32 = vand.u32 2147483647, %v1899_v16  ;;  %vm1905_vm14 = vweird.f32 %v1899_v16 }
 0x89e   :  { %3622 = vrcp.f32 %v1919_v19  ;;  %v2090_v31 = vpop.f32.mrf.mxu2  ;;  %v1931_v40 = vand.u32 2147483648, %v1919_v19  ;;  %vm1925_vm4 = vweird.f32 %v1919_v19  ;;  %v1929_v11 = vand.u32 2147483647, %v1919_v19 }
 0x89f   :  { %v1912_v21 = vor.u32 1.1754944e-38, %v1911_v27  ;;  %vm1910_vm2 = vcmp.eq.f32.partialorder %v1909_v32, 8.507059e+37 }
 0x8a0   :  { %v1932_v47 = vor.u32 1.1754944e-38, %v1931_v40  ;;  %vm1930_vm6 = vcmp.eq.f32.partialorder %v1929_v11, 8.507059e+37  ;;  %v5300_v11 = vld [vmem:[#allocation10_spill] sm:$0xff] }
 0x8a3   :  { %v3621_v30 = vpop.eup %3620 }
 0x8a4   :  { %v3623_v14 = vpop.eup %3622  ;;  %v1901_v62 = vmul.f32 %v3621_v30, %v1899_v16  ;;  %vm1906_vm13 = vweird.f32 %v3621_v30 }
 0x8a5   :  { %v1921_v17 = vmul.f32 %v3623_v14, %v1919_v19  ;;  %vm1907_vm15 = vmor %vm1905_vm14, %vm1906_vm13  ;;  %vm1926_vm3 = vweird.f32 %v3623_v14 }
 0x8a6   :  { %v1902_v7 = vsub.f32 1.0, %v1901_v62  ;;  %vm1927_vm5 = vmor %vm1925_vm4, %vm1926_vm3 }
 0x8a7   :  { %v1922_v57 = vsub.f32 1.0, %v1921_v17 }
 0x8a8   :  { %v1903_v18 = vmul.f32 %v3621_v30, %v1902_v7 }
 0x8a9   :  { %v1923_v38 = vmul.f32 %v3623_v14, %v1922_v57 }
 0x8aa   :  { %v1904_v56 = vadd.f32 %v3621_v30, %v1903_v18 }
 0x8ab   :  { %v1924_v61 = vadd.f32 %v3623_v14, %v1923_v38 }
 0x8ac   :  { %v1908_v51 = vsel %vm1907_vm15, %v3621_v30, %v1904_v56 }
 0x8ad   :  { %v1913_v28 = vsel %vm1910_vm2, %v1912_v21, %v1908_v51  ;;  %v1928_v20 = vsel %vm1927_vm5, %v3623_v14, %v1924_v61 }
 0x8ae   :  { %v1936_v2 = vmul.f32 %v1935_v46, %v1913_v28  ;;  %v1933_v36 = vsel %vm1930_vm6, %v1932_v47, %v1928_v20 }
 0x8af   :  { %v1939_v37 = vsub.f32 1.0, %v1933_v36  ;;  %v1941_v29 = vmul.f32 %v1933_v36, %v4548_v34  ;;  %v5297_v34 = vmov 0.0  }
 0x8b0   :  { %v1937_v48 = vadd.f32 %v1936_v2, %v605_v58 }
 0x8b2   :  { %3624 = vtanh.f32 %v1937_v48  ;;  %v608_v48 = vadd.f32 %v5300_v11, %v4168_v53 }
 0x8b8   :  { %v3625_v10 = vpop.eup %3624 }
 0x8b9   :  { %v1940_v43 = vmul.f32 %v3625_v10, %v1939_v37 }
 0x8bb   :  { %v4614_v39 = vadd.f32 %v1941_v29, %v1940_v43 }
 0x8bd   :  { %3404 = vmatmul.msk.f32.vlgmr.msrb.gmra.mxu3 %vm610_vm10, %v4614_v39  ;;  %3405 = vmatmul.msk.f32.vlgmr.msra.gmra.mxu0 %vm610_vm10, %v4614_v39 }
 0x8be   :  { %3406 = vmatmul.msk.f32.vlgmr.msra.gmra.mxu1 %vm610_vm10, %v4614_v39  ;;  %2837 = vmatpush.msra.mxu0 %v4589_v35 }
 0x8bf   :  { %2284 = vmatpush.msra.mxu1 %v4607_v24  ;;  %2604 = vmatpush.msrb.mxu3 %v2062_v3 }
 0x8c5   :  { %3423 = vmatmul.msk.f32.vlgmr.msra.gmra.mxu3 %vm402_vm1, %v4027_v50  ;;  %3436 = vmatmul.msk.f32.vlgmr.msrb.gmra.mxu0 %vm402_vm1, %v4027_v50  ;;  %v5298_v50 = vld [vmem:[#allocation8_spill] sm:$0xff] }
 0x8c6   :  { %2256 = vmatmul.f32.vlgmr.msrb.gmra.mxu1 %v5297_v34 }
 0x8c7   :  { %2313 = vmatpush.msrb.mxu1 %v2062_v3 }
 0x8cd   :  { %3424 = vmatmul.msk.f32.gmra.mxu3 %vm402_vm1, %v4043_v59  ;;  %3437 = vmatmul.msk.f32.gmra.mxu0 %vm402_vm1, %v4043_v59  ;;  %v552_v59 = vadd.f32 %v5298_v50, %v4159_v6  ;;  %v4700_v6 = vld [vmem:[%s5272_s1 + $0xda] ss:$8 sm:$0x7] }
 0x8ce   :  { %2259 = vmatmul.f32.gmra.mxu1 %v5297_v34  ;;  %v4709_v12 = vperm.slane %v4700_v6, 1 }
 0x8d5   :  { %3425 = vmatmul.msk.f32.gmra.mxu3 %vm402_vm1, %v4057_v4  ;;  %3438 = vmatmul.msk.f32.gmra.mxu0 %vm402_vm1, %v4057_v4 }
 0x8d6   :  { %2262 = vmatmul.f32.gmra.mxu1 %v5297_v34 }
 0x8dd   :  { %3426 = vmatmul.msk.f32.gmra.mxu3 %vm402_vm1, %v4066_v15  ;;  %3439 = vmatmul.msk.f32.gmra.mxu0 %vm402_vm1, %v4066_v15 }
 0x8de   :  { %2265 = vmatmul.f32.gmra.mxu1 %v5297_v34 }
 0x8e5   :  { %3427 = vmatmul.msk.f32.gmra.mxu3 %vm402_vm1, %v4075_v26  ;;  %3440 = vmatmul.msk.f32.gmra.mxu0 %vm402_vm1, %v4075_v26 }
 0x8e6   :  { %2285 = vmatmul.f32.vlgmr.msra.gmra.mxu1 %v5297_v34 }
 0x8e7   :  { %2546 = vmatpush.msra.mxu1 %v4589_v35 }
 0x8ed   :  { %3428 = vmatmul.msk.f32.gmra.mxu3 %vm402_vm1, %v4084_v45  ;;  %3441 = vmatmul.msk.f32.gmra.mxu0 %vm402_vm1, %v4084_v45 }
 0x8ee   :  { %2288 = vmatmul.f32.gmra.mxu1 %v5297_v34 }
 0x8f5   :  { %3429 = vmatmul.msk.f32.gmra.mxu3 %vm402_vm1, %v4093_v55  ;;  %3442 = vmatmul.msk.f32.gmra.mxu0 %vm402_vm1, %v4093_v55  ;;  %v5299_v55 = vld [vmem:[#allocation6_spill] sm:$0xff] }
 0x8f6   :  { %2291 = vmatmul.f32.gmra.mxu1 %v5297_v34 }
 0x8fd   :  { %3430 = vmatmul.msk.f32.gmra.mxu3 %vm402_vm1, %v4102_v1  ;;  %3443 = vmatmul.msk.f32.gmra.mxu0 %vm402_vm1, %v4102_v1  ;;  %v496_v1 = vadd.f32 %v5299_v55, %v4157_v5  ;;  %v4703_v5 = vperm.slane %v4700_v6, 0 }
 0x8fe   :  { %2294 = vmatmul.f32.gmra.mxu1 %v5297_v34 }
 0x905   :  { %3431 = vmatmul.msk.f32.gmra.mxu3 %vm402_vm1, %v4111_v13  ;;  %3444 = vmatmul.msk.f32.gmra.mxu0 %vm402_vm1, %v4111_v13 }
 0x906   :  { %2314 = vmatmul.f32.vlgmr.msrb.gmra.mxu1 %v5297_v34 }
 0x907   :  { %2866 = vmatpush.msrb.mxu1 %v4607_v24 }
 0x90d   :  { %3432 = vmatmul.msk.f32.gmra.mxu3 %vm402_vm1, %v4120_v25  ;;  %3445 = vmatmul.msk.f32.gmra.mxu0 %vm402_vm1, %v4120_v25 }
 0x90e   :  { %2317 = vmatmul.f32.gmra.mxu1 %v5297_v34 }
 0x915   :  { %3433 = vmatmul.msk.f32.gmra.mxu3 %vm402_vm1, %v5291_v49  ;;  %3446 = vmatmul.msk.f32.gmra.mxu0 %vm402_vm1, %v5291_v49 }
 0x916   :  { %2320 = vmatmul.f32.gmra.mxu1 %v5297_v34 }
 0x91d   :  { %3434 = vmatmul.msk.f32.gmra.mxu3 %vm402_vm1, %v5292_v63  ;;  %3447 = vmatmul.msk.f32.gmra.mxu0 %vm402_vm1, %v5292_v63 }
 0x91e   :  { %2323 = vmatmul.f32.gmra.mxu1 %v5297_v34 }
 0x925   :  { %3435 = vmatmul.msk.f32.gmra.mxu3 %vm402_vm1, %v5293_v8  ;;  %3448 = vmatmul.msk.f32.gmra.mxu0 %vm402_vm1, %v5293_v8  ;;  %v2092_v8 = vpop.f32.mrf.mxu2 }
 0x926   :  { %v2093_v31 = vadd.f32 %v2092_v8, %v4703_v5 }
 0x92d   :  { %v2095_v35 = vpop.f32.mrf.mxu2 }
 0x92e   :  { %v2096_v7 = vadd.f32 %v2095_v35, %v4703_v5 }
 0x935   :  { %v2098_v56 = vpop.f32.mrf.mxu2 }
 0x936   :  { %v2099_v20 = vadd.f32 %v2098_v56, %v4703_v5 }
 0x93a   :  { %v1983_v4 = vpop.f32.mrf.mxu0 }
 0x93b   :  { %v2026_v15 = vadd.f32 %v1983_v4, %v552_v59  ;;  %v2003_v26 = vpop.f32.mrf.mxu1 }
 0x93c   :  { %v2046_v61 = vadd.f32 %v4460_v33, %v2003_v26 }
 0x93d   :  { %v3408_v45 = vmul.f32 -1.442695, %v2026_v15  ;;  %v2101_v15 = vpop.f32.mrf.mxu2 }
 0x93f   :  { %3626 = vpow2.f32 %v3408_v45 }
 0x940   :  { %v1963_v13 = vpop.f32.mrf.mxu3 }
 0x941   :  { %v2006_v25 = vadd.f32 %v1963_v13, %v496_v1  ;;  %v2102_v13 = vadd.f32 %v2101_v15, %v4703_v5 }
 0x942   :  { %v2200_v49 = vpop.f32.mrf.mxu0 }
 0x943   :  { %v3407_v63 = vmul.f32 -1.442695, %v2006_v25  ;;  %v2257_v9 = vpop.f32.mrf.mxu1 }
 0x944   :  { %v2327_v22 = vadd.f32 %v2257_v9, %v2093_v31 }
 0x945   :  { %v3627_v41 = vpop.eup %3626  ;;  %3628 = vpow2.f32 %v3407_v63 }
 0x946   :  { %v2030_v0 = vadd.f32 1.0, %v3627_v41  ;;  %v3449_v62 = vmul.f32 -1.442695, %v2327_v22 }
 0x948   :  { %v2145_v54 = vpop.f32.mrf.mxu3  ;;  %3630 = vrcp.f32 %v2030_v0  ;;  %v2042_v47 = vand.u32 2147483648, %v2030_v0  ;;  %vm2036_vm12 = vweird.f32 %v2030_v0  ;;  %v2040_v10 = vand.u32 2147483647, %v2030_v0 }
 0x94a   :  { %v2043_v3 = vor.u32 1.1754944e-38, %v2042_v47  ;;  %vm2041_vm14 = vcmp.eq.f32.partialorder %v2040_v10, 8.507059e+37  ;;  %v2202_v11 = vpop.f32.mrf.mxu0  ;;  %v4759_v10 = vperm.slane %v4700_v6, 2  ;;  %v4775_v6 = vld [vmem:[%s5272_s1 + $0xeb] ss:$0 sm:$0xff] }
 0x94b   :  { %v3629_v52 = vpop.eup %3628  ;;  %v2260_v60 = vpop.f32.mrf.mxu1 }
 0x94c   :  { %v2010_v16 = vadd.f32 1.0, %v3629_v52  ;;  %v2328_v38 = vadd.f32 %v2260_v60, %v2096_v7 }
 0x94e   :  { %3632 = vrcp.f32 %v2010_v16  ;;  %v3631_v19 = vpop.eup %3630  ;;  %v2022_v57 = vand.u32 2147483648, %v2010_v16  ;;  %v2020_v24 = vand.u32 2147483647, %v2010_v16  ;;  %vm2016_vm7 = vweird.f32 %v2010_v16 }
 0x94f   :  { %v2032_v42 = vmul.f32 %v3631_v19, %v2030_v0  ;;  %3634 = vpow2.f32 %v3449_v62  ;;  %vm2037_vm11 = vweird.f32 %v3631_v19  ;;  %v3450_v2 = vmul.f32 -1.442695, %v2328_v38 }
 0x950   :  { %v2147_v18 = vpop.f32.mrf.mxu3  ;;  %v2023_v46 = vor.u32 1.1754944e-38, %v2022_v57  ;;  %vm2021_vm9 = vcmp.eq.f32.partialorder %v2020_v24, 8.507059e+37  ;;  %vm2038_vm13 = vmor %vm2036_vm12, %vm2037_vm11 }
 0x951   :  { %v2033_v14 = vsub.f32 1.0, %v2032_v42  ;;  %3636 = vpow2.f32 %v3450_v2  ;;  %v2148_v34 = vadd.f32 %v2147_v18, %v4709_v12 }
 0x953   :  { %v2263_v44 = vpop.f32.mrf.mxu1  ;;  %v2034_v32 = vmul.f32 %v3631_v19, %v2033_v14 }
 0x954   :  { %v3633_v23 = vpop.eup %3632  ;;  %v2329_v43 = vadd.f32 %v2263_v44, %v2099_v20 }
 0x955   :  { %v2012_v30 = vmul.f32 %v3633_v23, %v2010_v16  ;;  %vm2017_vm1 = vweird.f32 %v3633_v23  ;;  %v2035_v58 = vadd.f32 %v3631_v19, %v2034_v32  ;;  %v3635_v37 = vpop.eup %3634 }
 0x956   :  { %vm2018_vm8 = vmor %vm2016_vm7, %vm2017_vm1  ;;  %v4715_v50 = vadd.f32 1.0, %v3635_v37  ;;  %v3451_v45 = vmul.f32 -1.442695, %v2329_v43 }
 0x957   :  { %v2013_v17 = vsub.f32 1.0, %v2012_v30  ;;  %v2039_v29 = vsel %vm2038_vm13, %v3631_v19, %v2035_v58  ;;  %v3637_v1 = vpop.eup %3636 }
 0x958   :  { %v2150_v59 = vpop.f32.mrf.mxu3  ;;  %v2044_v26 = vsel %vm2041_vm14, %v2043_v3, %v2039_v29  ;;  %v4721_v8 = vadd.f32 1.0, %v3637_v1  ;;  %v2358_v43 = vand.u32 2147483648, %v4715_v50  ;;  %vm2352_vm2 = vweird.f32 %v4715_v50 }
 0x959   :  { %v2014_v27 = vmul.f32 %v3633_v23, %v2013_v17  ;;  %v2050_v25 = vsub.f32 1.0, %v2044_v26  ;;  %v2151_v63 = vadd.f32 %v2150_v59, %v4709_v12  ;;  %v2052_v0 = vmul.f32 %v2044_v26, %v4614_v39 }
 0x95a   :  { %v2356_v29 = vand.u32 2147483647, %v4715_v50  ;;  %v2359_v26 = vor.u32 1.1754944e-38, %v2358_v43  ;;  %vm2367_vm1 = vweird.f32 %v4721_v8 }
 0x95b   :  { %v2015_v21 = vadd.f32 %v3633_v23, %v2014_v27  ;;  %v2266_v51 = vpop.f32.mrf.mxu1 }
 0x95c   :  { %v2330_v9 = vadd.f32 %v2266_v51, %v2102_v13  ;;  %vm2357_vm4 = vcmp.eq.f32.partialorder %v2356_v29, 8.507059e+37 }
 0x95d   :  { %v2019_v28 = vsel %vm2018_vm8, %v3633_v23, %v2015_v21 }
 0x95e   :  { %v2024_v40 = vsel %vm2021_vm9, %v2023_v46, %v2019_v28  ;;  %v3452_v35 = vmul.f32 -1.442695, %v2330_v9 }
 0x95f   :  { %v2047_v36 = vmul.f32 %v2046_v61, %v2024_v40 }
 0x960   :  { %v2153_v19 = vpop.f32.mrf.mxu3 }
 0x961   :  { %v2048_v33 = vadd.f32 %v2047_v36, %v608_v48  ;;  %v2154_v39 = vadd.f32 %v2153_v19, %v4709_v12 }
 0x963   :  { %3638 = vtanh.f32 %v2048_v33  ;;  %v2286_v53 = vpop.f32.mrf.mxu1 }
 0x964   :  { %v2407_v4 = vadd.f32 %v2286_v53, %v2148_v34  ;;  %3640 = vrcp.f32 %v4715_v50 }
 0x966   :  { %v3453_v55 = vmul.f32 -1.442695, %v2407_v4  ;;  %v2203_v4 = vadd.f32 %v2202_v11, %v4759_v10  ;;  %v3104_v11 = vld [vmem:[%s5270_s2 + $0x40] sm:$0xff] }
 0x967   :  { %3122 = vmatpush.msra.mxu3 %v3104_v11 }
 0x968   :  { %3642 = vpow2.f32 %v3453_v55  ;;  %v2156_v18 = vpop.f32.mrf.mxu3 }
 0x969   :  { %v3639_v49 = vpop.eup %3638  ;;  %3644 = vpow2.f32 %v3451_v45  ;;  %v2157_v51 = vadd.f32 %v2156_v18, %v4709_v12 }
 0x96a   :  { %v2051_v41 = vmul.f32 %v3639_v49, %v2050_v25  ;;  %v4725_v16 = vpop.eup %3640  ;;  %3646 = vrcp.f32 %v4721_v8 }
 0x96b   :  { %v2289_v54 = vpop.f32.mrf.mxu1  ;;  %v2348_v23 = vmul.f32 %v4725_v16, %v4715_v50  ;;  %vm2353_vm15 = vweird.f32 %v4725_v16 }
 0x96c   :  { %v2408_v52 = vadd.f32 %v2289_v54, %v2151_v63  ;;  %v4723_v60 = vadd.f32 %v2052_v0, %v2051_v41  ;;  %vm2354_vm3 = vmor %vm2352_vm2, %vm2353_vm15 }
 0x96d   :  { %v2349_v27 = vsub.f32 1.0, %v2348_v23 }
 0x96e   :  { %v3643_v31 = vpop.eup %3642  ;;  %v3454_v42 = vmul.f32 -1.442695, %v2408_v52  ;;  %v2205_v52 = vpop.f32.mrf.mxu0 }
 0x96f   :  { %v3645_v22 = vpop.eup %3644  ;;  %v4728_v44 = vadd.f32 1.0, %v3643_v31  ;;  %v2350_v46 = vmul.f32 %v4725_v16, %v2349_v27 }
 0x970   :  { %3648 = vpow2.f32 %v3454_v42  ;;  %v4734_v30 = vadd.f32 1.0, %v3645_v22  ;;  %v4736_v17 = vpop.eup %3646 }
 0x971   :  { %3650 = vrcp.f32 %v4728_v44  ;;  %v2363_v56 = vmul.f32 %v4736_v17, %v4721_v8  ;;  %v2351_v36 = vadd.f32 %v4725_v16, %v2350_v46  ;;  %vm2368_vm5 = vweird.f32 %v4736_v17 }
 0x972   :  { %3652 = vpow2.f32 %v3452_v35  ;;  %v2438_v9 = vand.u32 2147483648, %v4728_v44  ;;  %vm2432_vm7 = vweird.f32 %v4728_v44  ;;  %vm4798_vm8 = vmor %vm2367_vm1, %vm2368_vm5  ;;  %v2373_v35 = vand.u32 2147483648, %v4721_v8 }
 0x973   :  { %v2292_v14 = vpop.f32.mrf.mxu1  ;;  %3654 = vrcp.f32 %v4734_v30  ;;  %v2364_v40 = vsub.f32 1.0, %v2363_v56  ;;  %v2355_v53 = vsel %vm2354_vm3, %v4725_v16, %v2351_v36  ;;  %v2436_v16 = vand.u32 2147483647, %v4728_v44 }
 0x974   :  { %v2409_v62 = vadd.f32 %v2292_v14, %v2154_v39  ;;  %v2360_v49 = vsel %vm2357_vm4, %v2359_v26, %v2355_v53  ;;  %v2371_v39 = vand.u32 2147483647, %v4721_v8  ;;  %v2206_v8 = vadd.f32 %v2205_v52, %v4759_v10  ;;  %v3101_v52 = vld [vmem:[%s5270_s2 + $0x28] sm:$0xff] }
 0x975   :  { %v2365_v34 = vmul.f32 %v4736_v17, %v2364_v40  ;;  %vm2437_vm11 = vcmp.eq.f32.partialorder %v2436_v16, 8.507059e+37  ;;  %v2374_v18 = vor.u32 1.1754944e-38, %v2373_v35  ;;  %v2388_v36 = vand.u32 2147483648, %v4734_v30 }
 0x976   :  { %v3649_v7 = vpop.eup %3648  ;;  %v3455_v57 = vmul.f32 -1.442695, %v2409_v62  ;;  %vm2372_vm12 = vcmp.eq.f32.partialorder %v2371_v39, 8.507059e+37  ;;  %vm2382_vm2 = vweird.f32 %v4734_v30 }
 0x977   :  { %v4738_v24 = vpop.eup %3650  ;;  %v4741_v32 = vadd.f32 1.0, %v3649_v7  ;;  %v2366_v55 = vadd.f32 %v4736_v17, %v2365_v34  ;;  %v2439_v7 = vor.u32 1.1754944e-38, %v2438_v9  ;;  %v2389_v9 = vor.u32 1.1754944e-38, %v2388_v36 }
 0x978   :  { %v3653_v38 = vpop.eup %3652  ;;  %3656 = vpow2.f32 %v3455_v57  ;;  %v2428_v21 = vmul.f32 %v4738_v24, %v4728_v44  ;;  %vm2433_vm6 = vweird.f32 %v4738_v24 }
 0x979   :  { %3658 = vrcp.f32 %v4741_v32  ;;  %v4750_v61 = vadd.f32 1.0, %v3653_v38  ;;  %v4752_v2 = vpop.eup %3654  ;;  %vm4805_vm9 = vmor %vm2432_vm7, %vm2433_vm6  ;;  %v2370_v44 = vsel %vm4798_vm8, %v4736_v17, %v2366_v55  ;;  %v2453_v40 = vand.u32 2147483648, %v4741_v32 }
 0x97a   :  { %v2429_v48 = vsub.f32 1.0, %v2428_v21  ;;  %v2378_v50 = vmul.f32 %v4752_v2, %v4734_v30  ;;  %vm2383_vm13 = vweird.f32 %v4752_v2  ;;  %vm2447_vm15 = vweird.f32 %v4741_v32 }
 0x97b   :  { %v2295_v28 = vpop.f32.mrf.mxu1  ;;  %3660 = vrcp.f32 %v4750_v61  ;;  %v2451_v43 = vand.u32 2147483647, %v4741_v32  ;;  %vm4857_vm4 = vmor %vm2382_vm2, %vm2383_vm13 }
 0x97c   :  { %v2410_v58 = vadd.f32 %v2295_v28, %v2157_v51  ;;  %v2430_v3 = vmul.f32 %v4738_v24, %v2429_v48  ;;  %v2379_v0 = vsub.f32 1.0, %v2378_v50  ;;  %v3103_v48 = vld [vmem:[%s5270_s2 + $0x38] sm:$0xff]  ;;  %v3102_v50 = vld [vmem:[%s5270_s2 + $0x30] sm:$0xff] }
 0x97d   :  { %3123 = vmatpush.msra.mxu3 %v3103_v48  ;;  %vm2452_vm5 = vcmp.eq.f32.partialorder %v2451_v43, 8.507059e+37 }
 0x97e   :  { %v3657_v20 = vpop.eup %3656  ;;  %v3456_v47 = vmul.f32 -1.442695, %v2410_v58  ;;  %v2431_v13 = vadd.f32 %v4738_v24, %v2430_v3  ;;  %v2380_v57 = vmul.f32 %v4752_v2, %v2379_v0 }
 0x97f   :  { %v4756_v37 = vpop.eup %3658  ;;  %v4762_v33 = vadd.f32 1.0, %v3657_v20  ;;  %3124 = vmatpush.msra.mxu3 %v3102_v50 }
 0x980   :  { %3662 = vpow2.f32 %v3456_v47  ;;  %v2443_v59 = vmul.f32 %v4756_v37, %v4741_v32  ;;  %v2435_v62 = vsel %vm4805_vm9, %v4738_v24, %v2431_v13  ;;  %v2375_v24 = vsel %vm2372_vm12, %v2374_v18, %v2370_v44 }
 0x981   :  { %3664 = vrcp.f32 %v4762_v33  ;;  %v4784_v1 = vpop.eup %3660  ;;  %v2440_v38 = vsel %vm2437_vm11, %v2439_v7, %v2435_v62  ;;  %vm2448_vm14 = vweird.f32 %v4756_v37  ;;  %v2381_v28 = vadd.f32 %v4752_v2, %v2380_v57  ;;  %3125 = vmatpush.msra.mxu3 %v3101_v52 }
 0x982   :  { %v2444_v25 = vsub.f32 1.0, %v2443_v59  ;;  %v2393_v17 = vmul.f32 %v4784_v1, %v4750_v61  ;;  %v2503_v47 = vsub.f32 1.0, %v2440_v38  ;;  %v2511_v34 = vmul.f32 0.0, %v2440_v38  ;;  %vm4845_vm3 = vmor %vm2447_vm15, %vm2448_vm14 }
 0x983   :  { %v2315_v15 = vpop.f32.mrf.mxu1  ;;  %v2386_v59 = vand.u32 2147483647, %v4734_v30  ;;  %v2385_v55 = vsel %vm4857_vm4, %v4752_v2, %v2381_v28  ;;  %vm2398_vm7 = vweird.f32 %v4784_v1  ;;  %vm2462_vm8 = vweird.f32 %v4762_v33  ;;  %v2159_v30 = vpop.f32.mrf.mxu3 }
 0x984   :  { %v2487_v45 = vadd.f32 %v2315_v15, %v4775_v6  ;;  %v2445_v23 = vmul.f32 %v4756_v37, %v2444_v25  ;;  %v2394_v58 = vsub.f32 1.0, %v2393_v17  ;;  %v2454_v25 = vor.u32 1.1754944e-38, %v2453_v40 }
 0x985   :  { %vm2387_vm6 = vcmp.eq.f32.partialorder %v2386_v59, 8.507059e+37  ;;  %v2403_v44 = vand.u32 2147483648, %v4750_v61  ;;  %vm2397_vm9 = vweird.f32 %v4750_v61  ;;  %v2401_v7 = vand.u32 2147483647, %v4750_v61 }
 0x986   :  { %v3663_v63 = vpop.eup %3662  ;;  %v2491_v41 = vmul.f32 %v2487_v45, %v2360_v49  ;;  %v2446_v51 = vadd.f32 %v4756_v37, %v2445_v23  ;;  %v2395_v13 = vmul.f32 %v4784_v1, %v2394_v58  ;;  %v2390_v16 = vsel %vm2387_vm6, %v2389_v9, %v2385_v55  ;;  %vm4898_vm12 = vmor %vm2397_vm9, %vm2398_vm7 }
 0x987   :  { %v4790_v54 = vpop.eup %3664  ;;  %v4794_v19 = vadd.f32 1.0, %v3663_v63  ;;  %v2466_v23 = vand.u32 2147483647, %v4762_v33  ;;  %vm2402_vm14 = vcmp.eq.f32.partialorder %v2401_v7, 8.507059e+37 }
 0x988   :  { %v2495_v22 = vadd.f32 %v2491_v41, %v2203_v4  ;;  %v2458_v14 = vmul.f32 %v4790_v54, %v4762_v33  ;;  %v2208_v4 = vpop.f32.mrf.mxu0  ;;  %v2450_v45 = vsel %vm4845_vm3, %v4756_v37, %v2446_v51  ;;  %vm2463_vm1 = vweird.f32 %v4790_v54 }
 0x989   :  { %3666 = vrcp.f32 %v4794_v19  ;;  %v2209_v41 = vadd.f32 %v2208_v4, %v4759_v10  ;;  %v2455_v0 = vsel %vm2452_vm5, %v2454_v25, %v2450_v45  ;;  %v2396_v42 = vadd.f32 %v4784_v1, %v2395_v13  ;;  %vm4893_vm11 = vmor %vm2462_vm8, %vm2463_vm1 }
 0x98a   :  { %3668 = vtanh.f32 %v2495_v22  ;;  %v2459_v21 = vsub.f32 1.0, %v2458_v14  ;;  %v2468_v22 = vand.u32 2147483648, %v4762_v33  ;;  %v2504_v39 = vsub.f32 1.0, %v2455_v0 }
 0x98b   :  { %v2318_v27 = vpop.f32.mrf.mxu1  ;;  %v2400_v61 = vsel %vm4898_vm12, %v4784_v1, %v2396_v42  ;;  %vm2467_vm13 = vcmp.eq.f32.partialorder %v2466_v23, 8.507059e+37  ;;  %v2483_v11 = vand.u32 2147483648, %v4794_v19  ;;  %vm2477_vm2 = vweird.f32 %v4794_v19  ;;  %v2162_v55 = vpop.f32.mrf.mxu3 }
 0x98c   :  { %v2488_v56 = vadd.f32 %v2318_v27, %v4775_v6  ;;  %v2460_v32 = vmul.f32 %v4790_v54, %v2459_v21  ;;  %v2512_v27 = vmul.f32 0.0, %v2455_v0  ;;  %v2469_v38 = vor.u32 1.1754944e-38, %v2468_v22 }
 0x98d   :  { %v2484_v59 = vor.u32 1.1754944e-38, %v2483_v11 }
 0x98e   :  { %v2492_v46 = vmul.f32 %v2488_v56, %v2375_v24  ;;  %v2461_v31 = vadd.f32 %v4790_v54, %v2460_v32  ;;  %v2404_v24 = vor.u32 1.1754944e-38, %v2403_v44 }
 0x98f   :  { %v4836_v20 = vpop.eup %3666 }
 0x990   :  { %v3669_v29 = vpop.eup %3668  ;;  %v2496_v3 = vadd.f32 %v2492_v46, %v2206_v8  ;;  %v2473_v15 = vmul.f32 %v4836_v20, %v4794_v19  ;;  %v2465_v18 = vsel %vm4893_vm11, %v4790_v54, %v2461_v31  ;;  %v2211_v56 = vpop.f32.mrf.mxu0  ;;  %v2405_v58 = vsel %vm2402_vm14, %v2404_v24, %v2400_v61 }
 0x991   :  { %v2507_v26 = vmul.f32 %v3669_v29, %v2503_v47  ;;  %v2470_v28 = vsel %vm2467_vm13, %v2469_v38, %v2465_v18  ;;  %vm2478_vm15 = vweird.f32 %v4836_v20  ;;  %v2212_v54 = vadd.f32 %v2211_v56, %v4759_v10 }
 0x992   :  { %3670 = vtanh.f32 %v2496_v3  ;;  %v2474_v2 = vsub.f32 1.0, %v2473_v15  ;;  %v2505_v48 = vsub.f32 1.0, %v2470_v28  ;;  %v2481_v47 = vand.u32 2147483647, %v4794_v19  ;;  %vm2479_vm3 = vmor %vm2477_vm2, %vm2478_vm15 }
 0x993   :  { %v4868_v49 = vadd.f32 %v2511_v34, %v2507_v26  ;;  %v2321_v63 = vpop.f32.mrf.mxu1  ;;  %v2513_v34 = vmul.f32 0.0, %v2470_v28  ;;  %v2104_v26 = vpop.f32.mrf.mxu2  ;;  %v2163_v38 = vadd.f32 %v2162_v55, %v4709_v12 }
 0x994   :  { %v2489_v37 = vadd.f32 %v2321_v63, %v4775_v6  ;;  %v2475_v17 = vmul.f32 %v4836_v20, %v2474_v2  ;;  %vm2482_vm4 = vcmp.eq.f32.partialorder %v2481_v47, 8.507059e+37  ;;  %v2165_v25 = vpop.f32.mrf.mxu3  ;;  %v2105_v31 = vadd.f32 %v2104_v26, %v4703_v5 }
 0x995   :  { %3457 = vmatmul.msk.f32.vlgmr.msra.gmra.mxu1 %vm33_vm0, %v4868_v49  ;;  %3461 = vmatmul.msk.f32.vlgmr.msrb.gmra.mxu2 %vm33_vm0, %v4868_v49 }
 0x996   :  { %v2493_v35 = vmul.f32 %v2489_v37, %v2390_v16  ;;  %3465 = vmatmul.msk.f32.vlgmr.msrb.gmra.mxu3 %vm33_vm0, %v4868_v49  ;;  %v2476_v1 = vadd.f32 %v4836_v20, %v2475_v17 }
 0x998   :  { %v3671_v14 = vpop.eup %3670  ;;  %v2497_v62 = vadd.f32 %v2493_v35, %v2209_v41  ;;  %v2480_v3 = vsel %vm2479_vm3, %v4836_v20, %v2476_v1  ;;  %v2214_v8 = vpop.f32.mrf.mxu0 }
 0x999   :  { %v2508_v33 = vmul.f32 %v3671_v14, %v2504_v39  ;;  %v2485_v50 = vsel %vm2482_vm4, %v2484_v59, %v2480_v3  ;;  %v2160_v39 = vadd.f32 %v2159_v30, %v4709_v12  ;;  %v2166_v3 = vadd.f32 %v2165_v25, %v4709_v12 }
 0x99a   :  { %3672 = vtanh.f32 %v2497_v62  ;;  %v2506_v19 = vsub.f32 1.0, %v2485_v50  ;;  %v2514_v15 = vmul.f32 0.0, %v2485_v50 }
 0x99b   :  { %v2324_v21 = vpop.f32.mrf.mxu1  ;;  %v4908_v51 = vadd.f32 %v2512_v27, %v2508_v33  ;;  %v2107_v45 = vpop.f32.mrf.mxu2 }
 0x99c   :  { %v2490_v46 = vadd.f32 %v2324_v21, %v4775_v6  ;;  %v2168_v9 = vpop.f32.mrf.mxu3  ;;  %v2108_v14 = vadd.f32 %v2107_v45, %v4703_v5 }
 0x99d   :  { %3458 = vmatmul.msk.f32.gmra.mxu1 %vm33_vm0, %v4908_v51  ;;  %3462 = vmatmul.msk.f32.gmra.mxu2 %vm33_vm0, %v4908_v51  ;;  %v2169_v26 = vadd.f32 %v2168_v9, %v4709_v12 }
 0x99e   :  { %v2494_v40 = vmul.f32 %v2490_v46, %v2405_v58  ;;  %3466 = vmatmul.msk.f32.gmra.mxu3 %vm33_vm0, %v4908_v51 }
 0x9a0   :  { %v3673_v36 = vpop.eup %3672  ;;  %v2498_v43 = vadd.f32 %v2494_v40, %v2212_v54  ;;  %v2217_v47 = vpop.f32.mrf.mxu0 }
 0x9a1   :  { %v2509_v29 = vmul.f32 %v3673_v36, %v2505_v48 }
 0x9a2   :  { %3674 = vtanh.f32 %v2498_v43 }
 0x9a3   :  { %v4924_v53 = vadd.f32 %v2513_v34, %v2509_v29  ;;  %v2110_v13 = vpop.f32.mrf.mxu2 }
 0x9a4   :  { %v4944_v37 = vpop.f32.mrf.mxu3  ;;  %v2111_v21 = vadd.f32 %v2110_v13, %v4703_v5 }
 0x9a5   :  { %3459 = vmatmul.msk.f32.gmra.mxu1 %vm33_vm0, %v4924_v53  ;;  %3463 = vmatmul.msk.f32.gmra.mxu2 %vm33_vm0, %v4924_v53 }
 0x9a6   :  { %3467 = vmatmul.msk.f32.gmra.mxu3 %vm33_vm0, %v4924_v53 }
 0x9a8   :  { %v3675_v4 = vpop.eup %3674 }
 0x9a9   :  { %v2510_v32 = vmul.f32 %v3675_v4, %v2506_v19  ;;  %v2215_v4 = vadd.f32 %v2214_v8, %v4759_v10 }
 0x9ab   :  { %v4932_v20 = vadd.f32 %v2514_v15, %v2510_v32  ;;  %v2113_v63 = vpop.f32.mrf.mxu2  ;;  %v4972_v32 = vadd.f32 %v2217_v47, %v4759_v10 }
 0x9ac   :  { %v4948_v52 = vpop.f32.mrf.mxu3  ;;  %v2114_v34 = vadd.f32 %v2113_v63, %v4703_v5 }
 0x9ad   :  { %3460 = vmatmul.msk.f32.gmra.mxu1 %vm33_vm0, %v4932_v20  ;;  %3464 = vmatmul.msk.f32.gmra.mxu2 %vm33_vm0, %v4932_v20 }
 0x9ae   :  { %3468 = vmatmul.msk.f32.gmra.mxu3 %vm33_vm0, %v4932_v20 }
 0x9b3   :  { %v4942_v41 = vpop.f32.mrf.mxu2 }
 0x9b4   :  { %v4952_v16 = vpop.f32.mrf.mxu3 }
 0x9b6   :  { %3497 = vmatmul.msk.f32.vlgmr.msra.gmra.mxu3 %vm610_vm10, %v4723_v60 }
 0x9bb   :  { %v4946_v0 = vpop.f32.mrf.mxu2 }
 0x9bc   :  { %v4957_v22 = vpop.f32.mrf.mxu3 }
 0x9c3   :  { %v4950_v2 = vpop.f32.mrf.mxu2 }
 0x9cb   :  { %v4954_v60 = vpop.f32.mrf.mxu2 }
 0xa12   :  { %v2548_v35 = vpop.f32.mrf.mxu1 }
 0xa13   :  { %v2618_v42 = vadd.f32 %v2548_v35, %v2105_v31 }
 0xa15   :  { %v3469_v44 = vmul.f32 -1.442695, %v2618_v42 }
 0xa17   :  { %3676 = vpow2.f32 %v3469_v44 }
 0xa18   :  { %v2577_v23 = vpop.f32.mrf.mxu2 }
 0xa19   :  { %v2698_v62 = vadd.f32 %v2577_v23, %v2160_v39  ;;  %v2606_v33 = vpop.f32.mrf.mxu3 }
 0xa1a   :  { %v2551_v7 = vpop.f32.mrf.mxu1  ;;  %v2778_v30 = vadd.f32 %v2606_v33, %v4775_v6 }
 0xa1b   :  { %v3473_v57 = vmul.f32 -1.442695, %v2698_v62  ;;  %v2619_v17 = vadd.f32 %v2551_v7, %v2108_v14 }
 0xa1d   :  { %v3677_v27 = vpop.eup %3676  ;;  %3678 = vpow2.f32 %v3473_v57  ;;  %v3470_v18 = vmul.f32 -1.442695, %v2619_v17 }
 0xa1e   :  { %v2634_v61 = vadd.f32 1.0, %v3677_v27 }
 0xa1f   :  { %3680 = vpow2.f32 %v3470_v18 }
 0xa20   :  { %3682 = vrcp.f32 %v2634_v61  ;;  %v2580_v56 = vpop.f32.mrf.mxu2  ;;  %v2647_v59 = vand.u32 2147483647, %v2634_v61  ;;  %v2649_v50 = vand.u32 2147483648, %v2634_v61  ;;  %vm2643_vm10 = vweird.f32 %v2634_v61 }
 0xa21   :  { %v2699_v24 = vadd.f32 %v2580_v56, %v2163_v38  ;;  %v2609_v36 = vpop.f32.mrf.mxu3 }
 0xa22   :  { %v2554_v46 = vpop.f32.mrf.mxu1  ;;  %vm4978_vm6 = vcmp.eq.f32.partialorder %v2647_v59, 8.507059e+37  ;;  %v2650_v44 = vor.u32 1.1754944e-38, %v2649_v50  ;;  %v2779_v7 = vadd.f32 %v2609_v36, %v4775_v6 }
 0xa23   :  { %v3679_v28 = vpop.eup %3678  ;;  %v3474_v58 = vmul.f32 -1.442695, %v2699_v24  ;;  %v2620_v1 = vadd.f32 %v2554_v46, %v2111_v21 }
 0xa24   :  { %v4963_v54 = vadd.f32 1.0, %v3679_v28 }
 0xa25   :  { %v3681_v40 = vpop.eup %3680  ;;  %3684 = vpow2.f32 %v3474_v58  ;;  %v3471_v11 = vmul.f32 -1.442695, %v2620_v1 }
 0xa26   :  { %v3683_v48 = vpop.eup %3682  ;;  %3686 = vrcp.f32 %v4963_v54  ;;  %v4966_v29 = vadd.f32 1.0, %v3681_v40  ;;  %v2727_v25 = vand.u32 2147483647, %v4963_v54  ;;  %vm2723_vm1 = vweird.f32 %v4963_v54 }
 0xa27   :  { %v2639_v43 = vmul.f32 %v3683_v48, %v2634_v61  ;;  %3688 = vpow2.f32 %v3471_v11  ;;  %vm2644_vm5 = vweird.f32 %v3683_v48  ;;  %v2729_v57 = vand.u32 2147483648, %v4963_v54 }
 0xa28   :  { %v2583_v19 = vpop.f32.mrf.mxu2  ;;  %3690 = vrcp.f32 %v4966_v29  ;;  %vm2645_vm7 = vmor %vm2643_vm10, %vm2644_vm5  ;;  %vm4992_vm8 = vcmp.eq.f32.partialorder %v2727_v25, 8.507059e+37  ;;  %v2662_v61 = vand.u32 2147483647, %v4966_v29  ;;  %v2664_v1 = vand.u32 2147483648, %v4966_v29 }
 0xa29   :  { %v2640_v15 = vsub.f32 1.0, %v2639_v43  ;;  %v2700_v45 = vadd.f32 %v2583_v19, %v2166_v3  ;;  %v2612_v24 = vpop.f32.mrf.mxu3  ;;  %v2730_v40 = vor.u32 1.1754944e-38, %v2729_v57  ;;  %vm2658_vm11 = vweird.f32 %v4966_v29 }
 0xa2a   :  { %v2557_v55 = vpop.f32.mrf.mxu1  ;;  %v5004_v43 = vadd.f32 %v2612_v24, %v4775_v6  ;;  %vm5014_vm14 = vcmp.eq.f32.partialorder %v2662_v61, 8.507059e+37 }
 0xa2b   :  { %v3685_v13 = vpop.eup %3684  ;;  %v2641_v63 = vmul.f32 %v3683_v48, %v2640_v15  ;;  %v2621_v31 = vadd.f32 %v2557_v55, %v2114_v34  ;;  %v3475_v9 = vmul.f32 -1.442695, %v2700_v45 }
 0xa2c   :  { %v3687_v35 = vpop.eup %3686  ;;  %v4982_v39 = vadd.f32 1.0, %v3685_v13 }
 0xa2d   :  { %v3689_v23 = vpop.eup %3688  ;;  %v2719_v14 = vmul.f32 %v3687_v35, %v4963_v54  ;;  %v2642_v62 = vadd.f32 %v3683_v48, %v2641_v63  ;;  %v3472_v8 = vmul.f32 -1.442695, %v2621_v31  ;;  %vm2724_vm9 = vweird.f32 %v3687_v35 }
 0xa2e   :  { %3692 = vrcp.f32 %v4982_v39  ;;  %v4990_v17 = vadd.f32 1.0, %v3689_v23  ;;  %v3691_v33 = vpop.eup %3690  ;;  %vm5010_vm12 = vmor %vm2723_vm1, %vm2724_vm9  ;;  %v2665_v54 = vor.u32 1.1754944e-38, %v2664_v1  ;;  %vm2738_vm15 = vweird.f32 %v4982_v39 }
 0xa2f   :  { %v2720_v27 = vsub.f32 1.0, %v2719_v14  ;;  %v2646_v38 = vsel %vm2645_vm7, %v3683_v48, %v2642_v62  ;;  %3694 = vpow2.f32 %v3475_v9  ;;  %v2654_v21 = vmul.f32 %v3691_v33, %v4966_v29 }
 0xa30   :  { %v2651_v56 = vsel %vm4978_vm6, %v2650_v44, %v2646_v38  ;;  %3696 = vrcp.f32 %v4990_v17  ;;  %v2586_v46 = vpop.f32.mrf.mxu2  ;;  %vm2659_vm13 = vweird.f32 %v3691_v33  ;;  %v2742_v31 = vand.u32 2147483647, %v4982_v39 }
 0xa31   :  { %v2721_v28 = vmul.f32 %v3687_v35, %v2720_v27  ;;  %v2782_v58 = vmul.f32 %v2778_v30, %v2651_v56  ;;  %v2655_v11 = vsub.f32 1.0, %v2654_v21  ;;  %3698 = vpow2.f32 %v3472_v8  ;;  %vm2660_vm2 = vmor %vm2658_vm11, %vm2659_vm13 }
 0xa32   :  { %v2701_v48 = vadd.f32 %v2586_v46, %v2169_v26  ;;  %v2677_v44 = vand.u32 2147483647, %v4990_v17  ;;  %v2679_v9 = vand.u32 2147483648, %v4990_v17  ;;  %vm2673_vm4 = vweird.f32 %v4990_v17 }
 0xa33   :  { %v2722_v47 = vadd.f32 %v3687_v35, %v2721_v28  ;;  %v2786_v36 = vadd.f32 %v2782_v58, %v2215_v4  ;;  %v2656_v59 = vmul.f32 %v3691_v33, %v2655_v11  ;;  %vm2743_vm7 = vcmp.eq.f32.partialorder %v2742_v31, 8.507059e+37 }
 0xa34   :  { %v5006_v34 = vpop.eup %3692  ;;  %v3476_v19 = vmul.f32 -1.442695, %v2701_v48  ;;  %vm2678_vm5 = vcmp.eq.f32.partialorder %v2677_v44, 8.507059e+37  ;;  %v2680_v46 = vor.u32 1.1754944e-38, %v2679_v9  ;;  %v2615_v44 = vpop.f32.mrf.mxu3 }
 0xa35   :  { %v3695_v4 = vpop.eup %3694  ;;  %v2726_v15 = vsel %vm5010_vm12, %v3687_v35, %v2722_v47  ;;  %3700 = vtanh.f32 %v2786_v36  ;;  %v2734_v26 = vmul.f32 %v5006_v34, %v4982_v39  ;;  %v2657_v45 = vadd.f32 %v3691_v33, %v2656_v59 }
 0xa36   :  { %v3697_v30 = vpop.eup %3696  ;;  %v5023_v55 = vadd.f32 1.0, %v3695_v4  ;;  %3702 = vpow2.f32 %v3476_v19  ;;  %v2731_v13 = vsel %vm4992_vm8, %v2730_v40, %v2726_v15  ;;  %vm2739_vm3 = vweird.f32 %v5006_v34  ;;  %v2220_v40 = vpop.f32.mrf.mxu0 }
 0xa37   :  { %v2735_v25 = vsub.f32 1.0, %v2734_v26  ;;  %v2669_v63 = vmul.f32 %v3697_v30, %v4990_v17  ;;  %v3699_v35 = vpop.eup %3698  ;;  %v2661_v42 = vsel %vm2660_vm2, %v3691_v33, %v2657_v45  ;;  %v2794_v57 = vsub.f32 1.0, %v2731_v13  ;;  %vm5053_vm6 = vmor %vm2738_vm15, %vm2739_vm3 }
 0xa38   :  { %3704 = vrcp.f32 %v5023_v55  ;;  %v2666_v14 = vsel %vm5014_vm14, %v2665_v54, %v2661_v42  ;;  %v5038_v29 = vadd.f32 1.0, %v3699_v35  ;;  %v2744_v33 = vand.u32 2147483648, %v4982_v39 }
 0xa39   :  { %v2736_v23 = vmul.f32 %v5006_v34, %v2735_v25  ;;  %v2670_v62 = vsub.f32 1.0, %v2669_v63  ;;  %v2783_v8 = vmul.f32 %v2779_v7, %v2666_v14  ;;  %vm2674_vm10 = vweird.f32 %v3697_v30 }
 0xa3a   :  { %3706 = vrcp.f32 %v5038_v29  ;;  %v2802_v21 = vmul.f32 %v2731_v13, %v4868_v49  ;;  %vm2675_vm1 = vmor %vm2673_vm4, %vm2674_vm10  ;;  %v2745_v11 = vor.u32 1.1754944e-38, %v2744_v33  ;;  %v2221_v3 = vadd.f32 %v2220_v40, %v4759_v10 }
 0xa3b   :  { %v3701_v27 = vpop.eup %3700  ;;  %v2671_v18 = vmul.f32 %v3697_v30, %v2670_v62  ;;  %v2787_v61 = vadd.f32 %v2783_v8, %v4972_v32  ;;  %v2737_v24 = vadd.f32 %v5006_v34, %v2736_v23  ;;  %v2757_v19 = vand.u32 2147483647, %v5023_v55 }
 0xa3c   :  { %v3703_v38 = vpop.eup %3702  ;;  %v2798_v56 = vmul.f32 %v3701_v27, %v2794_v57  ;;  %v2759_v4 = vand.u32 2147483648, %v5023_v55  ;;  %vm2753_vm9 = vweird.f32 %v5023_v55  ;;  %v2692_v13 = vand.u32 2147483647, %v5038_v29 }
 0xa3d   :  { %v2672_v7 = vadd.f32 %v3697_v30, %v2671_v18  ;;  %v5047_v28 = vadd.f32 1.0, %v3703_v38  ;;  %3708 = vtanh.f32 %v2787_v61  ;;  %v2741_v32 = vsel %vm5053_vm6, %v5006_v34, %v2737_v24 }
 0xa3e   :  { %v3705_v1 = vpop.eup %3704  ;;  %v5057_v49 = vadd.f32 %v2802_v21, %v2798_v56  ;;  %v2746_v17 = vsel %vm2743_vm7, %v2745_v11, %v2741_v32  ;;  %v2760_v23 = vor.u32 1.1754944e-38, %v2759_v4  ;;  %vm2758_vm13 = vcmp.eq.f32.partialorder %v2757_v19, 8.507059e+37  ;;  %v2223_v62 = vpop.f32.mrf.mxu0 }
 0xa3f   :  { %v2749_v39 = vmul.f32 %v3705_v1, %v5023_v55  ;;  %v2676_v48 = vsel %vm2675_vm1, %v3697_v30, %v2672_v7  ;;  %3710 = vrcp.f32 %v5047_v28  ;;  %v2795_v54 = vsub.f32 1.0, %v2746_v17 }
 0xa40   :  { %v2681_v47 = vsel %vm2678_vm5, %v2680_v46, %v2676_v48  ;;  %3477 = vmatmul.msk.f32.vlgmr.msra.gmra.mxu0 %vm33_vm0, %v5057_v49  ;;  %3481 = vmatmul.msk.f32.vlgmr.msrb.gmra.mxu1 %vm33_vm0, %v5057_v49  ;;  %v3707_v36 = vpop.eup %3706  ;;  %vm2754_vm8 = vweird.f32 %v3705_v1  ;;  %v2803_v31 = vmul.f32 %v2746_v17, %v4908_v51  ;;  %vm2688_vm14 = vweird.f32 %v5038_v29 }
 0xa41   :  { %v2750_v59 = vsub.f32 1.0, %v2749_v39  ;;  %v2784_v34 = vmul.f32 %v5004_v43, %v2681_v47  ;;  %3485 = vmatmul.msk.f32.vlgmr.msra.gmra.mxu2 %vm33_vm0, %v5057_v49  ;;  %v2684_v50 = vmul.f32 %v3707_v36, %v5038_v29  ;;  %v2694_v43 = vand.u32 2147483648, %v5038_v29  ;;  %vm2755_vm12 = vmor %vm2753_vm9, %vm2754_vm8 }
 0xa42   :  { %vm2689_vm11 = vweird.f32 %v3707_v36  ;;  %v2781_v27 = vadd.f32 %v2615_v44, %v4775_v6  ;;  %vm2693_vm2 = vcmp.eq.f32.partialorder %v2692_v13, 8.507059e+37  ;;  %v2224_v29 = vadd.f32 %v2223_v62, %v4759_v10 }
 0xa43   :  { %v2751_v15 = vmul.f32 %v3705_v1, %v2750_v59  ;;  %v2788_v26 = vadd.f32 %v2784_v34, %v2221_v3  ;;  %v3709_v30 = vpop.eup %3708  ;;  %v2685_v45 = vsub.f32 1.0, %v2684_v50  ;;  %vm2690_vm15 = vmor %vm2688_vm14, %vm2689_vm11  ;;  %v2695_v51 = vor.u32 1.1754944e-38, %v2694_v43 }
 0xa44   :  { %v2799_v63 = vmul.f32 %v3709_v30, %v2795_v54  ;;  %v2774_v24 = vand.u32 2147483648, %v5047_v28  ;;  %vm2768_vm4 = vweird.f32 %v5047_v28  ;;  %v2772_v40 = vand.u32 2147483647, %v5047_v28 }
 0xa45   :  { %v3711_v25 = vpop.eup %3710  ;;  %3712 = vtanh.f32 %v2788_v26  ;;  %v2752_v35 = vadd.f32 %v3705_v1, %v2751_v15  ;;  %v2686_v9 = vmul.f32 %v3707_v36, %v2685_v45  ;;  %v2172_v4 = vadd.f32 %v4944_v37, %v4709_v12 }
 0xa46   :  { %v2764_v42 = vmul.f32 %v3711_v25, %v5047_v28  ;;  %v5084_v55 = vadd.f32 %v2803_v31, %v2799_v63  ;;  %vm2769_vm3 = vweird.f32 %v3711_v25  ;;  %v2775_v48 = vor.u32 1.1754944e-38, %v2774_v24  ;;  %v5116_v59 = vpop.f32.mrf.mxu0 }
 0xa47   :  { %v2756_v14 = vsel %vm2755_vm12, %v3705_v1, %v2752_v35  ;;  %v2687_v8 = vadd.f32 %v3707_v36, %v2686_v9  ;;  %vm2770_vm10 = vmor %vm2768_vm4, %vm2769_vm3  ;;  %vm2773_vm5 = vcmp.eq.f32.partialorder %v2772_v40, 8.507059e+37  ;;  %v2120_v43 = vadd.f32 %v4946_v0, %v4703_v5 }
 0xa48   :  { %v2765_v57 = vsub.f32 1.0, %v2764_v42  ;;  %v2761_v33 = vsel %vm2758_vm13, %v2760_v23, %v2756_v14  ;;  %3478 = vmatmul.msk.f32.gmra.mxu0 %vm33_vm0, %v5084_v55  ;;  %3482 = vmatmul.msk.f32.gmra.mxu1 %vm33_vm0, %v5084_v55  ;;  %v2123_v0 = vadd.f32 %v4950_v2, %v4703_v5 }
 0xa49   :  { %v2691_v38 = vsel %vm2690_vm15, %v3707_v36, %v2687_v8  ;;  %3486 = vmatmul.msk.f32.gmra.mxu2 %vm33_vm0, %v5084_v55  ;;  %v2796_v56 = vsub.f32 1.0, %v2761_v33  ;;  %v2804_v58 = vmul.f32 %v2761_v33, %v4924_v53 }
 0xa4a   :  { %v2766_v18 = vmul.f32 %v3711_v25, %v2765_v57  ;;  %v2696_v61 = vsel %vm2693_vm2, %v2695_v51, %v2691_v38 }
 0xa4b   :  { %v3713_v21 = vpop.eup %3712  ;;  %v2785_v7 = vmul.f32 %v2781_v27, %v2696_v61 }
 0xa4c   :  { %v2800_v46 = vmul.f32 %v3713_v21, %v2796_v56  ;;  %v2767_v1 = vadd.f32 %v3711_v25, %v2766_v18 }
 0xa4d   :  { %v2789_v32 = vadd.f32 %v2785_v7, %v2224_v29 }
 0xa4e   :  { %v5099_v11 = vadd.f32 %v2804_v58, %v2800_v46  ;;  %v2771_v39 = vsel %vm2770_vm10, %v3711_v25, %v2767_v1  ;;  %v5118_v34 = vpop.f32.mrf.mxu0  ;;  %v2175_v25 = vadd.f32 %v4948_v52, %v4709_v12  ;;  %v2178_v52 = vadd.f32 %v4952_v16, %v4709_v12 }
 0xa4f   :  { %3714 = vtanh.f32 %v2789_v32  ;;  %v2776_v53 = vsel %vm2773_vm5, %v2775_v48, %v2771_v39  ;;  %v3130_v32 = vld [vmem:[%s5270_s2 + $0x48] sm:$0xff]  ;;  %v2126_v39 = vadd.f32 %v4954_v60, %v4703_v5 }
 0xa50   :  { %3479 = vmatmul.msk.f32.gmra.mxu0 %vm33_vm0, %v5099_v11  ;;  %3483 = vmatmul.msk.f32.gmra.mxu1 %vm33_vm0, %v5099_v11  ;;  %v2797_v47 = vsub.f32 1.0, %v2776_v53  ;;  %v2805_v36 = vmul.f32 %v2776_v53, %v4932_v20  ;;  %v2117_v20 = vadd.f32 %v4942_v41, %v4703_v5 }
 0xa51   :  { %3487 = vmatmul.msk.f32.gmra.mxu2 %vm33_vm0, %v5099_v11  ;;  %3149 = vmatpush.msrb.mxu0 %v3130_v32 }
 0xa55   :  { %v3715_v28 = vpop.eup %3714 }
 0xa56   :  { %v2801_v17 = vmul.f32 %v3715_v28, %v2797_v47  ;;  %v5120_v50 = vpop.f32.mrf.mxu0 }
 0xa58   :  { %v5108_v3 = vadd.f32 %v2805_v36, %v2801_v17 }
 0xa5a   :  { %3480 = vmatmul.msk.f32.gmra.mxu0 %vm33_vm0, %v5108_v3  ;;  %3484 = vmatmul.msk.f32.gmra.mxu1 %vm33_vm0, %v5108_v3 }
 0xa5b   :  { %3488 = vmatmul.msk.f32.gmra.mxu2 %vm33_vm0, %v5108_v3 }
 0xa5e   :  { %v5122_v19 = vpop.f32.mrf.mxu0 }
 0xabd   :  { %v2839_v15 = vpop.f32.mrf.mxu0  ;;  %v2868_v26 = vpop.f32.mrf.mxu1 }
 0xabe   :  { %v2909_v54 = vadd.f32 %v2839_v15, %v2117_v20  ;;  %v2989_v30 = vadd.f32 %v2868_v26, %v2172_v4 }
 0xac0   :  { %v3489_v45 = vmul.f32 -1.442695, %v2909_v54  ;;  %v3493_v13 = vmul.f32 -1.442695, %v2989_v30 }
 0xac2   :  { %3716 = vpow2.f32 %v3489_v45 }
 0xac3   :  { %3718 = vpow2.f32 %v3493_v13 }
 0xac4   :  { %v2897_v56 = vpop.f32.mrf.mxu2 }
 0xac5   :  { %v2842_v63 = vpop.f32.mrf.mxu0  ;;  %v2871_v31 = vpop.f32.mrf.mxu1  ;;  %v3069_v36 = vadd.f32 %v2897_v56, %v4775_v6  ;;  %v2227_v6 = vadd.f32 %v5116_v59, %v4759_v10 }
 0xac6   :  { %v2910_v41 = vadd.f32 %v2842_v63, %v2120_v43  ;;  %v2990_v35 = vadd.f32 %v2871_v31, %v2175_v25  ;;  %v5172_v31 = vadd.f32 %v5118_v34, %v4759_v10 }
 0xac8   :  { %v3717_v42 = vpop.eup %3716  ;;  %v3490_v9 = vmul.f32 -1.442695, %v2910_v41  ;;  %v3494_v14 = vmul.f32 -1.442695, %v2990_v35  ;;  %v2181_v41 = vadd.f32 %v4957_v22, %v4709_v12  ;;  %v3155_v12 = vld [vmem:[%s5270_s2 + $0x50] sm:$0xff] }
 0xac9   :  { %v3719_v37 = vpop.eup %3718  ;;  %v2925_v44 = vadd.f32 1.0, %v3717_v42  ;;  %3174 = vmatpush.msrb.mxu3 %v3155_v12 }
 0xaca   :  { %v5132_v23 = vadd.f32 1.0, %v3719_v37 }
 0xacb   :  { %3720 = vrcp.f32 %v2925_v44  ;;  %v2938_v46 = vand.u32 2147483647, %v2925_v44  ;;  %v2940_v58 = vand.u32 2147483648, %v2925_v44  ;;  %vm2934_vm1 = vweird.f32 %v2925_v44 }
 0xacc   :  { %3722 = vrcp.f32 %v5132_v23  ;;  %v3018_v26 = vand.u32 2147483647, %v5132_v23  ;;  %v3020_v54 = vand.u32 2147483648, %v5132_v23  ;;  %vm3014_vm11 = vweird.f32 %v5132_v23  ;;  %v2900_v25 = vpop.f32.mrf.mxu2 }
 0xacd   :  { %3724 = vpow2.f32 %v3490_v9  ;;  %v2845_v62 = vpop.f32.mrf.mxu0  ;;  %v2874_v57 = vpop.f32.mrf.mxu1  ;;  %vm2939_vm8 = vcmp.eq.f32.partialorder %v2938_v46, 8.507059e+37  ;;  %v2941_v17 = vor.u32 1.1754944e-38, %v2940_v58 }
 0xace   :  { %3726 = vpow2.f32 %v3494_v14  ;;  %v2911_v8 = vadd.f32 %v2845_v62, %v2123_v0  ;;  %v2991_v33 = vadd.f32 %v2874_v57, %v2178_v52  ;;  %vm3019_vm13 = vcmp.eq.f32.partialorder %v3018_v26, 8.507059e+37 }
 0xacf   :  { %v3021_v22 = vor.u32 1.1754944e-38, %v3020_v54  ;;  %v3127_v54 = vpop.f32.mrf.mxu3 }
 0xad0   :  { %v3491_v27 = vmul.f32 -1.442695, %v2911_v8  ;;  %v3495_v18 = vmul.f32 -1.442695, %v2991_v33 }
 0xad1   :  { %v3721_v51 = vpop.eup %3720 }
 0xad2   :  { %v5139_v38 = vpop.eup %3722  ;;  %v2930_v21 = vmul.f32 %v3721_v51, %v2925_v44  ;;  %3728 = vpow2.f32 %v3491_v27  ;;  %vm2935_vm6 = vweird.f32 %v3721_v51 }
 0xad3   :  { %v3725_v29 = vpop.eup %3724  ;;  %v3010_v2 = vmul.f32 %v5139_v38, %v5132_v23  ;;  %3730 = vpow2.f32 %v3495_v18  ;;  %vm2936_vm7 = vmor %vm2934_vm1, %vm2935_vm6  ;;  %vm3015_vm9 = vweird.f32 %v5139_v38  ;;  %v5195_v23 = vld [vmem:[%s5272_s1 + $0xeb] ss:$0 sm:$0xff] }
 0xad4   :  { %v3727_v61 = vpop.eup %3726  ;;  %v2931_v16 = vsub.f32 1.0, %v2930_v21  ;;  %v5143_v24 = vadd.f32 1.0, %v3725_v29  ;;  %vm5178_vm12 = vmor %vm3014_vm11, %vm3015_vm9  ;;  %v3070_v14 = vadd.f32 %v5195_v23, %v2900_v25 }
 0xad5   :  { %v3011_v7 = vsub.f32 1.0, %v3010_v2  ;;  %v5145_v1 = vadd.f32 1.0, %v3727_v61 }
 0xad6   :  { %v2932_v40 = vmul.f32 %v3721_v51, %v2931_v16  ;;  %3732 = vrcp.f32 %v5143_v24  ;;  %v2953_v62 = vand.u32 2147483647, %v5143_v24  ;;  %v2955_v57 = vand.u32 2147483648, %v5143_v24 }
 0xad7   :  { %v3012_v48 = vmul.f32 %v5139_v38, %v3011_v7  ;;  %3734 = vrcp.f32 %v5145_v1  ;;  %v2848_v47 = vpop.f32.mrf.mxu0  ;;  %v2877_v0 = vpop.f32.mrf.mxu1  ;;  %vm3029_vm15 = vweird.f32 %v5145_v1  ;;  %vm2949_vm2 = vweird.f32 %v5143_v24 }
 0xad8   :  { %v2933_v53 = vadd.f32 %v3721_v51, %v2932_v40  ;;  %v3729_v28 = vpop.eup %3728  ;;  %v2912_v20 = vadd.f32 %v2848_v47, %v2126_v39  ;;  %v2992_v18 = vadd.f32 %v2877_v0, %v2181_v41  ;;  %v3035_v56 = vand.u32 2147483648, %v5145_v1 }
 0xad9   :  { %v3731_v4 = vpop.eup %3730  ;;  %v3013_v15 = vadd.f32 %v5139_v38, %v3012_v48  ;;  %v5158_v60 = vadd.f32 1.0, %v3729_v28  ;;  %vm2954_vm4 = vcmp.eq.f32.partialorder %v2953_v62, 8.507059e+37  ;;  %v2956_v16 = vor.u32 1.1754944e-38, %v2955_v57 }
 0xada   :  { %v2937_v5 = vsel %vm2936_vm7, %v3721_v51, %v2933_v53  ;;  %v5162_v45 = vadd.f32 1.0, %v3731_v4  ;;  %v3492_v42 = vmul.f32 -1.442695, %v2912_v20  ;;  %v3496_v7 = vmul.f32 -1.442695, %v2992_v18  ;;  %v3180_v53 = vld [vmem:[%s5270_s2 + $0x58] sm:$0xff] }
 0xadb   :  { %v2942_v30 = vsel %vm2939_vm8, %v2941_v17, %v2937_v5  ;;  %3736 = vrcp.f32 %v5158_v60  ;;  %v3017_v37 = vsel %vm5178_vm12, %v5139_v38, %v3013_v15  ;;  %v3033_v38 = vand.u32 2147483647, %v5145_v1  ;;  %3199 = vmatpush.msra.mxu0 %v3180_v53  ;;  %v3205_v5 = vld [vmem:[%s5270_s2 + $0x60] sm:$0xff] }
 0xadc   :  { %v3733_v13 = vpop.eup %3732  ;;  %v3073_v43 = vmul.f32 %v3069_v36, %v2942_v30  ;;  %3738 = vrcp.f32 %v5162_v45  ;;  %v3022_v8 = vsel %vm3019_vm13, %v3021_v22, %v3017_v37  ;;  %v2970_v36 = vand.u32 2147483648, %v5158_v60  ;;  %3224 = vmatpush.msra.mxu3 %v3205_v5 }
 0xadd   :  { %v5168_v63 = vpop.eup %3734  ;;  %v2945_v59 = vmul.f32 %v3733_v13, %v5143_v24  ;;  %vm2950_vm14 = vweird.f32 %v3733_v13  ;;  %v3085_v61 = vsub.f32 1.0, %v3022_v8  ;;  %v3093_v46 = vmul.f32 %v3022_v8, %v5057_v49 }
 0xade   :  { %v3077_v44 = vadd.f32 %v3073_v43, %v2227_v6  ;;  %v3025_v34 = vmul.f32 %v5168_v63, %v5145_v1  ;;  %vm2951_vm3 = vmor %vm2949_vm2, %vm2950_vm14  ;;  %vm3030_vm10 = vweird.f32 %v5168_v63  ;;  %v2968_v4 = vand.u32 2147483647, %v5158_v60  ;;  %v2903_v6 = vpop.f32.mrf.mxu2 }
 0xadf   :  { %v2946_v9 = vsub.f32 1.0, %v2945_v59  ;;  %vm5227_vm6 = vmor %vm3029_vm15, %vm3030_vm10  ;;  %vm2964_vm1 = vweird.f32 %v5158_v60  ;;  %vm3034_vm7 = vcmp.eq.f32.partialorder %v3033_v38, 8.507059e+37  ;;  %v3036_v1 = vor.u32 1.1754944e-38, %v3035_v56 }
 0xae0   :  { %3740 = vtanh.f32 %v3077_v44  ;;  %v3026_v52 = vsub.f32 1.0, %v3025_v34  ;;  %v2971_v41 = vor.u32 1.1754944e-38, %v2970_v36  ;;  %vm2969_vm11 = vcmp.eq.f32.partialorder %v2968_v4, 8.507059e+37 }
 0xae1   :  { %v2947_v33 = vmul.f32 %v3733_v13, %v2946_v9  ;;  %3742 = vpow2.f32 %v3492_v42  ;;  %v3737_v51 = vpop.eup %3736  ;;  %v2233_v44 = vadd.f32 %v5120_v50, %v4759_v10  ;;  %v3050_v34 = vand.u32 2147483648, %v5162_v45 }
 0xae2   :  { %v3027_v27 = vmul.f32 %v5168_v63, %v3026_v52  ;;  %v2960_v29 = vmul.f32 %v3737_v51, %v5158_v60  ;;  %v5206_v2 = vpop.eup %3738  ;;  %3744 = vpow2.f32 %v3496_v7  ;;  %vm2965_vm5 = vweird.f32 %v3737_v51 }
 0xae3   :  { %v2948_v21 = vadd.f32 %v3733_v13, %v2947_v33  ;;  %v3040_v24 = vmul.f32 %v5206_v2, %v5162_v45  ;;  %vm2966_vm8 = vmor %vm2964_vm1, %vm2965_vm5  ;;  %vm3045_vm9 = vweird.f32 %v5206_v2  ;;  %vm3044_vm12 = vweird.f32 %v5162_v45 }
 0xae4   :  { %v2961_v40 = vsub.f32 1.0, %v2960_v29  ;;  %v3028_v39 = vadd.f32 %v5168_v63, %v3027_v27  ;;  %v3048_v22 = vand.u32 2147483647, %v5162_v45  ;;  %vm3046_vm13 = vmor %vm3044_vm12, %vm3045_vm9  ;;  %v3051_v33 = vor.u32 1.1754944e-38, %v3050_v34 }
 0xae5   :  { %v2952_v58 = vsel %vm2951_vm3, %v3733_v13, %v2948_v21  ;;  %v3041_v49 = vsub.f32 1.0, %v3040_v24  ;;  %v2236_v53 = vadd.f32 %v5122_v19, %v4759_v10  ;;  %vm3249_vm9 = vcmask 48128  }
 0xae6   :  { %v3741_v32 = vpop.eup %3740  ;;  %v2957_v48 = vsel %vm2954_vm4, %v2956_v16, %v2952_v58  ;;  %v2962_v20 = vmul.f32 %v3737_v51, %v2961_v40  ;;  %v3032_v43 = vsel %vm5227_vm6, %v5168_v63, %v3028_v39  ;;  %v3071_v63 = vadd.f32 %v5195_v23, %v2903_v6  ;;  %v2906_v56 = vpop.f32.mrf.mxu2 }
 0xae7   :  { %v3743_v47 = vpop.eup %3742  ;;  %v3089_v28 = vmul.f32 %v3741_v32, %v3085_v61  ;;  %v3074_v17 = vmul.f32 %v3070_v14, %v2957_v48  ;;  %v3042_v13 = vmul.f32 %v5206_v2, %v3041_v49  ;;  %v3037_v59 = vsel %vm3034_vm7, %v3036_v1, %v3032_v43 }
 0xae8   :  { %v5218_v15 = vadd.f32 1.0, %v3743_v47  ;;  %v2963_v25 = vadd.f32 %v3737_v51, %v2962_v20  ;;  %v3086_v14 = vsub.f32 1.0, %v3037_v59  ;;  %v3094_v8 = vmul.f32 %v3037_v59, %v5084_v55 }
 0xae9   :  { %v3097_v26 = vadd.f32 %v3093_v46, %v3089_v28  ;;  %v3078_v30 = vadd.f32 %v3074_v17, %v5172_v31  ;;  %v3745_v31 = vpop.eup %3744  ;;  %v3043_v60 = vadd.f32 %v5206_v2, %v3042_v13  ;;  %vm3049_vm14 = vcmp.eq.f32.partialorder %v3048_v22, 8.507059e+37 }
 0xaea   :  { %3746 = vrcp.f32 %v5218_v15  ;;  %v2967_v35 = vsel %vm2966_vm8, %v3737_v51, %v2963_v25  ;;  %v3008_v37 = vadd.f32 1.0, %v3745_v31  ;;  %v2985_v18 = vand.u32 2147483648, %v5218_v15 }
 0xaeb   :  { %3748 = vtanh.f32 %v3078_v30  ;;  %3498 = vmatmul.msk.f32.vlgmr.msrb.gmra.mxu0 %vm33_vm0, %v3097_v26  ;;  %v2972_v42 = vsel %vm2969_vm11, %v2971_v41, %v2967_v35  ;;  %v3047_v62 = vsel %vm3046_vm13, %v5206_v2, %v3043_v60  ;;  %v2983_v29 = vand.u32 2147483647, %v5218_v15  ;;  %v3505_v30 = vld [vmem:[%s5270_s2 + $0x68] ss:$0 sm:$0xff] }
 0xaec   :  { %v3075_v12 = vmul.f32 %v3071_v63, %v2972_v42  ;;  %3750 = vrcp.f32 %v3008_v37  ;;  %v3052_v27 = vsel %vm3049_vm14, %v3051_v33, %v3047_v62  ;;  %vm2979_vm2 = vweird.f32 %v5218_v15 }
 0xaed   :  { %v3087_v61 = vsub.f32 1.0, %v3052_v27  ;;  %v2986_v46 = vor.u32 1.1754944e-38, %v2985_v18  ;;  %v3072_v58 = vadd.f32 %v5195_v23, %v2906_v56  ;;  %v3095_v40 = vmul.f32 %v3052_v27, %v5099_v11 }
 0xaee   :  { %v3079_v0 = vadd.f32 %v3075_v12, %v2233_v44  ;;  %vm2984_vm4 = vcmp.eq.f32.partialorder %v2983_v29, 8.507059e+37  ;;  %v3065_v28 = vand.u32 2147483648, %v3008_v37  ;;  %vm3059_vm5 = vweird.f32 %v3008_v37 }
 0xaef   :  { %v3063_v36 = vand.u32 2147483647, %v3008_v37  ;;  %v3128_v6 = vadd.f32 %v3505_v30, %v3127_v54 }
 0xaf0   :  { %v3747_v9 = vpop.eup %3746  ;;  %3752 = vtanh.f32 %v3079_v0  ;;  %v3066_v11 = vor.u32 1.1754944e-38, %v3065_v28 }
 0xaf1   :  { %v3749_v52 = vpop.eup %3748  ;;  %v2975_v57 = vmul.f32 %v3747_v9, %v5218_v15  ;;  %vm2980_vm15 = vweird.f32 %v3747_v9  ;;  %vm3064_vm1 = vcmp.eq.f32.partialorder %v3063_v36, 8.507059e+37 }
 0xaf2   :  { %v3090_v50 = vmul.f32 %v3749_v52, %v3086_v14  ;;  %v3751_v38 = vpop.eup %3750  ;;  %vm2981_vm3 = vmor %vm2979_vm2, %vm2980_vm15 }
 0xaf3   :  { %v2976_v51 = vsub.f32 1.0, %v2975_v57  ;;  %v3055_v2 = vmul.f32 %v3751_v38, %v3008_v37  ;;  %vm3060_vm10 = vweird.f32 %v3751_v38 }
 0xaf4   :  { %v3098_v45 = vadd.f32 %v3094_v8, %v3090_v50  ;;  %vm3061_vm6 = vmor %vm3059_vm5, %vm3060_vm10 }
 0xaf5   :  { %v2977_v21 = vmul.f32 %v3747_v9, %v2976_v51  ;;  %v3056_v7 = vsub.f32 1.0, %v3055_v2 }
 0xaf6   :  { %3499 = vmatmul.msk.f32.vlgmr.msrb.gmra.mxu3 %vm33_vm0, %v3098_v45  ;;  %v3753_v55 = vpop.eup %3752 }
 0xaf7   :  { %v2978_v16 = vadd.f32 %v3747_v9, %v2977_v21  ;;  %v3091_v24 = vmul.f32 %v3753_v55, %v3087_v61  ;;  %v3057_v39 = vmul.f32 %v3751_v38, %v3056_v7 }
 0xaf9   :  { %v2982_v32 = vsel %vm2981_vm3, %v3747_v9, %v2978_v16  ;;  %v3099_v47 = vadd.f32 %v3095_v40, %v3091_v24  ;;  %v3058_v49 = vadd.f32 %v3751_v38, %v3057_v39 }
 0xafa   :  { %v2987_v48 = vsel %vm2984_vm4, %v2986_v46, %v2982_v32 }
 0xafb   :  { %v3076_v17 = vmul.f32 %v3072_v58, %v2987_v48  ;;  %3500 = vmatmul.msk.f32.vlgmr.msra.gmra.mxu0 %vm33_vm0, %v3099_v47  ;;  %v3062_v23 = vsel %vm3061_vm6, %v3751_v38, %v3058_v49 }
 0xafc   :  { %v3067_v4 = vsel %vm3064_vm1, %v3066_v11, %v3062_v23 }
 0xafd   :  { %v3080_v20 = vadd.f32 %v3076_v17, %v2236_v53  ;;  %v3088_v15 = vsub.f32 1.0, %v3067_v4  ;;  %v3096_v10 = vmul.f32 %v3067_v4, %v5108_v3 }
 0xaff   :  { %3754 = vtanh.f32 %v3080_v20 }
 0xb05   :  { %v3755_v5 = vpop.eup %3754 }
 0xb06   :  { %v3092_v26 = vmul.f32 %v3755_v5, %v3088_v15 }
 0xb08   :  { %v3100_v19 = vadd.f32 %v3096_v10, %v3092_v26 }
 0xb0a   :  { %3501 = vmatmul.msk.f32.vlgmr.msra.gmra.mxu3 %vm33_vm0, %v3100_v19 }
 0xb68   :  { %v3151_v13 = vpop.f32.mrf.mxu0 }
 0xb69   :  { %v3154_v25 = vadd.f32 %v3151_v13, %v3128_v6 }
 0xb78   :  { %v3201_v41 = vpop.f32.mrf.mxu0 }
 0xb79   :  { %v3176_v43 = vpop.f32.mrf.mxu3 }
 0xb7a   :  { %v3179_v1 = vadd.f32 %v3176_v43, %v3154_v25 }
 0xb7c   :  { %v3204_v31 = vadd.f32 %v3201_v41, %v3179_v1 }
 0xb8d   :  { %v3226_v35 = vpop.f32.mrf.mxu3 }
 0xb8e   :  { %v3229_v63 = vadd.f32 %v3226_v35, %v3204_v31 }
 0xb90   :  { %v3502_v59 = vmul.f32 -1.442695, %v3229_v63 }
 0xb92   :  { %3756 = vpow2.f32 %v3502_v59 }
 0xb98   :  { %v3757_v3 = vpop.eup %3756 }
 0xb99   :  { %v3233_v60 = vadd.f32 1.0, %v3757_v3 }
 0xb9b   :  { %3758 = vrcp.f32 %v3233_v60  ;;  %v3245_v34 = vand.u32 2147483648, %v3233_v60  ;;  %v3243_v22 = vand.u32 2147483647, %v3233_v60  ;;  %vm3239_vm7 = vweird.f32 %v3233_v60 }
 0xb9d   :  { %v3246_v14 = vor.u32 1.1754944e-38, %v3245_v34  ;;  %vm3244_vm11 = vcmp.eq.f32.partialorder %v3243_v22, 8.507059e+37 }
 0xba1   :  { %v3759_v42 = vpop.eup %3758 }
 0xba2   :  { %v3235_v37 = vmul.f32 %v3759_v42, %v3233_v60  ;;  %vm3240_vm0 = vweird.f32 %v3759_v42 }
 0xba3   :  { %vm3241_vm8 = vmor %vm3239_vm7, %vm3240_vm0 }
 0xba4   :  { %v3236_v44 = vsub.f32 1.0, %v3235_v37 }
 0xba6   :  { %v3237_v12 = vmul.f32 %v3759_v42, %v3236_v44 }
 0xba8   :  { %v3238_v9 = vadd.f32 %v3759_v42, %v3237_v12 }
 0xbaa   :  { %v3242_v0 = vsel %vm3241_vm8, %v3759_v42, %v3238_v9 }
 0xbab   :  { %v3247_v52 = vsel %vm3244_vm11, %v3246_v14, %v3242_v0 }
 0xbac   :  { %3250 = vst.msk [vmem:[%s5273_s3] sm:$0xff] %vm3249_vm9, %v3247_v52 }

</bundles_post_ra>
